<compile_context>
chip_gen: v7x
topology: tpu7x:2x2x1
jax: 0.10.0
libtpu: 0.0.40
codegen_flags: <defaults>
</compile_context>

<pallas_src>
import functools

import jax
import jax.numpy as jnp
from jax.experimental import pallas as pl
from jax.experimental.pallas import tpu as pltpu


def _first_min_index_axis0(vals, idx_col, fill):
    """First index of the minimum along axis 0. vals:(R,C), idx_col:(R,1) f32 -> (1,C) i32."""
    vmin = jnp.min(vals, axis=0, keepdims=True)
    cand = jnp.where(vals <= vmin, idx_col, fill)
    return jnp.min(cand, axis=0, keepdims=True).astype(jnp.int32)


def _first_max_index_axis0(vals, idx_col, fill):
    """First index of the maximum along axis 0. vals:(R,C), idx_col:(R,1) f32 -> (1,C) i32."""
    vmax = jnp.max(vals, axis=0, keepdims=True)
    cand = jnp.where(vals >= vmax, idx_col, fill)
    return jnp.min(cand, axis=0, keepdims=True).astype(jnp.int32)


def make_vq_group_kernel(n_classes, num_group, vec_len, eps=1e-12):
    K, G, D = n_classes, num_group, vec_len

    def kernel(xT_ref, e_ref, et_ref, esq_ref, kidx_ref, kgrp_ref, gidx_ref, gmat_ref,
               out_ref, pen_ref, idx_ref):
        xT = xT_ref[...]        # (D, TB) f32 input rows, batch lane-dense
        e = e_ref[...]          # (K, D)  f32 codebook
        eT = et_ref[...]        # (D, K)  f32 codebook, transposed
        e_sq = esq_ref[...]     # (K, 1)  ||e_k||^2
        kidx = kidx_ref[...]    # (K, 1)  f32 class index
        kgrp = kgrp_ref[...]    # (K, 1)  i32 class -> group id
        gidx = gidx_ref[...]    # (G, 1)  f32 group index
        gmat = gmat_ref[...]    # (G, K)  f32 one-hot group membership

        # Pairwise squared L2 distances, class-major: d2[k, b] = ||x_b - e_k||^2.
        xeT = jnp.dot(e, xT, preferred_element_type=jnp.float32)        # (K, TB) MXU
        xsq = jnp.sum(xT * xT, axis=0, keepdims=True)                    # (1, TB) sublane reduce
        # NOTE: expanded form can lose precision for near-duplicates; eps clamp keeps
        # rsqrt finite when a row exactly matches a codeword (torch would emit NaN/inf).
        d2 = jnp.maximum(e_sq - 2.0 * xeT + xsq, eps)                    # (K, TB)
        r = jax.lax.rsqrt(d2)                                            # (K, TB) single EUP pass
        d = d2 * r                                                       # sqrt(d2) via one VPU mul

        # Atom-level argmin over all classes (argmin of d2 == argmin of d).
        ia = _first_min_index_axis0(d2, kidx, float(K))                  # (1, TB)

        # Per-group distance: sum of d over the group's classes (the 1/C mean scale is
        # dropped; argmin is unchanged).
        dg = jnp.dot(gmat, d, preferred_element_type=jnp.float32)        # (G, TB)
        ig = _first_min_index_axis0(dg, gidx, float(G))                  # (1, TB)

        # Un-normalized probabilities 1/d inside the winning group.
        sel = kgrp == ig                                                 # (K, TB)
        masked_p = jnp.where(sel, r, 0.0)                                # (K, TB)

        # Top-1 class of the selected group (feeds the entropy histogram).
        it = _first_max_index_axis0(masked_p, kidx, float(K))            # (1, TB)

        # Weighted codebook sum; L1 normalization applied AFTER the matmul.
        psum = jnp.sum(masked_p, axis=0, keepdims=True)                  # (1, TB)
        inv_psum = 1.0 / psum                                            # exact: feeds the output
        outT = jnp.dot(eT, masked_p, preferred_element_type=jnp.float32) * inv_psum  # (D, TB)
        out_ref[...] = outT

        # vq penalty ||x - out||^2, kept lane-dense:
        #   ||x||^2 - 2<x,out> + ||out||^2, with <x,out> = sum_k p_norm[k] * <x, e_k>.
        xo = jnp.sum(masked_p * xeT, axis=0, keepdims=True) * inv_psum   # (1, TB)
        osq = jnp.sum(outT * outT, axis=0, keepdims=True)                # (1, TB)
        pen_ref[...] = jnp.maximum(xsq - 2.0 * xo + osq, 0.0)

        # Single (3, TB) store: [index_atom, index_group, top-1 class].
        idx_ref[...] = jnp.concatenate([ia, ig, it], axis=0)

    return kernel


def _round_up(a, m):
    return ((a + m - 1) // m) * m


@functools.partial(jax.jit, static_argnums=(2, 3, 4))
def vector_quant_group_forward(x0, embedding0, num_group, num_sample, tile_b=1024):
    """Mirrors VectorQuantGroup.forward (normalize=False).

    x0:         (N, samples, n_channels, vec_len), n_channels must be 1
    embedding0: (n_channels, n_classes, vec_len)
    returns (discrete, vq_pen, encoder_pen, entropy, index_atom, index_group)
    """
    N, S, n_ch, D = x0.shape
    if n_ch != 1:
        raise ValueError("VectorQuantGroup's group logic requires n_channels == 1")
    n_classes = embedding0.shape[1]
    assert n_classes % num_group == 0
    C = n_classes // num_group
    assert n_classes == num_group * num_sample  # => num_sample == C
    G = num_group
    B = N * S * n_ch

    # Tile selection: lane-dense (multiple of 128); small problems collapse to ONE grid
    # step so the ~0.35us/step pipeline overhead is paid once.
    tile_eff = min(_round_up(tile_b, 128), _round_up(B, 128))
    nb = pl.cdiv(B, tile_eff)
    Bp = nb * tile_eff

    # Batch axis goes to lanes: one wrapper-side transpose instead of a per-step relayout.
    xT = jnp.transpose(x0.reshape(B, D).astype(jnp.float32))            # (D, B)
    if Bp != B:
        xT = jnp.pad(xT, ((0, 0), (0, Bp - B)))                         # padded cols sliced below

    e = embedding0.reshape(n_classes, D).astype(jnp.float32)
    eT = jnp.transpose(e)                                               # (D, K)
    e_sq = jnp.sum(e * e, axis=1, keepdims=True)                        # (K, 1)
    k_ids = jnp.arange(n_classes, dtype=jnp.int32)
    g_of_k = k_ids // C
    kidx = k_ids.astype(jnp.float32)[:, None]                           # (K, 1)
    kgrp = g_of_k[:, None]                                              # (K, 1) int32
    gidx = jnp.arange(G, dtype=jnp.float32)[:, None]                    # (G, 1)
    gmat = (jnp.arange(G, dtype=jnp.int32)[:, None] == g_of_k[None, :]).astype(jnp.float32)

    kernel = make_vq_group_kernel(n_classes, G, D)
    const = lambda i: (0, 0)
    outT, pen_row, idx_rows = pl.pallas_call(
        kernel,
        out_shape=(
            jax.ShapeDtypeStruct((D, Bp), jnp.float32),   # quantized output, transposed
            jax.ShapeDtypeStruct((1, Bp), jnp.float32),   # vq_pen (== encoder_pen here)
            jax.ShapeDtypeStruct((3, Bp), jnp.int32),     # [index_atom, index_group, top-1 class]
        ),
        grid_spec=pltpu.PrefetchScalarGridSpec(
            num_scalar_prefetch=0,
            grid=(nb,),
            in_specs=[
                pl.BlockSpec((D, tile_eff), lambda i: (0, i)),
                pl.BlockSpec((n_classes, D), const),
                pl.BlockSpec((D, n_classes), const),
                pl.BlockSpec((n_classes, 1), const),
                pl.BlockSpec((n_classes, 1), const),
                pl.BlockSpec((n_classes, 1), const),
                pl.BlockSpec((G, 1), const),
                pl.BlockSpec((G, n_classes), const),
            ],
            out_specs=[
                pl.BlockSpec((D, tile_eff), lambda i: (0, i)),
                pl.BlockSpec((1, tile_eff), lambda i: (0, i)),
                pl.BlockSpec((3, tile_eff), lambda i: (0, i)),
            ],
        ),
        compiler_params=pltpu.CompilerParams(
            dimension_semantics=("parallel",),
            # ~K*TB*4B*6 of intermediates + double-buffered I/O: a few MB even at TB=2048.
            # Re-derive against 64 MiB physical VMEM before pushing tile_b >= 4096 on v7x.
            vmem_limit_bytes=32 * 1024 * 1024,
        ),
    )(xT, e, eT, e_sq, kidx, kgrp, gidx, gmat)

    output = jnp.transpose(outT[:, :B]).reshape(N, S, n_ch, D)
    discrete = output            # straight-through estimator: forward value == output
    vq_pen = pen_row[0, :B].reshape(N, S, n_ch)
    encoder_pen = vq_pen         # normalize=False => x == x0, so the extra ||x-x0||^2 term is 0
    index_atom = idx_rows[0, :B].reshape(N, S, n_ch)     # int32 (torch returns int64)
    index_group = idx_rows[1, :B].reshape(N, S, n_ch)    # int32 (torch returns int64)

    # Entropy of the top-1 class histogram (torch does this host-side with .histc().item();
    # here it is a traced f32 scalar).  Vectorized compare+reduce instead of bincount scatter.
    top1 = idx_rows[2, :B]                                              # (B,) int32
    onehot = (top1[:, None] == jnp.arange(n_classes, dtype=jnp.int32)[None, :])
    hist = jnp.sum(onehot.astype(jnp.float32), axis=0)                  # (K,)
    p = hist / B
    entropy = -jnp.sum(jnp.where(hist > 0, p * jnp.log(jnp.where(hist > 0, p, 1.0)), 0.0))

    return discrete, vq_pen, encoder_pen, entropy, index_atom, index_group


if __name__ == "__main__":
    # module config: n_classes == num_group * num_sample, n_channels == 1
    n_channels, n_classes, vec_len = 1, 64, 16
    num_group, num_sample = 8, 8
    N, samples = 2, 300          # B = 600 -> one lane-dense tile of 640 (single grid step)

    key = jax.random.PRNGKey(0)
    k_emb, k_x = jax.random.split(key)
    embedding_scale = 0.001      # normalize=False branch of __init__
    embedding0 = (jax.random.normal(k_emb, (n_channels, n_classes, vec_len),
                                    dtype=jnp.float32) * embedding_scale)
    x0 = jax.random.normal(k_x, (N, samples, n_channels, vec_len), dtype=jnp.float32)

    results = vector_quant_group_forward(x0, embedding0, num_group, num_sample, 1024)
    results = jax.block_until_ready(results)
    print("KERNEL_OK")
</pallas_src>

<mosaic_0001>
module attributes {stable_mosaic.version = 11 : i64} {
  func.func @kernel(%arg0: i32, %arg1: memref<16x640xf32, #tpu.memory_space<vmem>>, %arg2: memref<64x16xf32, #tpu.memory_space<vmem>>, %arg3: memref<16x64xf32, #tpu.memory_space<vmem>>, %arg4: memref<64x1xf32, #tpu.memory_space<vmem>>, %arg5: memref<64x1xf32, #tpu.memory_space<vmem>>, %arg6: memref<64x1xi32, #tpu.memory_space<vmem>>, %arg7: memref<8x1xf32, #tpu.memory_space<vmem>>, %arg8: memref<8x64xf32, #tpu.memory_space<vmem>>, %arg9: memref<16x640xf32, #tpu.memory_space<vmem>>, %arg10: memref<1x640xf32, #tpu.memory_space<vmem>>, %arg11: memref<3x640xi32, #tpu.memory_space<vmem>>) attributes {dimension_semantics = [#tpu.dimension_semantics<parallel>], iteration_bounds = array<i64: 1>, scalar_prefetch = 0 : i64, scratch_operands = 0 : i64, tpu.core_type = #tpu.core_type<tc>, window_params = [{transform_indices = @transform_0, window_bounds = array<i64: 16, 640>}, {pipeline_mode = #tpu.pipeline_mode<synchronous>, transform_indices = @transform_1, window_bounds = array<i64: 64, 16>}, {pipeline_mode = #tpu.pipeline_mode<synchronous>, transform_indices = @transform_2, window_bounds = array<i64: 16, 64>}, {pipeline_mode = #tpu.pipeline_mode<synchronous>, transform_indices = @transform_3, window_bounds = array<i64: 64, 1>}, {pipeline_mode = #tpu.pipeline_mode<synchronous>, transform_indices = @transform_4, window_bounds = array<i64: 64, 1>}, {pipeline_mode = #tpu.pipeline_mode<synchronous>, transform_indices = @transform_5, window_bounds = array<i64: 64, 1>}, {pipeline_mode = #tpu.pipeline_mode<synchronous>, transform_indices = @transform_6, window_bounds = array<i64: 8, 1>}, {pipeline_mode = #tpu.pipeline_mode<synchronous>, transform_indices = @transform_7, window_bounds = array<i64: 8, 64>}, {transform_indices = @transform_8, window_bounds = array<i64: 16, 640>}, {transform_indices = @transform_9, window_bounds = array<i64: 1, 640>}, {transform_indices = @transform_10, window_bounds = array<i64: 3, 640>}]} {
    %c0 = arith.constant 0 : index
    %c0_0 = arith.constant 0 : index
    %0 = vector.load %arg1[%c0, %c0_0] : memref<16x640xf32, #tpu.memory_space<vmem>>, vector<16x640xf32>
    %c0_1 = arith.constant 0 : index
    %c0_2 = arith.constant 0 : index
    %1 = vector.load %arg2[%c0_1, %c0_2] : memref<64x16xf32, #tpu.memory_space<vmem>>, vector<64x16xf32>
    %c0_3 = arith.constant 0 : index
    %c0_4 = arith.constant 0 : index
    %2 = vector.load %arg3[%c0_3, %c0_4] : memref<16x64xf32, #tpu.memory_space<vmem>>, vector<16x64xf32>
    %c0_5 = arith.constant 0 : index
    %c0_6 = arith.constant 0 : index
    %3 = vector.load %arg4[%c0_5, %c0_6] : memref<64x1xf32, #tpu.memory_space<vmem>>, vector<64x1xf32>
    %c0_7 = arith.constant 0 : index
    %c0_8 = arith.constant 0 : index
    %4 = vector.load %arg5[%c0_7, %c0_8] : memref<64x1xf32, #tpu.memory_space<vmem>>, vector<64x1xf32>
    %c0_9 = arith.constant 0 : index
    %c0_10 = arith.constant 0 : index
    %5 = vector.load %arg6[%c0_9, %c0_10] : memref<64x1xi32, #tpu.memory_space<vmem>>, vector<64x1xi32>
    %c0_11 = arith.constant 0 : index
    %c0_12 = arith.constant 0 : index
    %6 = vector.load %arg7[%c0_11, %c0_12] : memref<8x1xf32, #tpu.memory_space<vmem>>, vector<8x1xf32>
    %c0_13 = arith.constant 0 : index
    %c0_14 = arith.constant 0 : index
    %7 = vector.load %arg8[%c0_13, %c0_14] : memref<8x64xf32, #tpu.memory_space<vmem>>, vector<8x64xf32>
    %cst = arith.constant dense<0.000000e+00> : vector<64x640xf32>
    %8 = tpu.matmul %1, %0, %cst {dimension_numbers = #tpu.dot_dimension_numbers<[1], [0], [0], [1], [0, 0, 1, 1], [], []>} : vector<64x16xf32>, vector<16x640xf32>, vector<64x640xf32> -> vector<64x640xf32>
    %9 = arith.mulf %0, %0 : vector<16x640xf32>
    %cst_15 = arith.constant dense<0.000000e+00> : vector<640xf32>
    %10 = vector.multi_reduction <add>, %9, %cst_15 [0] : vector<16x640xf32> to vector<640xf32>
    %11 = vector.shape_cast %10 : vector<640xf32> to vector<1x640xf32>
    %cst_16 = arith.constant 2.000000e+00 : f32
    %12 = vector.broadcast %cst_16 : f32 to vector<64x640xf32>
    %13 = arith.mulf %12, %8 : vector<64x640xf32>
    %14 = vector.broadcast %3 : vector<64x1xf32> to vector<64x640xf32>
    %15 = arith.subf %14, %13 : vector<64x640xf32>
    %16 = vector.broadcast %11 : vector<1x640xf32> to vector<64x640xf32>
    %17 = arith.addf %15, %16 : vector<64x640xf32>
    %cst_17 = arith.constant 9.99999996E-13 : f32
    %18 = vector.broadcast %cst_17 : f32 to vector<64x640xf32>
    %19 = arith.maximumf %17, %18 : vector<64x640xf32>
    %20 = math.rsqrt %19 : vector<64x640xf32>
    %21 = arith.mulf %19, %20 : vector<64x640xf32>
    %cst_18 = arith.constant dense<0x7F800000> : vector<640xf32>
    %22 = vector.multi_reduction <minimumf>, %19, %cst_18 [0] : vector<64x640xf32> to vector<640xf32>
    %23 = vector.shape_cast %22 : vector<640xf32> to vector<1x640xf32>
    %24 = vector.broadcast %23 : vector<1x640xf32> to vector<64x640xf32>
    %25 = arith.cmpf ole, %19, %24 : vector<64x640xf32>
    %cst_19 = arith.constant 6.400000e+01 : f32
    %26 = vector.shape_cast %4 : vector<64x1xf32> to vector<64x1xf32>
    %27 = vector.broadcast %26 : vector<64x1xf32> to vector<64x640xf32>
    %28 = vector.broadcast %cst_19 : f32 to vector<64x640xf32>
    %29 = arith.select %25, %27, %28 : vector<64x640xi1>, vector<64x640xf32>
    %cst_20 = arith.constant dense<0x7F800000> : vector<640xf32>
    %30 = vector.multi_reduction <minimumf>, %29, %cst_20 [0] : vector<64x640xf32> to vector<640xf32>
    %31 = vector.shape_cast %30 : vector<640xf32> to vector<1x640xf32>
    %32 = arith.fptosi %31 : vector<1x640xf32> to vector<1x640xi32>
    %cst_21 = arith.constant dense<0.000000e+00> : vector<8x640xf32>
    %33 = tpu.matmul %7, %21, %cst_21 {dimension_numbers = #tpu.dot_dimension_numbers<[1], [0], [0], [1], [0, 0, 1, 1], [], []>} : vector<8x64xf32>, vector<64x640xf32>, vector<8x640xf32> -> vector<8x640xf32>
    %cst_22 = arith.constant dense<0x7F800000> : vector<640xf32>
    %34 = vector.multi_reduction <minimumf>, %33, %cst_22 [0] : vector<8x640xf32> to vector<640xf32>
    %35 = vector.shape_cast %34 : vector<640xf32> to vector<1x640xf32>
    %36 = vector.broadcast %35 : vector<1x640xf32> to vector<8x640xf32>
    %37 = arith.cmpf ole, %33, %36 : vector<8x640xf32>
    %cst_23 = arith.constant 8.000000e+00 : f32
    %38 = vector.shape_cast %6 : vector<8x1xf32> to vector<8x1xf32>
    %39 = vector.broadcast %38 : vector<8x1xf32> to vector<8x640xf32>
    %40 = vector.broadcast %cst_23 : f32 to vector<8x640xf32>
    %41 = arith.select %37, %39, %40 : vector<8x640xi1>, vector<8x640xf32>
    %cst_24 = arith.constant dense<0x7F800000> : vector<640xf32>
    %42 = vector.multi_reduction <minimumf>, %41, %cst_24 [0] : vector<8x640xf32> to vector<640xf32>
    %43 = vector.shape_cast %42 : vector<640xf32> to vector<1x640xf32>
    %44 = arith.fptosi %43 : vector<1x640xf32> to vector<1x640xi32>
    %45 = vector.broadcast %5 : vector<64x1xi32> to vector<64x640xi32>
    %46 = vector.broadcast %44 : vector<1x640xi32> to vector<64x640xi32>
    %47 = arith.cmpi eq, %45, %46 : vector<64x640xi32>
    %cst_25 = arith.constant 0.000000e+00 : f32
    %48 = vector.broadcast %cst_25 : f32 to vector<64x640xf32>
    %49 = arith.select %47, %20, %48 : vector<64x640xi1>, vector<64x640xf32>
    %cst_26 = arith.constant dense<0xFF800000> : vector<640xf32>
    %50 = vector.multi_reduction <maximumf>, %49, %cst_26 [0] : vector<64x640xf32> to vector<640xf32>
    %51 = vector.shape_cast %50 : vector<640xf32> to vector<1x640xf32>
    %52 = vector.broadcast %51 : vector<1x640xf32> to vector<64x640xf32>
    %53 = arith.cmpf oge, %49, %52 : vector<64x640xf32>
    %cst_27 = arith.constant 6.400000e+01 : f32
    %54 = vector.shape_cast %4 : vector<64x1xf32> to vector<64x1xf32>
    %55 = vector.broadcast %54 : vector<64x1xf32> to vector<64x640xf32>
    %56 = vector.broadcast %cst_27 : f32 to vector<64x640xf32>
    %57 = arith.select %53, %55, %56 : vector<64x640xi1>, vector<64x640xf32>
    %cst_28 = arith.constant dense<0x7F800000> : vector<640xf32>
    %58 = vector.multi_reduction <minimumf>, %57, %cst_28 [0] : vector<64x640xf32> to vector<640xf32>
    %59 = vector.shape_cast %58 : vector<640xf32> to vector<1x640xf32>
    %60 = arith.fptosi %59 : vector<1x640xf32> to vector<1x640xi32>
    %cst_29 = arith.constant dense<0.000000e+00> : vector<640xf32>
    %61 = vector.multi_reduction <add>, %49, %cst_29 [0] : vector<64x640xf32> to vector<640xf32>
    %62 = vector.shape_cast %61 : vector<640xf32> to vector<1x640xf32>
    %cst_30 = arith.constant 1.000000e+00 : f32
    %63 = vector.broadcast %cst_30 : f32 to vector<1x640xf32>
    %64 = arith.divf %63, %62 : vector<1x640xf32>
    %cst_31 = arith.constant dense<0.000000e+00> : vector<16x640xf32>
    %65 = tpu.matmul %2, %49, %cst_31 {dimension_numbers = #tpu.dot_dimension_numbers<[1], [0], [0], [1], [0, 0, 1, 1], [], []>} : vector<16x64xf32>, vector<64x640xf32>, vector<16x640xf32> -> vector<16x640xf32>
    %66 = vector.broadcast %64 : vector<1x640xf32> to vector<16x640xf32>
    %67 = arith.mulf %65, %66 : vector<16x640xf32>
    %c0_32 = arith.constant 0 : index
    %c0_33 = arith.constant 0 : index
    %68 = vector.load %arg9[%c0_32, %c0_33] : memref<16x640xf32, #tpu.memory_space<vmem>>, vector<16x640xf32>
    tpu.vector_store %arg9[%c0_32, %c0_33], %67 {strides = array<i32>} : memref<16x640xf32, #tpu.memory_space<vmem>>, vector<16x640xf32>,
    %69 = arith.mulf %49, %8 : vector<64x640xf32>
    %cst_34 = arith.constant dense<0.000000e+00> : vector<640xf32>
    %70 = vector.multi_reduction <add>, %69, %cst_34 [0] : vector<64x640xf32> to vector<640xf32>
    %71 = vector.shape_cast %70 : vector<640xf32> to vector<1x640xf32>
    %72 = arith.mulf %71, %64 : vector<1x640xf32>
    %73 = arith.mulf %67, %67 : vector<16x640xf32>
    %cst_35 = arith.constant dense<0.000000e+00> : vector<640xf32>
    %74 = vector.multi_reduction <add>, %73, %cst_35 [0] : vector<16x640xf32> to vector<640xf32>
    %75 = vector.shape_cast %74 : vector<640xf32> to vector<1x640xf32>
    %cst_36 = arith.constant 2.000000e+00 : f32
    %76 = vector.broadcast %cst_36 : f32 to vector<1x640xf32>
    %77 = arith.mulf %76, %72 : vector<1x640xf32>
    %78 = arith.subf %11, %77 : vector<1x640xf32>
    %79 = arith.addf %78, %75 : vector<1x640xf32>
    %cst_37 = arith.constant 0.000000e+00 : f32
    %80 = vector.broadcast %cst_37 : f32 to vector<1x640xf32>
    %81 = arith.maximumf %79, %80 : vector<1x640xf32>
    %c0_38 = arith.constant 0 : index
    %c0_39 = arith.constant 0 : index
    %82 = vector.load %arg10[%c0_38, %c0_39] : memref<1x640xf32, #tpu.memory_space<vmem>>, vector<1x640xf32>
    tpu.vector_store %arg10[%c0_38, %c0_39], %81 {strides = array<i32>} : memref<1x640xf32, #tpu.memory_space<vmem>>, vector<1x640xf32>,
    %83 = tpu.concatenate %32, %44, %60 in 0 : vector<1x640xi32>, vector<1x640xi32>, vector<1x640xi32> -> vector<3x640xi32>
    %c0_40 = arith.constant 0 : index
    %c0_41 = arith.constant 0 : index
    %84 = vector.load %arg11[%c0_40, %c0_41] : memref<3x640xi32, #tpu.memory_space<vmem>>, vector<3x640xi32>
    tpu.vector_store %arg11[%c0_40, %c0_41], %83 {strides = array<i32>} : memref<3x640xi32, #tpu.memory_space<vmem>>, vector<3x640xi32>,
    return
  }
  func.func @transform_0(%arg0: i32) -> (i32, i32) {
    %c0_i32 = arith.constant 0 : i32
    %c0_i32_0 = arith.constant 0 : i32
    return %c0_i32, %arg0 : i32, i32
  }
  func.func @transform_1(%arg0: i32) -> (i32, i32) {
    %c0_i32 = arith.constant 0 : i32
    %c0_i32_0 = arith.constant 0 : i32
    %c0_i32_1 = arith.constant 0 : i32
    return %c0_i32, %c0_i32_0 : i32, i32
  }
  func.func @transform_2(%arg0: i32) -> (i32, i32) {
    %c0_i32 = arith.constant 0 : i32
    %c0_i32_0 = arith.constant 0 : i32
    %c0_i32_1 = arith.constant 0 : i32
    return %c0_i32, %c0_i32_0 : i32, i32
  }
  func.func @transform_3(%arg0: i32) -> (i32, i32) {
    %c0_i32 = arith.constant 0 : i32
    %c0_i32_0 = arith.constant 0 : i32
    %c0_i32_1 = arith.constant 0 : i32
    return %c0_i32, %c0_i32_0 : i32, i32
  }
  func.func @transform_4(%arg0: i32) -> (i32, i32) {
    %c0_i32 = arith.constant 0 : i32
    %c0_i32_0 = arith.constant 0 : i32
    %c0_i32_1 = arith.constant 0 : i32
    return %c0_i32, %c0_i32_0 : i32, i32
  }
  func.func @transform_5(%arg0: i32) -> (i32, i32) {
    %c0_i32 = arith.constant 0 : i32
    %c0_i32_0 = arith.constant 0 : i32
    %c0_i32_1 = arith.constant 0 : i32
    return %c0_i32, %c0_i32_0 : i32, i32
  }
  func.func @transform_6(%arg0: i32) -> (i32, i32) {
    %c0_i32 = arith.constant 0 : i32
    %c0_i32_0 = arith.constant 0 : i32
    %c0_i32_1 = arith.constant 0 : i32
    return %c0_i32, %c0_i32_0 : i32, i32
  }
  func.func @transform_7(%arg0: i32) -> (i32, i32) {
    %c0_i32 = arith.constant 0 : i32
    %c0_i32_0 = arith.constant 0 : i32
    %c0_i32_1 = arith.constant 0 : i32
    return %c0_i32, %c0_i32_0 : i32, i32
  }
  func.func @transform_8(%arg0: i32) -> (i32, i32) {
    %c0_i32 = arith.constant 0 : i32
    %c0_i32_0 = arith.constant 0 : i32
    return %c0_i32, %arg0 : i32, i32
  }
  func.func @transform_9(%arg0: i32) -> (i32, i32) {
    %c0_i32 = arith.constant 0 : i32
    %c0_i32_0 = arith.constant 0 : i32
    return %c0_i32, %arg0 : i32, i32
  }
  func.func @transform_10(%arg0: i32) -> (i32, i32) {
    %c0_i32 = arith.constant 0 : i32
    %c0_i32_0 = arith.constant 0 : i32
    return %c0_i32, %arg0 : i32, i32
  }
}

</mosaic_0001>

<bundles_post_ra>
// kernel: squeeze.0
= control target key start
LH: loop header
LB: loop body
LE: loop exit
PB: predicated region body
PF: predicated region fallthrough
CT: control target
= control target key end

     0   :  { %vm4_vm0 = vcmask 359424   ;;  %s12_s8 = smov 3  ;;  %s25_s13 = smov 3  ;;  %vm21_vm1 = vcmask 1048224   ;;  %vm29_vm2 = vcmask 687104   ;;  %s128_s0 = inlined_call_operand.vmem [shape: f32[600], index: 0, kind: input, shape index: {}]   ;;  %s129_s1 = inlined_call_operand.vmem [shape: f32[2,300,1], index: 1, kind: output, shape index: {}]  }
   0x1   :  { %v72_v0 = vld [vmem:[%s128_s0 + $0x4] sm:$0x1]   ;;  %v71_v2 = vld [vmem:[%s128_s0 + $0x2] sm:$0x1]   ;;  %v7_v4 = vld [vmem:[%s128_s0] sm:$0x3]  }
   0x2   :  { %v73_v1 = vld [vmem:[%s128_s0 + $0x4] ss:$-1 sm:%s12_s8]   ;;  %6 = vst.msk [vmem:[#allocation0 + $0x10] sm:$0x1] %vm4_vm0, %v71_v2   ;;  %s81_s16 = smov 84  }
   0x3   :  { %v15_v3 = vsel %vm4_vm0, %v73_v1, %v72_v0  ;;  %8 = vst [vmem:[#allocation0] ss:$8 sm:$0x3] %v7_v4   ;;  %v74_v5 = vld [vmem:[%s128_s0 + $0x3] ss:$-1 sm:%s25_s13]  }
   0x4   :  { %16 = vrot.lane.b32.xlu0 %v15_v3, %s81_s16 }
   0x8   :  { %27 = vrot.lane.b32.xlu0 %v74_v5, %s81_s16 }
   0x9   :  { %v44_v6 = vld [vmem:[#allocation0 + $0x10] sm:$0x1] }
   0xa   :  { %76 = vst [vmem:[%s129_s1 + $0x2] sm:$0x1] %v44_v6  ;;  %v35_v7 = vld [vmem:[#allocation0] sm:$0x1]  ;;  %v39_v8 = vld [vmem:[#allocation0 + $0x8] sm:$0x1] }
   0xb   :  { %37 = vst [vmem:[%s129_s1] sm:$0x1] %v35_v7  ;;  %75 = vst [vmem:[%s129_s1 + $0x1] sm:$0x1] %v39_v8 }
  0x76   :  { %v17_v9 = vpop.permute.xlu0 %16  }
  0x77   :  { %20 = vst.msk [vmem:[#allocation0 + $0x28] sm:$0x1] %vm4_vm0, %v17_v9  }
  0x78   :  { %23 = vst.msk [vmem:[#allocation0 + $0x20] ss:$-8 sm:$0x3] %vm21_vm1, %v17_v9  }
  0x7a   :  { %v28_v10 = vpop.permute.xlu0 %27  }
  0x7b   :  { %31 = vst.msk [vmem:[#allocation0 + $0x20] ss:$-8 sm:$0x3] %vm29_vm2, %v28_v10  }
  0x7e   :  { %v62_v11 = vld [vmem:[#allocation0 + $0x28] sm:$0x1] }
  0x7f   :  { %79 = vst [vmem:[%s129_s1 + $0x5] sm:$0x1] %v62_v11 }
  0x82   :  { %v50_v12 = vld [vmem:[#allocation0 + $0x18] sm:$0x1]  ;;  %v56_v13 = vld [vmem:[#allocation0 + $0x20] sm:$0x1] }
  0x83   :  { %77 = vst [vmem:[%s129_s1 + $0x3] sm:$0x1] %v50_v12  ;;  %78 = vst [vmem:[%s129_s1 + $0x4] sm:$0x1] %v56_v13 }

// kernel: squeeze.2
= control target key start
LH: loop header
LB: loop body
LE: loop exit
PB: predicated region body
PF: predicated region fallthrough
CT: control target
= control target key end

     0   :  { %vm5_vm0 = vcmask 359424   ;;  %s13_s8 = smov 3  ;;  %s26_s13 = smov 3  ;;  %s154_s0 = inlined_call_operand.vmem [shape: s32[600], index: 0, kind: input, shape index: {}]   ;;  %s155_s1 = inlined_call_operand.hbm [shape: s32[2,300,1], index: 1, kind: output, shape index: {}]  }
   0x1   :  { %v83_v0 = vld [vmem:[%s154_s0 + $0x4] sm:$0x1]   ;;  %v82_v2 = vld [vmem:[%s154_s0 + $0x2] sm:$0x1]  }
   0x2   :  { %v84_v1 = vld [vmem:[%s154_s0 + $0x4] ss:$-1 sm:%s13_s8]   ;;  %7 = vst.msk [vmem:[#allocation2 + $0x10] sm:$0x1] %vm5_vm0, %v82_v2  }
   0x3   :  { %v16_v3 = vsel %vm5_vm0, %v84_v1, %v83_v0 }
   0x4   :  { %2 = vsyncpa [#allocation1], 0  ;;  %v8_v4 = vld [vmem:[%s154_s0] sm:$0x3]   ;;  %s112_s16 = smov 84   ;;  %vm22_vm1 = vcmask 1048224  }
   0x5   :  { %17 = vrot.lane.b32.xlu0 %v16_v3, %s112_s16  ;;  %9 = vst [vmem:[#allocation2] ss:$8 sm:$0x3] %v8_v4   ;;  %v85_v5 = vld [vmem:[%s154_s0 + $0x3] ss:$-1 sm:%s26_s13]   ;;  %vm30_vm2 = vcmask 687104  }
   0x6   :  { %s113_s0 = smov [#allocation0]  }
   0x7   :  { %s72_s19 = sshll.u32 %s113_s0, 4  ;;  %s73_s19 = int_to_ptr.vmem [resolvable:$true] %s72_s19 }
   0x8   :  { %s88_s20 = scalar_lea.vmem %s73_s19, 96  ;;  %p93_p1 = scmp.lt.s32.totalorder %s73_s19, %s73_s19 }
   0x9   :  { %28 = vrot.lane.b32.xlu0 %v85_v5, %s112_s16  ;;  %v45_v6 = vld [vmem:[#allocation2 + $0x10] sm:$0x1]  ;;  %p89_p0 = scmp.ne.s32.totalorder %s73_s19, %s88_s20  ;;  %p94_p2 = scmp.lt.s32.totalorder %s88_s20, %s88_s20 }
   0xa   :  { %49 = vst [vmem:[#allocation0 + $0x2] sm:$0x1] %v45_v6 }
   0xb   :  { %p95_p3 = por %p94_p2, %p93_p1 }
   0xc   :  { %v36_v7 = vld [vmem:[#allocation2] sm:$0x1]  ;;  %v40_v8 = vld [vmem:[#allocation2 + $0x8] sm:$0x1] }
   0xd   :  { %38 = vst [vmem:[#allocation0] sm:$0x1] %v36_v7  ;;  %43 = vst [vmem:[#allocation0 + $0x1] sm:$0x1] %v40_v8  ;;  %p96_p4 = pnand %p95_p3, %p89_p0 }
  0x77   :  { %v18_v9 = vpop.permute.xlu0 %17  }
  0x78   :  { %21 = vst.msk [vmem:[#allocation2 + $0x28] sm:$0x1] %vm5_vm0, %v18_v9  }
  0x79   :  { %24 = vst.msk [vmem:[#allocation2 + $0x20] ss:$-8 sm:$0x3] %vm22_vm1, %v18_v9  }
  0x7b   :  { %v29_v10 = vpop.permute.xlu0 %28  }
  0x7c   :  { %32 = vst.msk [vmem:[#allocation2 + $0x20] ss:$-8 sm:$0x3] %vm30_vm2, %v29_v10  }
  0x7f   :  { %v63_v11 = vld [vmem:[#allocation2 + $0x28] sm:$0x1] }
  0x80   :  { %67 = vst [vmem:[#allocation0 + $0x5] sm:$0x1] %v63_v11 }
  0x83   :  { %v51_v12 = vld [vmem:[#allocation2 + $0x18] sm:$0x1]  ;;  %v57_v13 = vld [vmem:[#allocation2 + $0x20] sm:$0x1] }
  0x84   :  { %55 = vst [vmem:[#allocation0 + $0x3] sm:$0x1] %v51_v12  ;;  %61 = vst [vmem:[#allocation0 + $0x4] sm:$0x1] %v57_v13 }
  0x85   :  { %99 = shalt.err (!%p96_p4)
}
  0x86   :  { %s100_s23 = scalar_lea.hbm %s155_s1, 96 }
  0x87   :  { %p101_p5 = scmp.ne.s32.totalorder %s155_s1, %s100_s23  ;;  %p104_p6 = scmp.lt.u32.totalorder %s100_s23, %s155_s1 }
  0x89   :  { %p106_p7 = pnand %p104_p6, %p101_p5 }
  0x8b   :  { %109 = shalt.err (!%p106_p7)
}
  0x8c   :  { %75 = dma.vmem_to_hbm [thread:$0]  %s73_s19, 96, %s155_s1, [#allocation1]  }
  0x8d   :  { %110 = dma.done.wait [#allocation1], 96  }
  0x8e   :  { %111 = vsyncadd [#allocation1], 4294967200 }
  0x8f   :  { %77 = vsyncpa [#allocation1], 1 }

// kernel: vector_quant_group_forward.1
= control target key start
LH: loop header
LB: loop body
LE: loop exit
PB: predicated region body
PF: predicated region fallthrough
CT: control target
= control target key end

     0   :  { %v4582_v3 = vmov 0.0   ;;  %v2627_v9 = vmov 0   ;;  %vm78_vm0 = vcmask 130048   ;;  %s4571_s0 = inlined_call_operand.vmem [shape: f32[16,640], index: 0, kind: input, shape index: {}]   ;;  %s4572_s1 = inlined_call_operand.vmem [shape: f32[64,16], index: 1, kind: input, shape index: {}]   ;;  %s4573_s3 = inlined_call_operand.vmem [shape: f32[64,1], index: 3, kind: input, shape index: {}]   ;;  %s4574_s6 = inlined_call_operand.vmem [shape: f32[8,1], index: 6, kind: input, shape index: {}]   ;;  %s4575_s5 = inlined_call_operand.vmem [shape: s32[64,1], index: 5, kind: input, shape index: {}]   ;;  %s4576_s4 = inlined_call_operand.vmem [shape: f32[64,1], index: 4, kind: input, shape index: {}]   ;;  %s4577_s7 = inlined_call_operand.vmem [shape: f32[8,64], index: 7, kind: input, shape index: {}]   ;;  %s4578_s2 = inlined_call_operand.vmem [shape: f32[16,64], index: 2, kind: input, shape index: {}]   ;;  %s4579_s10 = inlined_call_operand.vmem [shape: s32[3,640], index: 10, kind: output, shape index: {2}]   ;;  %s4580_s8 = inlined_call_operand.vmem [shape: f32[16,640], index: 8, kind: output, shape index: {0}]   ;;  %s4581_s9 = inlined_call_operand.vmem [shape: f32[1,640], index: 9, kind: output, shape index: {1}]  }
   0x1   :  { %v33_v0 = vld [vmem:[%s4571_s0 + $0x8] sm:$0xff]  ;;  %v38_v1 = vld [vmem:[%s4571_s0 + $0x30] sm:$0xff]  ;;  %v32_v2 = vld [vmem:[%s4571_s0] sm:$0xff]  ;;  %167 = vmatprep.mubr.f32.mxu0 %v4582_v3  ;;  %209 = vmatprep.mubr.f32.mxu1 %v4582_v3 }
   0x2   :  { %v2369_v4 = vpack.c.bf16 %v38_v1, %v33_v0  ;;  %v435_v5 = vmul.f32 %v33_v0, %v33_v0  ;;  %v440_v6 = vmul.f32 %v38_v1, %v38_v1  ;;  %v37_v7 = vld [vmem:[%s4571_s0 + $0x28] sm:$0xff]  ;;  %v434_v8 = vmul.f32 %v32_v2, %v32_v2  ;;  %2534 = vset.pattern.permute.xlu0 %v2627_v9  ;;  %v35_v12 = vld [vmem:[%s4571_s0 + $0x18] sm:$0xff]  ;;  %v40_v13 = vld [vmem:[%s4571_s0 + $0x40] sm:$0xff] }
   0x3   :  { %v2371_v10 = vpack.c.bf16 %v37_v7, %v32_v2  ;;  %v439_v11 = vmul.f32 %v37_v7, %v37_v7  ;;  %v34_v14 = vld [vmem:[%s4571_s0 + $0x10] sm:$0xff]  ;;  %2535 = vset.pattern.permute.xlu1 %v2627_v9  ;;  %v2714_v16 = vld [vmem:[%s4572_s1] sm:$0xff]  ;;  %v2373_v17 = vpack.c.bf16 %v40_v13, %v35_v12  ;;  %v437_v18 = vmul.f32 %v35_v12, %v35_v12  ;;  %v39_v19 = vld [vmem:[%s4571_s0 + $0x38] sm:$0xff] }
   0x4   :  { %2370 = vmatprep.subr.bf16.mxu0 %v2369_v4  ;;  %v2709_v15 = vadd.f32 %v440_v6, %v435_v5  ;;  %2497 = vmatprep.subr.bf16.mxu1 %v2369_v4  ;;  %v2724_v21 = vld [vmem:[%s4572_s1 + $0x38] sm:$0xff]  ;;  %v442_v22 = vmul.f32 %v40_v13, %v40_v13  ;;  %v2375_v23 = vpack.c.bf16 %v39_v19, %v34_v14  ;;  %v36_v24 = vld [vmem:[%s4571_s0 + $0x20] sm:$0xff]  ;;  %v41_v25 = vld [vmem:[%s4571_s0 + $0x48] sm:$0xff] }
   0x5   :  { %2372 = vmatpush1.bf16.msra.mxu0 %v2371_v10  ;;  %v2719_v20 = vadd.f32 %v439_v11, %v434_v8  ;;  %2498 = vmatpush1.bf16.msra.mxu1 %v2371_v10  ;;  %v436_v26 = vmul.f32 %v34_v14, %v34_v14  ;;  %v441_v27 = vmul.f32 %v39_v19, %v39_v19  ;;  %v52_v33 = vld [vmem:[%s4573_s3] sm:$0xff]  ;;  %v2747_v34 = vld [vmem:[%s4572_s1 + $0x8] sm:$0xff]  ;;  %v54_v36 = vld [vmem:[%s4573_s3 + $0x10] sm:$0xff] }
   0x6   :  { %2374 = vmatprep.subr.bf16.mxu1 %v2373_v17  ;;  %v2377_v28 = vpack.c.bf16 %v41_v25, %v36_v24  ;;  %v2732_v29 = vadd.f32 %v442_v22, %v437_v18  ;;  %v438_v30 = vmul.f32 %v36_v24, %v36_v24  ;;  %v443_v31 = vmul.f32 %v41_v25, %v41_v25  ;;  %v53_v37 = vld [vmem:[%s4573_s3 + $0x8] sm:$0xff]  ;;  %v44_v38 = vld [vmem:[%s4572_s1 + $0x10] sm:$0xff]  ;;  %v55_v39 = vld [vmem:[%s4573_s3 + $0x18] sm:$0xff] }
   0x7   :  { %v2738_v32 = vadd.f32 %v441_v27, %v436_v26  ;;  %521 = vperm.xlu0 %2534, %v52_v33   ;;  %531 = vperm.xlu1 %2535, %v54_v36   ;;  %v56_v40 = vld [vmem:[%s4573_s3 + $0x20] sm:$0xff]  ;;  %v45_v41 = vld [vmem:[%s4572_s1 + $0x18] sm:$0xff]  ;;  %v57_v42 = vld [vmem:[%s4573_s3 + $0x28] sm:$0xff]  ;;  %v445_v1 = vrot.slane %v2719_v20, 4  ;;  %v452_v2 = vrot.slane %v2709_v15, 4 }
   0x8   :  { %2213 = vmatmul.mubr.msk.f32.vlgmr.msra.gmra.mrb[0].mxu0 %vm78_vm0, %v2714_v16  ;;  %2220 = vmatmul.mubr.msk.f32.vlgmr.msra.gmra.mrb[0].mxu1 %vm78_vm0, %v2724_v21  ;;  %v2749_v35 = vadd.f32 %v443_v31, %v438_v30  ;;  %v58_v43 = vld [vmem:[%s4573_s3 + $0x30] sm:$0xff]  ;;  %v46_v44 = vld [vmem:[%s4572_s1 + $0x20] sm:$0xff]  ;;  %v59_v45 = vld [vmem:[%s4573_s3 + $0x38] sm:$0xff]  ;;  %v466_v9 = vrot.slane %v2732_v29, 4 }
   0x9   :  { %2376 = vmatpush1.bf16.msra.mxu1 %v2375_v23  ;;  %173 = vmatprep.mubr.f32.mxu0 %v4582_v3  ;;  %v76_v46 = vld [vmem:[%s4574_s6] sm:$0xff]  ;;  %v47_v47 = vld [vmem:[%s4572_s1 + $0x28] sm:$0xff]  ;;  %v48_v50 = vld [vmem:[%s4572_s1 + $0x30] sm:$0xff]  ;;  %v446_v5 = vadd.f32 %v445_v1, %v2719_v20  ;;  %v459_v6 = vrot.slane %v2738_v32, 4  ;;  %v453_v7 = vadd.f32 %v452_v2, %v2709_v15 }
   0xa   :  { %280 = vmatprep.mubr.f32.mxu1 %v4582_v3  ;;  %2378 = vmatprep.subr.bf16.mxu0 %v2377_v28  ;;  %v68_v48 = vld [vmem:[%s4575_s5] sm:$0xff]  ;;  %v69_v49 = vld [vmem:[%s4575_s5 + $0x8] sm:$0xff]  ;;  %v70_v51 = vld [vmem:[%s4575_s5 + $0x10] sm:$0xff]  ;;  %v467_v14 = vadd.f32 %v466_v9, %v2732_v29  ;;  %v473_v23 = vrot.slane %v2749_v35, 4 }
   0xb   :  { %2380 = vmatpush3.bf16.msra.mxu0 %v2377_v28  ;;  %526 = vperm.xlu0 %2534, %v53_v37   ;;  %v71_v52 = vld [vmem:[%s4575_s5 + $0x18] sm:$0xff]  ;;  %v72_v53 = vld [vmem:[%s4575_s5 + $0x20] sm:$0xff]  ;;  %v73_v54 = vld [vmem:[%s4575_s5 + $0x28] sm:$0xff]  ;;  %v447_v10 = vrot.slane %v446_v5, 2  ;;  %v460_v11 = vadd.f32 %v459_v6, %v2738_v32  ;;  %v454_v13 = vrot.slane %v453_v7, 2 }
   0xc   :  { %2214 = vmatmul.mubr.msk.f32.gmra.mrb[2].mxu0 %vm78_vm0, %v2747_v34  ;;  %2221 = vmatmul.mubr.msk.f32.vlgmr.msra.gmra.mrb[2].mxu1 %vm78_vm0, %v2714_v16  ;;  %v74_v55 = vld [vmem:[%s4575_s5 + $0x30] sm:$0xff]  ;;  %v75_v56 = vld [vmem:[%s4575_s5 + $0x38] sm:$0xff]  ;;  %v60_v57 = vld [vmem:[%s4576_s4] sm:$0xff]  ;;  %v468_v20 = vrot.slane %v467_v14, 2  ;;  %v474_v36 = vadd.f32 %v473_v23, %v2749_v35 }
   0xd   :  { %179 = vmatprep.mubr.f32.mxu0 %v4582_v3  ;;  %286 = vmatprep.mubr.f32.mxu1 %v4582_v3  ;;  %v61_v58 = vld [vmem:[%s4576_s4 + $0x8] sm:$0xff]  ;;  %v62_v59 = vld [vmem:[%s4576_s4 + $0x10] sm:$0xff]  ;;  %v63_v60 = vld [vmem:[%s4576_s4 + $0x18] sm:$0xff]  ;;  %v461_v18 = vrot.slane %v460_v11, 2  ;;  %v455_v19 = vadd.f32 %v454_v13, %v453_v7 }
   0xe   :  { %536 = vperm.xlu1 %2535, %v55_v39   ;;  %v64_v61 = vld [vmem:[%s4576_s4 + $0x20] sm:$0xff]  ;;  %v65_v62 = vld [vmem:[%s4576_s4 + $0x28] sm:$0xff]  ;;  %v66_v63 = vld [vmem:[%s4576_s4 + $0x30] sm:$0xff]  ;;  %v469_v26 = vadd.f32 %v468_v20, %v467_v14 }
   0xf   :  { %541 = vperm.xlu0 %2534, %v56_v40   ;;  %v67_v0 = vld [vmem:[%s4576_s4 + $0x38] sm:$0xff]  ;;  %v462_v22 = vadd.f32 %v461_v18, %v460_v11  ;;  %v456_v24 = vrot.slane %v455_v19, 1 }
  0x10   :  { %2215 = vmatmul.mubr.msk.f32.gmra.mrb[4].mxu0 %vm78_vm0, %v44_v38  ;;  %2222 = vmatmul.mubr.msk.f32.gmra.mrb[4].mxu1 %vm78_vm0, %v2747_v34 }
  0x11   :  { %185 = vmatprep.mubr.f32.mxu0 %v4582_v3  ;;  %292 = vmatprep.mubr.f32.mxu1 %v4582_v3  ;;  %v2920_v40 = vadd.f32 %v456_v24, %v455_v19 }
  0x12   :  { %546 = vperm.xlu1 %2535, %v57_v42  }
  0x13   :  { %551 = vperm.xlu0 %2534, %v58_v43   ;;  %4745 = vst [vmem:[#allocation8_spill] sm:$0xff] %v2920_v40  ;;  %v470_v43 = vrot.slane %v469_v26, 1 }
  0x14   :  { %2216 = vmatmul.mubr.msk.f32.gmra.mrb[6].mxu0 %vm78_vm0, %v45_v41  ;;  %2223 = vmatmul.mubr.msk.f32.gmra.mrb[6].mxu1 %vm78_vm0, %v44_v38 }
  0x15   :  { %191 = vmatprep.mubr.f32.mxu0 %v4582_v3  ;;  %298 = vmatprep.mubr.f32.mxu1 %v4582_v3 }
  0x16   :  { %556 = vperm.xlu1 %2535, %v59_v45  }
  0x17   :  { %1267 = vperm.xlu0 %2534, %v76_v46  }
  0x18   :  { %2217 = vmatmul.mubr.msk.f32.gmra.mrb[8].mxu0 %vm78_vm0, %v46_v44  ;;  %2224 = vmatmul.mubr.msk.f32.gmra.mrb[8].mxu1 %vm78_vm0, %v45_v41 }
  0x19   :  { %197 = vmatprep.mubr.f32.mxu0 %v4582_v3  ;;  %304 = vmatprep.mubr.f32.mxu1 %v4582_v3 }
  0x1a   :  { %1311 = vperm.xlu1 %2535, %v68_v48  }
  0x1b   :  { %1314 = vperm.xlu0 %2534, %v69_v49  }
  0x1c   :  { %2218 = vmatmul.mubr.msk.f32.gmra.mrb[10].mxu0 %vm78_vm0, %v47_v47  ;;  %2225 = vmatmul.mubr.msk.f32.gmra.mrb[10].mxu1 %vm78_vm0, %v46_v44 }
  0x1d   :  { %203 = vmatprep.mubr.f32.mxu0 %v4582_v3  ;;  %310 = vmatprep.mubr.f32.mxu1 %v4582_v3 }
  0x1e   :  { %1317 = vperm.xlu1 %2535, %v70_v51  }
  0x1f   :  { %1320 = vperm.xlu0 %2534, %v71_v52  }
  0x20   :  { %2219 = vmatmul.mubr.msk.f32.gmra.mrb[12].mxu0 %vm78_vm0, %v48_v50  ;;  %2226 = vmatmul.mubr.msk.f32.gmra.mrb[12].mxu1 %vm78_vm0, %v47_v47 }
  0x21   :  { %316 = vmatprep.mubr.f32.mxu1 %v4582_v3  ;;  %2319 = vmatprep.mubr.msk.f32.mxu0 %vm78_vm0, %v2714_v16  ;;  %v448_v16 = vadd.f32 %v447_v10, %v446_v5 }
  0x22   :  { %1323 = vperm.xlu1 %2535, %v72_v53  }
  0x23   :  { %1326 = vperm.xlu0 %2534, %v73_v54   ;;  %v449_v15 = vrot.slane %v448_v16, 1  ;;  %v475_v54 = vrot.slane %v474_v36, 2 }
  0x24   :  { %2227 = vmatmul.mubr.msk.f32.gmra.mrb[14].mxu1 %vm78_vm0, %v48_v50  ;;  %2320 = vmatmul.mubr.msk.f32.vlgmr.msra.gmra.mrb[14].mxu0 %vm78_vm0, %v2747_v34  ;;  %v463_v34 = vrot.slane %v462_v22, 1 }
  0x25   :  { %322 = vmatprep.mubr.f32.mxu1 %v4582_v3  ;;  %2322 = vmatprep.mubr.msk.f32.mxu0 %vm78_vm0, %v44_v38  ;;  %v2907_v29 = vadd.f32 %v449_v15, %v448_v16  ;;  %v2966_v13 = vadd.f32 %v475_v54, %v474_v36 }
  0x26   :  { %1329 = vperm.xlu1 %2535, %v74_v55   ;;  %v2938_v53 = vadd.f32 %v463_v34, %v462_v22 }
  0x27   :  { %1332 = vperm.xlu0 %2534, %v75_v56   ;;  %4742 = vst [vmem:[#allocation5_spill] sm:$0xff] %v2907_v29 }
  0x28   :  { %2228 = vmatmul.mubr.msk.f32.gmra.mrb[16].mxu1 %vm78_vm0, %v2724_v21  ;;  %2323 = vmatmul.mubr.msk.f32.gmra.mrb[16].mxu0 %vm78_vm0, %v45_v41  ;;  %4750 = vst [vmem:[#allocation13_spill] sm:$0xff] %v2938_v53 }
  0x29   :  { %2325 = vmatprep.mubr.msk.f32.mxu0 %vm78_vm0, %v46_v44  ;;  %1082 = vmatprep.mubr.f32.mxu1 %v4582_v3 }
  0x2a   :  { %866 = vperm.xlu1 %2535, %v60_v57  }
  0x2b   :  { %871 = vperm.xlu0 %2534, %v61_v58  }
  0x2c   :  { %2326 = vmatmul.mubr.msk.f32.gmra.mrb[18].mxu0 %vm78_vm0, %v47_v47 }
  0x2d   :  { %2328 = vmatprep.mubr.msk.f32.mxu0 %vm78_vm0, %v48_v50 }
  0x2e   :  { %876 = vperm.xlu1 %2535, %v62_v59  }
  0x2f   :  { %881 = vperm.xlu0 %2534, %v63_v60  }
  0x30   :  { %2329 = vmatmul.mubr.msk.f32.gmra.mrb[20].mxu0 %vm78_vm0, %v2724_v21 }
  0x31   :  { %1153 = vmatprep.mubr.f32.mxu0 %v4582_v3 }
  0x32   :  { %886 = vperm.xlu1 %2535, %v64_v61  }
  0x33   :  { %891 = vperm.xlu0 %2534, %v65_v62   ;;  %v2948_v62 = vadd.f32 %v470_v43, %v469_v26 }
  0x35   :  { %4752 = vst [vmem:[#allocation15_spill] sm:$0xff] %v2948_v62 }
  0x36   :  { %896 = vperm.xlu1 %2535, %v66_v63  }
  0x37   :  { %901 = vperm.xlu0 %2534, %v67_v0  }
  0x86   :  { %v2884_v4 = vpop.permute.xlu1 %531  ;;  %v2889_v8 = vpop.permute.xlu0 %521 }
  0x8a   :  { %v2896_v17 = vpop.permute.xlu0 %526 }
  0x8d   :  { %v2893_v12 = vpop.permute.xlu1 %536 }
  0x8e   :  { %v2901_v25 = vpop.permute.xlu0 %541 }
  0x8f   :  { %4739 = vst [vmem:[#allocation2_spill] sm:$0xff] %v2901_v25 }
  0x91   :  { %v2898_v21 = vpop.permute.xlu1 %546 }
  0x92   :  { %v2942_v57 = vpop.permute.xlu0 %551 }
  0x93   :  { %4751 = vst [vmem:[#allocation14_spill] sm:$0xff] %v2942_v57 }
  0x95   :  { %v2916_v37 = vpop.permute.xlu1 %556 }
  0xdb   :  { %v2903_v27 = vpop.f32.mrb[0].mxu0  ;;  %v2905_v28 = vpop.f32.mrb[0].mxu1 }
  0xdc   :  { %4740 = vst [vmem:[#allocation3_spill] sm:$0xff] %v2903_v27  ;;  %4741 = vst [vmem:[#allocation4_spill] sm:$0xff] %v2905_v28  ;;  %v479_v30 = vmul.f32 2.0, %v2903_v27  ;;  %v514_v31 = vmul.f32 2.0, %v2905_v28  ;;  %v2911_v32 = vpop.f32.mrb[1].mxu0  ;;  %v2913_v33 = vpop.f32.mrb[1].mxu1 }
  0xdd   :  { %4743 = vst [vmem:[#allocation6_spill] sm:$0xff] %v2911_v32  ;;  %4744 = vst [vmem:[#allocation7_spill] sm:$0xff] %v2913_v33  ;;  %v480_v38 = vmul.f32 2.0, %v2911_v32  ;;  %v515_v39 = vmul.f32 2.0, %v2913_v33 }
  0xde   :  { %v559_v41 = vsub.f32 %v2889_v8, %v479_v30  ;;  %v594_v42 = vsub.f32 %v2916_v37, %v514_v31 }
  0xdf   :  { %v560_v44 = vsub.f32 %v2889_v8, %v480_v38  ;;  %v595_v45 = vsub.f32 %v2916_v37, %v515_v39  ;;  %v2926_v46 = vpop.f32.mrb[2].mxu0  ;;  %v2928_v35 = vpop.f32.mrb[2].mxu1 }
  0xe0   :  { %4746 = vst [vmem:[#allocation9_spill] sm:$0xff] %v2926_v46  ;;  %4747 = vst [vmem:[#allocation10_spill] sm:$0xff] %v2928_v35  ;;  %v599_v47 = vadd.f32 %v559_v41, %v2907_v29  ;;  %v634_v48 = vadd.f32 %v594_v42, %v2907_v29  ;;  %v484_v49 = vmul.f32 2.0, %v2926_v46  ;;  %v481_v50 = vmul.f32 2.0, %v2928_v35  ;;  %v2934_v51 = vpop.f32.mrb[3].mxu0  ;;  %v2936_v52 = vpop.f32.mrb[3].mxu1 }
  0xe1   :  { %4748 = vst [vmem:[#allocation11_spill] sm:$0xff] %v2934_v51  ;;  %4749 = vst [vmem:[#allocation12_spill] sm:$0xff] %v2936_v52  ;;  %v485_v55 = vmul.f32 2.0, %v2934_v51  ;;  %v482_v56 = vmul.f32 2.0, %v2936_v52  ;;  %v600_v58 = vadd.f32 %v560_v44, %v2920_v40  ;;  %v635_v59 = vadd.f32 %v595_v45, %v2920_v40 }
  0xe2   :  { %v564_v60 = vsub.f32 %v2896_v17, %v484_v49  ;;  %v561_v61 = vsub.f32 %v2889_v8, %v481_v50  ;;  %v2950_v63 = vmax.f32 %v599_v47, 1e-12  ;;  %v2958_v6 = vmax.f32 %v634_v48, 1e-12  ;;  %v3002_v47 = vpop.permute.xlu0 %1267 }
  0xe3   :  { %v565_v0 = vsub.f32 %v2896_v17, %v485_v55  ;;  %v562_v1 = vsub.f32 %v2889_v8, %v482_v56  ;;  %v2954_v2 = vpop.f32.mrb[4].mxu0  ;;  %v2956_v5 = vpop.f32.mrb[4].mxu1  ;;  %v2971_v19 = vmax.f32 %v600_v58, 1e-12  ;;  %v2973_v20 = vmax.f32 %v635_v59, 1e-12 }
  0xe4   :  { %4753 = vst [vmem:[#allocation16_spill] sm:$0xff] %v2954_v2  ;;  %4754 = vst [vmem:[#allocation17_spill] sm:$0xff] %v2956_v5  ;;  %v604_v7 = vadd.f32 %v564_v60, %v2907_v29  ;;  %v489_v9 = vmul.f32 2.0, %v2954_v2  ;;  %v2962_v10 = vpop.f32.mrb[5].mxu0  ;;  %v2964_v11 = vpop.f32.mrb[5].mxu1  ;;  %v601_v14 = vadd.f32 %v561_v61, %v2938_v53  ;;  %v486_v18 = vmul.f32 2.0, %v2956_v5 }
  0xe5   :  { %4755 = vst [vmem:[#allocation18_spill] sm:$0xff] %v2958_v6  ;;  %4756 = vst [vmem:[#allocation19_spill] sm:$0xff] %v2962_v10  ;;  %v605_v16 = vadd.f32 %v565_v0, %v2920_v40  ;;  %2536 = vrsqrt.f32 %v2950_v63  ;;  %v602_v24 = vadd.f32 %v562_v1, %v2948_v62  ;;  %v490_v38 = vmul.f32 2.0, %v2962_v10 }
  0xe6   :  { %4757 = vst [vmem:[#allocation20_spill] sm:$0xff] %v2964_v11  ;;  %v2975_v15 = vmax.f32 %v604_v7, 1e-12  ;;  %v569_v22 = vsub.f32 %v2884_v4, %v489_v9  ;;  %v566_v26 = vsub.f32 %v2896_v17, %v486_v18  ;;  %2538 = vrsqrt.f32 %v2958_v6  ;;  %4763 = vst [vmem:[#allocation26_spill] sm:$0xff] %v3002_v47 }
  0xe7   :  { %v2979_v23 = vmax.f32 %v605_v16, 1e-12  ;;  %v2983_v30 = vpop.f32.mrb[6].mxu0  ;;  %v2985_v31 = vpop.f32.mrb[6].mxu1  ;;  %v2996_v42 = vmax.f32 %v601_v14, 1e-12  ;;  %2540 = vrsqrt.f32 %v2971_v19  ;;  %v570_v49 = vsub.f32 %v2884_v4, %v490_v38 }
  0xe8   :  { %4758 = vst [vmem:[#allocation21_spill] sm:$0xff] %v2983_v30  ;;  %4759 = vst [vmem:[#allocation22_spill] sm:$0xff] %v2985_v31  ;;  %v759_v34 = vmin.f32 %v2950_v63, %v2975_v15  ;;  %v609_v36 = vadd.f32 %v569_v22, %v2907_v29  ;;  %v2992_v39 = vpop.f32.mrb[7].mxu0  ;;  %v2994_v41 = vpop.f32.mrb[7].mxu1  ;;  %v606_v44 = vadd.f32 %v566_v26, %v2938_v53  ;;  %v487_v45 = vmul.f32 2.0, %v2964_v11 }
  0xe9   :  { %4760 = vst [vmem:[#allocation23_spill] sm:$0xff] %v2992_v39  ;;  %4761 = vst [vmem:[#allocation24_spill] sm:$0xff] %v2994_v41  ;;  %v772_v43 = vmin.f32 %v2971_v19, %v2979_v23  ;;  %v494_v50 = vmul.f32 2.0, %v2983_v30  ;;  %2542 = vrsqrt.f32 %v2973_v20  ;;  %v3010_v54 = vmax.f32 %v602_v24, 1e-12 }
  0xea   :  { %4762 = vst [vmem:[#allocation25_spill] sm:$0xff] %v2996_v42  ;;  %v3005_v48 = vmax.f32 %v609_v36, 1e-12  ;;  %v567_v55 = vsub.f32 %v2896_v17, %v487_v45  ;;  %v491_v56 = vmul.f32 2.0, %v2985_v31  ;;  %2544 = vrsqrt.f32 %v2975_v15  ;;  %v3068_v31 = vpop.permute.xlu1 %1311 }
  0xeb   :  { %v3014_v58 = vpop.f32.mrb[8].mxu0  ;;  %v3016_v59 = vpop.f32.mrb[8].mxu1  ;;  %v610_v61 = vadd.f32 %v570_v49, %v2920_v40  ;;  %v574_v0 = vsub.f32 %v2893_v12, %v494_v50  ;;  %2546 = vrsqrt.f32 %v2996_v42  ;;  %v3029_v9 = vmax.f32 %v606_v44, 1e-12  ;;  %4776 = vst [vmem:[#allocation39_spill] sm:$0xff] %v3068_v31 }
  0xec   :  { %4764 = vst [vmem:[#allocation27_spill] sm:$0xff] %v3014_v58  ;;  %4765 = vst [vmem:[#allocation28_spill] sm:$0xff] %v3016_v59  ;;  %v3020_v60 = vmin.f32 %v759_v34, %v3005_v48  ;;  %v3024_v1 = vpop.f32.mrb[9].mxu0  ;;  %v3026_v7 = vpop.f32.mrb[9].mxu1  ;;  %v607_v14 = vadd.f32 %v567_v55, %v2948_v62  ;;  %v571_v16 = vsub.f32 %v2884_v4, %v491_v56  ;;  %v495_v24 = vmul.f32 2.0, %v2992_v39 }
  0xed   :  { %4766 = vst [vmem:[#allocation29_spill] sm:$0xff] %v3024_v1  ;;  %4767 = vst [vmem:[#allocation30_spill] sm:$0xff] %v3026_v7  ;;  %v3033_v18 = vmax.f32 %v610_v61, 1e-12  ;;  %v614_v22 = vadd.f32 %v574_v0, %v2907_v29  ;;  %v492_v26 = vmul.f32 2.0, %v2994_v41  ;;  %2548 = vrsqrt.f32 %v2979_v23 }
  0xee   :  { %4768 = vst [vmem:[#allocation31_spill] sm:$0xff] %v3029_v9  ;;  %v611_v34 = vadd.f32 %v571_v16, %v2938_v53  ;;  %v499_v36 = vmul.f32 2.0, %v3014_v58  ;;  %v496_v38 = vmul.f32 2.0, %v3016_v59  ;;  %2550 = vrsqrt.f32 %v3010_v54 }
  0xef   :  { %v3042_v44 = vpop.f32.mrb[10].mxu0  ;;  %v3044_v45 = vpop.f32.mrb[10].mxu1  ;;  %v3048_v49 = vmin.f32 %v772_v43, %v3033_v18  ;;  %v3050_v50 = vmax.f32 %v614_v22, 1e-12  ;;  %v575_v55 = vsub.f32 %v2893_v12, %v495_v24  ;;  %2552 = vrsqrt.f32 %v3005_v48 }
  0xf0   :  { %4769 = vst [vmem:[#allocation32_spill] sm:$0xff] %v3042_v44  ;;  %4770 = vst [vmem:[#allocation33_spill] sm:$0xff] %v3044_v45  ;;  %v3053_v56 = vpop.f32.mrb[11].mxu0  ;;  %v3055_v61 = vpop.f32.mrb[11].mxu1  ;;  %v3061_v3 = vmax.f32 %v607_v14, 1e-12  ;;  %v572_v59 = vsub.f32 %v2884_v4, %v492_v26  ;;  %2554 = vrsqrt.f32 %v3029_v9  ;;  %v579_v16 = vsub.f32 %v2901_v25, %v499_v36 }
  0xf1   :  { %4771 = vst [vmem:[#allocation34_spill] sm:$0xff] %v3053_v56  ;;  %4772 = vst [vmem:[#allocation35_spill] sm:$0xff] %v3055_v61  ;;  %v3057_v0 = vpop.eup %2536  ;;  %v3066_v22 = vpop.permute.xlu0 %1314  ;;  %v761_v24 = vmin.f32 %v3020_v60, %v3050_v50  ;;  %v615_v28 = vadd.f32 %v575_v55, %v2920_v40  ;;  %2556 = vrsqrt.f32 %v3033_v18  ;;  %v3076_v14 = vmax.f32 %v611_v34, 1e-12 }
  0xf2   :  { %4773 = vst [vmem:[#allocation36_spill] sm:$0xff] %v3057_v0  ;;  %v3064_v43 = vpop.eup %2538  ;;  %4775 = vst [vmem:[#allocation38_spill] sm:$0xff] %v3066_v22  ;;  %v612_v26 = vadd.f32 %v572_v59, %v2948_v62  ;;  %v576_v41 = vsub.f32 %v2893_v12, %v496_v38  ;;  %v619_v60 = vadd.f32 %v579_v16, %v2907_v29  ;;  %v500_v36 = vmul.f32 2.0, %v3024_v1 }
  0xf3   :  { %4774 = vst [vmem:[#allocation37_spill] sm:$0xff] %v3064_v43  ;;  %4777 = vst [vmem:[#allocation40_spill] sm:$0xff] %v3076_v14  ;;  %v3080_v33 = vpop.f32.mrb[12].mxu0  ;;  %v3082_v5 = vpop.f32.mrb[12].mxu1  ;;  %v3086_v58 = vmax.f32 %v615_v28, 1e-12  ;;  %2558 = vrsqrt.f32 %v3061_v3  ;;  %v785_v16 = vmin.f32 %v2996_v42, %v3029_v9 }
  0xf4   :  { %4778 = vst [vmem:[#allocation41_spill] sm:$0xff] %v3080_v33  ;;  %4779 = vst [vmem:[#allocation42_spill] sm:$0xff] %v3082_v5  ;;  %v3084_v35 = vpop.eup %2540  ;;  %v497_v55 = vmul.f32 2.0, %v3026_v7  ;;  %v3091_v34 = vpop.f32.mrb[13].mxu0  ;;  %v616_v38 = vadd.f32 %v576_v41, %v2938_v53  ;;  %v504_v52 = vmul.f32 2.0, %v3042_v44  ;;  %v501_v28 = vmul.f32 2.0, %v3044_v45 }
  0xf5   :  { %4780 = vst [vmem:[#allocation43_spill] sm:$0xff] %v3084_v35  ;;  %4781 = vst [vmem:[#allocation44_spill] sm:$0xff] %v3091_v34  ;;  %v3093_v11 = vpop.f32.mrb[13].mxu1  ;;  %v3095_v59 = vpop.eup %2542  ;;  %2560 = vrsqrt.f32 %v3050_v50  ;;  %v774_v7 = vmin.f32 %v3048_v49, %v3086_v58  ;;  %v580_v1 = vsub.f32 %v2901_v25, %v500_v36  ;;  %v798_v41 = vmin.f32 %v3010_v54, %v3061_v3 }
  0xf6   :  { %4782 = vst [vmem:[#allocation45_spill] sm:$0xff] %v3093_v11  ;;  %4783 = vst [vmem:[#allocation46_spill] sm:$0xff] %v3095_v59  ;;  %v3101_v30 = vpop.eup %2544  ;;  %2562 = vrsqrt.f32 %v3076_v14  ;;  %v3114_v45 = vmax.f32 %v612_v26, 1e-12  ;;  %v577_v44 = vsub.f32 %v2893_v12, %v497_v55  ;;  %v3122_v46 = vmin.f32 %v785_v16, %v3076_v14  ;;  %v3134_v55 = vpop.permute.xlu1 %1317 }
  0xf7   :  { %4784 = vst [vmem:[#allocation47_spill] sm:$0xff] %v3101_v30  ;;  %v3109_v2 = vpop.eup %2546  ;;  %v3117_v39 = vpop.f32.mrb[14].mxu1  ;;  %v3124_v49 = vmax.f32 %v619_v60, 1e-12  ;;  %v620_v36 = vadd.f32 %v580_v1, %v2920_v40  ;;  %v584_v27 = vsub.f32 %v2898_v21, %v504_v52  ;;  %4792 = vst [vmem:[#allocation55_spill] sm:$0xff] %v3134_v55  ;;  %2564 = vrsqrt.f32 %v3086_v58 }
  0xf8   :  { %4785 = vst [vmem:[#allocation48_spill] sm:$0xff] %v3109_v2  ;;  %4786 = vst [vmem:[#allocation49_spill] sm:$0xff] %v3114_v45  ;;  %v3119_v10 = vpop.f32.mrb[14].mxu0  ;;  %v3128_v51 = vpop.f32.mrb[15].mxu1  ;;  %v3137_v22 = vmax.f32 %v616_v38, 1e-12  ;;  %v617_v16 = vadd.f32 %v577_v44, %v2948_v62  ;;  %v581_v60 = vsub.f32 %v2901_v25, %v501_v28  ;;  %2566 = vrsqrt.f32 %v3114_v45 }
  0xf9   :  { %4787 = vst [vmem:[#allocation50_spill] sm:$0xff] %v3117_v39  ;;  %4788 = vst [vmem:[#allocation51_spill] sm:$0xff] %v3119_v10  ;;  %v3130_v32 = vpop.f32.mrb[15].mxu0  ;;  %v3132_v26 = vpop.eup %2548  ;;  %v3145_v52 = vmax.f32 %v620_v36, 1e-12  ;;  %v624_v47 = vadd.f32 %v584_v27, %v2907_v29  ;;  %v505_v43 = vmul.f32 2.0, %v3053_v56  ;;  %v799_v27 = vmin.f32 %v798_v41, %v3114_v45 }
  0xfa   :  { %4789 = vst [vmem:[#allocation52_spill] sm:$0xff] %v3128_v51  ;;  %4790 = vst [vmem:[#allocation53_spill] sm:$0xff] %v3130_v32  ;;  %v3141_v31 = vpop.eup %2550  ;;  %v3143_v1 = vpop.permute.xlu0 %1320  ;;  %v502_v55 = vmul.f32 2.0, %v3055_v61  ;;  %v621_v44 = vadd.f32 %v581_v60, %v2938_v53  ;;  %v509_v38 = vmul.f32 2.0, %v3080_v33  ;;  %v506_v28 = vmul.f32 2.0, %v3082_v5 }
  0xfb   :  { %4791 = vst [vmem:[#allocation54_spill] sm:$0xff] %v3132_v26  ;;  %4793 = vst [vmem:[#allocation56_spill] sm:$0xff] %v3137_v22  ;;  %v3150_v59 = vpop.eup %2552  ;;  %v3156_v14 = vpop.f32.mrb[16].mxu1  ;;  %2568 = vrsqrt.f32 %v3124_v49  ;;  %v762_v61 = vmin.f32 %v761_v24, %v3124_v49  ;;  %v585_v56 = vsub.f32 %v2898_v21, %v505_v43  ;;  %v787_v5 = vmin.f32 %v3122_v46, %v3137_v22 }
  0xfc   :  { %4794 = vst [vmem:[#allocation57_spill] sm:$0xff] %v3141_v31  ;;  %4795 = vst [vmem:[#allocation58_spill] sm:$0xff] %v3143_v1  ;;  %v3158_v36 = vpop.f32.mrb[16].mxu0  ;;  %v3160_v1 = vpop.eup %2554  ;;  %2570 = vrsqrt.f32 %v3137_v22  ;;  %v3175_v2 = vmax.f32 %v617_v16, 1e-12  ;;  %v582_v41 = vsub.f32 %v2901_v25, %v502_v55  ;;  %v589_v45 = vsub.f32 %v2942_v57, %v509_v38 }
  0xfd   :  { %4796 = vst [vmem:[#allocation59_spill] sm:$0xff] %v3150_v59  ;;  %4797 = vst [vmem:[#allocation60_spill] sm:$0xff] %v3156_v14  ;;  %v3166_v59 = vpop.f32.mrb[17].mxu1  ;;  %v3168_v60 = vpop.f32.mrb[17].mxu0  ;;  %2572 = vrsqrt.f32 %v3145_v52  ;;  %v3179_v24 = vmax.f32 %v624_v47, 1e-12  ;;  %v625_v43 = vadd.f32 %v585_v56, %v2920_v40  ;;  %v586_v55 = vsub.f32 %v2898_v21, %v506_v28 }
  0xfe   :  { %4798 = vst [vmem:[#allocation61_spill] sm:$0xff] %v3158_v36  ;;  %4799 = vst [vmem:[#allocation62_spill] sm:$0xff] %v3160_v1  ;;  %v3170_v33 = vpop.eup %2556  ;;  %v775_v1 = vmin.f32 %v774_v7, %v3145_v52  ;;  %v3188_v9 = vmax.f32 %v621_v44, 1e-12  ;;  %v622_v46 = vadd.f32 %v582_v41, %v2948_v62  ;;  %v3196_v22 = vpop.permute.xlu0 %1326  ;;  %v629_v38 = vadd.f32 %v589_v45, %v2907_v29 }
  0xff   :  { %4800 = vst [vmem:[#allocation63_spill] sm:$0xff] %v3166_v59  ;;  %4801 = vst [vmem:[#allocation64_spill] sm:$0xff] %v3168_v60  ;;  %v3183_v42 = vpop.eup %2558  ;;  %v3192_v16 = vpop.f32.mrb[18].mxu0  ;;  %v3198_v56 = vmax.f32 %v625_v43, 1e-12  ;;  %v507_v7 = vmul.f32 2.0, %v3093_v11  ;;  %v800_v28 = vmin.f32 %v799_v27, %v3175_v2  ;;  %v763_v43 = vmin.f32 %v762_v61, %v3179_v24 }
 0x100   :  { %4802 = vst [vmem:[#allocation65_spill] sm:$0xff] %v3170_v33  ;;  %4803 = vst [vmem:[#allocation66_spill] sm:$0xff] %v3175_v2  ;;  %v3185_v33 = vpop.permute.xlu1 %1323  ;;  %v3194_v47 = vpop.eup %2560  ;;  %v3208_v41 = vmax.f32 %v622_v46, 1e-12  ;;  %v3214_v29 = vmax.f32 %v629_v38, 1e-12  ;;  %2574 = vrsqrt.f32 %v3175_v2 }
 0x101   :  { %4804 = vst [vmem:[#allocation67_spill] sm:$0xff] %v3183_v42  ;;  %4805 = vst [vmem:[#allocation68_spill] sm:$0xff] %v3185_v33  ;;  %v510_v33 = vmul.f32 2.0, %v3091_v34  ;;  %v3203_v44 = vpop.f32.mrb[19].mxu0  ;;  %v3205_v25 = vpop.eup %2562  ;;  %v776_v45 = vmin.f32 %v775_v1, %v3198_v56  ;;  %2576 = vrsqrt.f32 %v3179_v24 }
 0x102   :  { %4806 = vst [vmem:[#allocation69_spill] sm:$0xff] %v3192_v16  ;;  %4807 = vst [vmem:[#allocation70_spill] sm:$0xff] %v3194_v47  ;;  %v626_v47 = vadd.f32 %v586_v55, %v2938_v53  ;;  %v3217_v34 = vpop.eup %2564  ;;  %v801_v27 = vmin.f32 %v800_v28, %v3208_v41  ;;  %v587_v55 = vsub.f32 %v2898_v21, %v507_v7  ;;  %v488_v7 = vmul.f32 2.0, %v3119_v10  ;;  %v3240_v2 = vpop.permute.xlu0 %1332 }
 0x103   :  { %4808 = vst [vmem:[#allocation71_spill] sm:$0xff] %v3196_v22  ;;  %4809 = vst [vmem:[#allocation72_spill] sm:$0xff] %v3203_v44  ;;  %v511_v22 = vmul.f32 2.0, %v3117_v39  ;;  %v590_v11 = vsub.f32 %v2942_v57, %v510_v33  ;;  %v3224_v44 = vpop.f32.mrb[20].mxu0  ;;  %v764_v61 = vmin.f32 %v763_v43, %v3214_v29  ;;  %v3232_v39 = vpop.eup %2566  ;;  %2578 = vrsqrt.f32 %v3188_v9 }
 0x104   :  { %4810 = vst [vmem:[#allocation73_spill] sm:$0xff] %v3205_v25  ;;  %4811 = vst [vmem:[#allocation74_spill] sm:$0xff] %v3208_v41  ;;  %v788_v25 = vmin.f32 %v787_v5, %v3188_v9  ;;  %v3221_v46 = vmax.f32 %v626_v47, 1e-12  ;;  %v3230_v38 = vpop.f32.mrb[21].mxu0  ;;  %v627_v47 = vadd.f32 %v587_v55, %v2948_v62  ;;  %v3242_v43 = vpop.permute.xlu1 %1329  ;;  %v483_v55 = vmul.f32 2.0, %v3130_v32 }
 0x105   :  { %4812 = vst [vmem:[#allocation75_spill] sm:$0xff] %v3214_v29  ;;  %4813 = vst [vmem:[#allocation76_spill] sm:$0xff] %v3224_v44  ;;  %v630_v1 = vadd.f32 %v590_v11, %v2920_v40  ;;  %v591_v33 = vsub.f32 %v2942_v57, %v511_v22  ;;  %v3238_v28 = vpop.eup %2568  ;;  %v765_v11 = vmin.f32 %v764_v61, %v2958_v6  ;;  %2580 = vrsqrt.f32 %v3198_v56 }
 0x106   :  { %4814 = vst [vmem:[#allocation77_spill] sm:$0xff] %v3230_v38  ;;  %4815 = vst [vmem:[#allocation78_spill] sm:$0xff] %v3232_v39  ;;  %v789_v5 = vmin.f32 %v788_v25, %v3221_v46  ;;  %v512_v39 = vmul.f32 2.0, %v3128_v51  ;;  %v3249_v38 = vpop.eup %2570  ;;  %v3252_v25 = vmax.f32 %v627_v47, 1e-12  ;;  %2582 = vrsqrt.f32 %v3208_v41 }
 0x107   :  { %4816 = vst [vmem:[#allocation79_spill] sm:$0xff] %v3238_v28  ;;  %4817 = vst [vmem:[#allocation80_spill] sm:$0xff] %v3240_v2  ;;  %v3245_v22 = vmax.f32 %v630_v1, 1e-12  ;;  %v631_v40 = vadd.f32 %v591_v33, %v2938_v53  ;;  %v3255_v10 = vpop.eup %2572  ;;  %v766_v2 = vrot.slane %v765_v11, 4  ;;  %v4821_v33 = vrot.slane %v2966_v13, 1 }
 0x108   :  { %4818 = vst [vmem:[#allocation81_spill] sm:$0xff] %v3242_v43  ;;  %4819 = vst [vmem:[#allocation82_spill] sm:$0xff] %v3249_v38  ;;  %v802_v47 = vmin.f32 %v801_v27, %v3252_v25  ;;  %v592_v32 = vsub.f32 %v2942_v57, %v512_v39  ;;  %v563_v38 = vsub.f32 %v2889_v8, %v483_v55  ;;  %2584 = vrsqrt.f32 %v3214_v29 }
 0x109   :  { %4820 = vst [vmem:[#allocation83_spill] sm:$0xff] %v3255_v10  ;;  %v777_v61 = vmin.f32 %v776_v45, %v3245_v22  ;;  %v3259_v1 = vmax.f32 %v631_v40, 1e-12  ;;  %v3264_v51 = vadd.f32 %v4821_v33, %v2966_v13  ;;  %v767_v43 = vmin.f32 %v765_v11, %v766_v2  ;;  %v3280_v33 = vpop.permute.xlu0 %871  ;;  %v3282_v2 = vpop.permute.xlu1 %866 }
 0x10a   :  { %v568_v40 = vsub.f32 %v2896_v17, %v488_v7  ;;  %v632_v45 = vadd.f32 %v592_v32, %v2948_v62  ;;  %v720_v13 = vmul.f32 %v3084_v35, %v2971_v19  ;;  %v725_v27 = vmul.f32 %v3132_v26, %v2979_v23  ;;  %4823 = vst [vmem:[#allocation85_spill] sm:$0xff] %v3280_v33  ;;  %v3292_v55 = vpop.eup %2574 }
 0x10b   :  { %4822 = vst [vmem:[#allocation84_spill] sm:$0xff] %v3264_v51  ;;  %v778_v28 = vmin.f32 %v777_v61, %v2973_v20  ;;  %v3271_v10 = vmin.f32 %v789_v5, %v3259_v1  ;;  %4824 = vst [vmem:[#allocation86_spill] sm:$0xff] %v3282_v2  ;;  %v768_v39 = vrot.slane %v767_v43, 2  ;;  %v719_v5 = vmul.f32 %v3057_v0, %v2950_v63  ;;  %v3295_v41 = vpop.eup %2576 }
 0x10c   :  { %v724_v17 = vmul.f32 %v3101_v30, %v2975_v15  ;;  %v3289_v8 = vmax.f32 %v632_v45, 1e-12  ;;  %v2381_v32 = vpack.c.bf16 %v725_v27, %v720_v13  ;;  %v516_v7 = vmul.f32 2.0, %v3156_v14  ;;  %4825 = vst [vmem:[#allocation87_spill] sm:$0xff] %v3292_v55  ;;  %4826 = vst [vmem:[#allocation88_spill] sm:$0xff] %v3295_v41 }
 0x10d   :  { %v779_v11 = vrot.slane %v778_v28, 4  ;;  %v769_v61 = vmin.f32 %v767_v43, %v768_v39  ;;  %v608_v35 = vadd.f32 %v568_v40, %v3264_v51  ;;  %v603_v30 = vadd.f32 %v563_v38, %v3264_v51 }
 0x10e   :  { %v2383_v57 = vpack.c.bf16 %v724_v17, %v719_v5  ;;  %v3298_v0 = vmin.f32 %v802_v47, %v3289_v8  ;;  %2382 = vmatprep.subr.bf16.mxu1 %v2381_v32  ;;  %v596_v45 = vsub.f32 %v2916_v37, %v516_v7  ;;  %v498_v13 = vmul.f32 2.0, %v3158_v36  ;;  %v3314_v5 = vpop.permute.xlu1 %876 }
 0x10f   :  { %v780_v26 = vmin.f32 %v778_v28, %v779_v11  ;;  %v770_v27 = vrot.slane %v769_v61, 1  ;;  %2586 = vrsqrt.f32 %v3221_v46  ;;  %v3304_v28 = vpop.eup %2578  ;;  %v517_v47 = vmul.f32 2.0, %v3166_v59  ;;  %v3312_v11 = vpop.permute.xlu0 %881  ;;  %4829 = vst [vmem:[#allocation91_spill] sm:$0xff] %v3314_v5 }
 0x110   :  { %2384 = vmatpush1.bf16.msra.mxu1 %v2383_v57  ;;  %4827 = vst [vmem:[#allocation89_spill] sm:$0xff] %v3304_v28  ;;  %2588 = vrsqrt.f32 %v3245_v22  ;;  %v636_v40 = vadd.f32 %v596_v45, %v2938_v53  ;;  %v493_v38 = vmul.f32 2.0, %v3168_v60  ;;  %v3310_v39 = vpop.eup %2580  ;;  %4828 = vst [vmem:[#allocation90_spill] sm:$0xff] %v3312_v11  ;;  %v3319_v57 = vmax.f32 %v608_v35, 1e-12  ;;  %v4843_v28 = vld [vmem:[#allocation25_spill] sm:$0xff] }
 0x111   :  { %v781_v43 = vrot.slane %v780_v26, 2  ;;  %v3316_v17 = vmin.f32 %v769_v61, %v770_v27  ;;  %2590 = vrsqrt.f32 %v3252_v25  ;;  %v3321_v32 = vpop.eup %2582  ;;  %v3323_v45 = vmax.f32 %v603_v30, 1e-12 }
 0x112   :  { %4830 = vst [vmem:[#allocation92_spill] sm:$0xff] %v3319_v57  ;;  %4831 = vst [vmem:[#allocation93_spill] sm:$0xff] %v3321_v32  ;;  %v3325_v53 = vmax.f32 %v636_v40, 1e-12  ;;  %v578_v14 = vsub.f32 %v2893_v12, %v498_v13  ;;  %v597_v35 = vsub.f32 %v2916_v37, %v517_v47  ;;  %v573_v30 = vsub.f32 %v2884_v4, %v493_v38 }
 0x113   :  { %v782_v7 = vmin.f32 %v780_v26, %v781_v43  ;;  %vm824_vm1 = vcmp.le.f32.partialorder %v2950_v63, %v3316_v17  ;;  %vm829_vm2 = vcmp.le.f32.partialorder %v2975_v15, %v3316_v17  ;;  %vm834_vm3 = vcmp.le.f32.partialorder %v3005_v48, %v3316_v17  ;;  %v3345_v26 = vpop.eup %2584  ;;  %v3353_v27 = vpop.permute.xlu0 %891 }
 0x114   :  { %vm839_vm4 = vcmp.le.f32.partialorder %v3050_v50, %v3316_v17  ;;  %vm854_vm5 = vcmp.le.f32.partialorder %v3214_v29, %v3316_v17  ;;  %v727_v12 = vmul.f32 %v3183_v42, %v3061_v3  ;;  %v904_v63 = vsel %vm824_vm1, %v3282_v2, 64.0  ;;  %4832 = vst [vmem:[#allocation94_spill] sm:$0xff] %v3345_v26  ;;  %4833 = vst [vmem:[#allocation95_spill] sm:$0xff] %v3353_v27  ;;  %v3355_v43 = vpop.permute.xlu1 %886  ;;  %v4844_v26 = vld [vmem:[#allocation48_spill] sm:$0xff] }
 0x115   :  { %v909_v15 = vsel %vm829_vm2, %v3280_v33, 64.0  ;;  %2592 = vrsqrt.f32 %v3259_v1  ;;  %v811_v61 = vmin.f32 %v3323_v45, %v3319_v57  ;;  %v618_v13 = vadd.f32 %v578_v14, %v3264_v51  ;;  %4834 = vst [vmem:[#allocation96_spill] sm:$0xff] %v3355_v43 }
 0x116   :  { %2594 = vrsqrt.f32 %v3319_v57  ;;  %v722_v4 = vmul.f32 %v3141_v31, %v3010_v54  ;;  %vm844_vm6 = vcmp.le.f32.partialorder %v3124_v49, %v3316_v17  ;;  %v944_v40 = vmin.f32 %v904_v63, %v909_v15 }
 0x117   :  { %v783_v47 = vrot.slane %v782_v7, 1  ;;  %v791_v38 = vmin.f32 %v3271_v10, %v3325_v53  ;;  %v914_v14 = vsel %vm834_vm3, %v3314_v5, 64.0  ;;  %v637_v36 = vadd.f32 %v597_v35, %v2948_v62 }
 0x118   :  { %v613_v60 = vadd.f32 %v573_v30, %v3264_v51  ;;  %v2397_v59 = vpack.c.bf16 %v727_v12, %v722_v4  ;;  %vm849_vm7 = vcmp.le.f32.partialorder %v3179_v24, %v3316_v17  ;;  %vm859_vm8 = vcmp.le.f32.partialorder %v2958_v6, %v3316_v17 }
 0x119   :  { %v3367_v42 = vpop.eup %2586  ;;  %v945_v63 = vmin.f32 %v944_v40, %v914_v14  ;;  %v3373_v10 = vmin.f32 %v782_v7, %v783_v47  ;;  %v919_v35 = vsel %vm839_vm4, %v3312_v11, 64.0  ;;  %v924_v30 = vsel %vm844_vm6, %v3355_v43, 64.0  ;;  %v4840_v47 = vld [vmem:[#allocation31_spill] sm:$0xff]  ;;  %v4841_v14 = vld [vmem:[#allocation62_spill] sm:$0xff] }
 0x11a   :  { %4835 = vst [vmem:[#allocation97_spill] sm:$0xff] %v3367_v42  ;;  %v3375_v15 = vpop.eup %2588  ;;  %v792_v12 = vrot.slane %v791_v38, 4  ;;  %v3382_v4 = vmax.f32 %v637_v36, 1e-12  ;;  %2398 = vmatprep.subr.bf16.mxu0 %v2397_v59  ;;  %v3398_v59 = vmax.f32 %v613_v60, 1e-12  ;;  %v3400_v36 = vpop.permute.xlu0 %901  ;;  %2596 = vrsqrt.f32 %v3289_v8 }
 0x11b   :  { %4836 = vst [vmem:[#allocation98_spill] sm:$0xff] %v3375_v15  ;;  %v3384_v62 = vpop.eup %2590  ;;  %v946_v31 = vmin.f32 %v945_v63, %v919_v35  ;;  %vm825_vm9 = vcmp.le.f32.partialorder %v2971_v19, %v3373_v10  ;;  %vm830_vm10 = vcmp.le.f32.partialorder %v2979_v23, %v3373_v10  ;;  %vm835_vm11 = vcmp.le.f32.partialorder %v3033_v18, %v3373_v10  ;;  %v3402_v19 = vpop.permute.xlu1 %896  ;;  %v4846_v15 = vld [vmem:[#allocation72_spill] sm:$0xff] }
 0x11c   :  { %4837 = vst [vmem:[#allocation99_spill] sm:$0xff] %v3384_v62  ;;  %vm840_vm12 = vcmp.le.f32.partialorder %v3086_v58, %v3373_v10  ;;  %vm850_vm13 = vcmp.le.f32.partialorder %v3198_v56, %v3373_v10  ;;  %vm855_vm14 = vcmp.le.f32.partialorder %v3245_v22, %v3373_v10  ;;  %4838 = vst [vmem:[#allocation100_spill] sm:$0xff] %v3400_v36  ;;  %v905_v23 = vsel %vm825_vm9, %v3282_v2, 64.0 }
 0x11d   :  { %4839 = vst [vmem:[#allocation101_spill] sm:$0xff] %v3402_v19  ;;  %v947_v7 = vmin.f32 %v946_v31, %v924_v30  ;;  %v910_v40 = vsel %vm830_vm10, %v3280_v33, 64.0  ;;  %v726_v63 = vmul.f32 %v4841_v14, %v4840_v47  ;;  %v929_v35 = vsel %vm849_vm7, %v3353_v27, 64.0 }
 0x11e   :  { %v934_v60 = vsel %vm854_vm5, %v3402_v19, 64.0  ;;  %v939_v31 = vsel %vm859_vm8, %v3400_v36, 64.0  ;;  %v3420_v30 = vmax.f32 %v618_v13, 1e-12  ;;  %vm845_vm15 = vcmp.le.f32.partialorder %v3145_v52, %v3373_v10 }
 0x11f   :  { %v3422_v57 = vpop.eup %2592  ;;  %v948_v14 = vmin.f32 %v947_v7, %v929_v35  ;;  %v957_v42 = vmin.f32 %v905_v23, %v910_v40  ;;  %v721_v62 = vmul.f32 %v4844_v26, %v4843_v28  ;;  %v915_v17 = vsel %vm835_vm11, %v3314_v5, 64.0 }
 0x120   :  { %4842 = vst [vmem:[#allocation31_spill] sm:$0xff] %v3422_v57  ;;  %v3428_v32 = vpop.eup %2594  ;;  %v793_v6 = vmin.f32 %v791_v38, %v792_v12  ;;  %v804_v13 = vmin.f32 %v3298_v0, %v3382_v4  ;;  %v812_v7 = vmin.f32 %v811_v61, %v3398_v59  ;;  %v920_v23 = vsel %vm840_vm12, %v3312_v11, 64.0 }
 0x121   :  { %4845 = vst [vmem:[#allocation25_spill] sm:$0xff] %v3428_v32  ;;  %v949_v35 = vmin.f32 %v948_v14, %v934_v60  ;;  %v958_v40 = vmin.f32 %v957_v42, %v915_v17  ;;  %v2399_v26 = vpack.c.bf16 %v726_v63, %v721_v62  ;;  %v508_v29 = vmul.f32 2.0, %v3192_v16  ;;  %v4847_v14 = vld [vmem:[#allocation2_spill] sm:$0xff]  ;;  %v4848_v17 = vld [vmem:[#allocation65_spill] sm:$0xff] }
 0x122   :  { %v794_v57 = vrot.slane %v793_v6, 2  ;;  %v805_v32 = vrot.slane %v804_v13, 4  ;;  %v503_v41 = vmul.f32 2.0, %v4846_v15  ;;  %vm860_vm0 = vcmp.le.f32.partialorder %v2973_v20, %v3373_v10  ;;  %v4862_v15 = vld [vmem:[#allocation83_spill] sm:$0xff] }
 0x123   :  { %v3443_v38 = vmin.f32 %v949_v35, %v939_v31  ;;  %v959_v0 = vmin.f32 %v958_v40, %v920_v23  ;;  %2400 = vmatpush1.bf16.msra.mxu0 %v2399_v26  ;;  %v813_v61 = vmin.f32 %v812_v7, %v3420_v30  ;;  %v925_v62 = vsel %vm845_vm15, %v3355_v43, 64.0 }
 0x124   :  { %v795_v42 = vmin.f32 %v793_v6, %v794_v57  ;;  %v806_v12 = vmin.f32 %v804_v13, %v805_v32  ;;  %v583_v63 = vsub.f32 %v4847_v14, %v503_v41  ;;  %v930_v60 = vsel %vm850_vm13, %v3353_v27, 64.0  ;;  %v4849_v6 = vld [vmem:[#allocation59_spill] sm:$0xff]  ;;  %v4850_v14 = vld [vmem:[#allocation70_spill] sm:$0xff] }
 0x125   :  { %v960_v31 = vmin.f32 %v959_v0, %v925_v62  ;;  %v730_v26 = vmul.f32 %v4848_v17, %v3033_v18  ;;  %v735_v7 = vmul.f32 %v3217_v34, %v3086_v58  ;;  %v588_v40 = vsub.f32 %v2898_v21, %v508_v29 }
 0x126   :  { %v796_v35 = vrot.slane %v795_v42, 1  ;;  %v807_v23 = vrot.slane %v806_v12, 2  ;;  %v729_v57 = vmul.f32 %v4849_v6, %v3005_v48  ;;  %v623_v32 = vadd.f32 %v583_v63, %v3264_v51 }
 0x127   :  { %v961_v41 = vmin.f32 %v960_v31, %v930_v60  ;;  %v2385_v13 = vpack.c.bf16 %v735_v7, %v730_v26  ;;  %v734_v0 = vmul.f32 %v4850_v14, %v3050_v50  ;;  %v935_v18 = vsel %vm855_vm14, %v3402_v19, 64.0  ;;  %v4852_v60 = vld [vmem:[#allocation56_spill] sm:$0xff] }
 0x128   :  { %v797_v58 = vmin.f32 %v795_v42, %v796_v35  ;;  %v940_v21 = vsel %vm860_vm0, %v3400_v36, 64.0  ;;  %2598 = vrsqrt.f32 %v3323_v45  ;;  %v808_v50 = vmin.f32 %v806_v12, %v807_v23  ;;  %v4851_v12 = vld [vmem:[#allocation40_spill] sm:$0xff] }
 0x129   :  { %v962_v29 = vmin.f32 %v961_v41, %v935_v18  ;;  %2386 = vmatprep.subr.bf16.mxu1 %v2385_v13  ;;  %v2387_v48 = vpack.c.bf16 %v734_v0, %v729_v57  ;;  %v628_v62 = vadd.f32 %v588_v40, %v3264_v51  ;;  %v3483_v42 = vmax.f32 %v623_v32, 1e-12  ;;  %v4853_v32 = vld [vmem:[#allocation77_spill] sm:$0xff]  ;;  %v3504_v0 = vpop.eup %2596 }
 0x12a   :  { %vm826_vm1 = vcmp.le.f32.partialorder %v4843_v28, %v797_v58  ;;  %vm831_vm2 = vcmp.le.f32.partialorder %v4840_v47, %v797_v58  ;;  %vm851_vm3 = vcmp.le.f32.partialorder %v3221_v46, %v797_v58  ;;  %v518_v10 = vmul.f32 2.0, %v3224_v44 }
 0x12b   :  { %v3480_v63 = vmin.f32 %v962_v29, %v940_v21  ;;  %2388 = vmatpush1.bf16.msra.mxu1 %v2387_v48  ;;  %vm856_vm4 = vcmp.le.f32.partialorder %v3259_v1, %v797_v58  ;;  %vm861_vm5 = vcmp.le.f32.partialorder %v3325_v53, %v797_v58  ;;  %v906_v28 = vsel %vm826_vm1, %v3282_v2, 64.0 }
 0x12c   :  { %v911_v47 = vsel %vm831_vm2, %v3280_v33, 64.0  ;;  %2600 = vrsqrt.f32 %v3325_v53  ;;  %vm836_vm6 = vcmp.le.f32.partialorder %v4851_v12, %v797_v58  ;;  %vm841_vm7 = vcmp.le.f32.partialorder %v4852_v60, %v797_v58 }
 0x12d   :  { %2602 = vrsqrt.f32 %v3420_v30  ;;  %v970_v31 = vmin.f32 %v906_v28, %v911_v47  ;;  %v809_v26 = vrot.slane %v808_v50, 1  ;;  %v3494_v7 = vmax.f32 %v628_v62, 1e-12  ;;  %v4855_v62 = vld [vmem:[#allocation74_spill] sm:$0xff] }
 0x12e   :  { %vm846_vm8 = vcmp.le.f32.partialorder %v3188_v9, %v797_v58  ;;  %v916_v35 = vsel %vm836_vm6, %v3314_v5, 64.0  ;;  %v814_v23 = vmin.f32 %v813_v61, %v3483_v42  ;;  %v598_v40 = vsub.f32 %v2916_v37, %v518_v10  ;;  %v4856_v47 = vld [vmem:[#allocation14_spill] sm:$0xff] }
 0x12f   :  { %v971_v57 = vmin.f32 %v970_v31, %v916_v35  ;;  %2604 = vrsqrt.f32 %v3382_v4  ;;  %v3501_v41 = vmin.f32 %v808_v50, %v809_v26  ;;  %v513_v13 = vmul.f32 2.0, %v4853_v32  ;;  %v4854_v50 = vld [vmem:[#allocation66_spill] sm:$0xff]  ;;  %v4857_v31 = vld [vmem:[#allocation49_spill] sm:$0xff] }
 0x130   :  { %v921_v18 = vsel %vm841_vm7, %v3312_v11, 64.0  ;;  %2606 = vrsqrt.f32 %v3398_v59  ;;  %v815_v21 = vmin.f32 %v814_v23, %v3494_v7  ;;  %v926_v61 = vsel %vm846_vm8, %v3355_v43, 64.0  ;;  %v4858_v32 = vld [vmem:[#allocation78_spill] sm:$0xff] }
 0x131   :  { %v931_v37 = vsel %vm851_vm3, %v3353_v27, 64.0  ;;  %v972_v48 = vmin.f32 %v971_v57, %v921_v18  ;;  %vm827_vm9 = vcmp.le.f32.partialorder %v3010_v54, %v3501_v41  ;;  %vm832_vm10 = vcmp.le.f32.partialorder %v3061_v3, %v3501_v41 }
 0x132   :  { %v3509_v29 = vpop.eup %2598  ;;  %vm842_vm11 = vcmp.le.f32.partialorder %v4854_v50, %v3501_v41  ;;  %vm847_vm12 = vcmp.le.f32.partialorder %v4855_v62, %v3501_v41  ;;  %v638_v10 = vadd.f32 %v598_v40, %v3264_v51  ;;  %vm852_vm13 = vcmp.le.f32.partialorder %v3252_v25, %v3501_v41 }
 0x133   :  { %v973_v28 = vmin.f32 %v972_v48, %v926_v61  ;;  %vm857_vm14 = vcmp.le.f32.partialorder %v3289_v8, %v3501_v41  ;;  %v593_v54 = vsub.f32 %v4856_v47, %v513_v13  ;;  %vm837_vm15 = vcmp.le.f32.partialorder %v4857_v31, %v3501_v41 }
 0x134   :  { %vm862_vm0 = vcmp.le.f32.partialorder %v3382_v4, %v3501_v41  ;;  %v907_v3 = vsel %vm827_vm9, %v3282_v2, 64.0  ;;  %v912_v26 = vsel %vm832_vm10, %v3280_v33, 64.0  ;;  %2608 = vrsqrt.f32 %v3494_v7 }
 0x135   :  { %v974_v23 = vmin.f32 %v973_v28, %v931_v37  ;;  %v936_v57 = vsel %vm856_vm4, %v3402_v19, 64.0  ;;  %v941_v13 = vsel %vm861_vm5, %v3400_v36, 64.0  ;;  %v983_v18 = vmin.f32 %v907_v3, %v912_v26 }
 0x136   :  { %v3535_v35 = vpop.eup %2600  ;;  %2610 = vrsqrt.f32 %v3483_v42  ;;  %v917_v48 = vsel %vm837_vm15, %v3314_v5, 64.0  ;;  %v3548_v47 = vmax.f32 %v638_v10, 1e-12  ;;  %v633_v37 = vadd.f32 %v593_v54, %v3264_v51 }
 0x137   :  { %v3538_v40 = vpop.eup %2602  ;;  %v975_v61 = vmin.f32 %v974_v23, %v936_v57  ;;  %v922_v28 = vsel %vm842_vm11, %v3312_v11, 64.0  ;;  %v984_v44 = vmin.f32 %v983_v18, %v917_v48  ;;  %v732_v58 = vmul.f32 %v4858_v32, %v4857_v31  ;;  %v4860_v48 = vld [vmem:[#allocation73_spill] sm:$0xff] }
 0x138   :  { %v737_v3 = vmul.f32 %v3292_v55, %v4854_v50  ;;  %v927_v10 = vsel %vm847_vm12, %v3355_v43, 64.0  ;;  %v932_v54 = vsel %vm852_vm13, %v3353_v27, 64.0  ;;  %v3571_v57 = vmax.f32 %v633_v37, 1e-12 }
 0x139   :  { %v3559_v26 = vpop.eup %2604  ;;  %v3561_v23 = vmin.f32 %v975_v61, %v941_v13  ;;  %v985_v18 = vmin.f32 %v984_v44, %v922_v28  ;;  %v731_v13 = vmul.f32 %v4860_v48, %v4851_v12  ;;  %v4861_v61 = vld [vmem:[#allocation82_spill] sm:$0xff]  ;;  %2612 = vrsqrt.f32 %v3548_v47  ;;  %v4863_v28 = vld [vmem:[#allocation79_spill] sm:$0xff]  ;;  %v4864_v12 = vld [vmem:[#allocation88_spill] sm:$0xff] }
 0x13a   :  { %v3573_v31 = vpop.eup %2606  ;;  %v2401_v50 = vpack.c.bf16 %v737_v3, %v732_v58  ;;  %v736_v51 = vmul.f32 %v4861_v61, %v4852_v60  ;;  %v816_v16 = vmin.f32 %v815_v21, %v3571_v57  ;;  %v745_v37 = vmul.f32 %v3310_v39, %v3198_v56  ;;  %v4865_v61 = vld [vmem:[#allocation98_spill] sm:$0xff] }
 0x13b   :  { %4859 = vst [vmem:[#allocation2_spill] sm:$0xff] %v3561_v23  ;;  %v740_v23 = vmul.f32 %v4862_v15, %v3145_v52  ;;  %v986_v55 = vmin.f32 %v985_v18, %v927_v10  ;;  %v739_v58 = vmul.f32 %v4863_v28, %v3124_v49  ;;  %v744_v3 = vmul.f32 %v4864_v12, %v3179_v24  ;;  %v4866_v49 = vld [vmem:[#allocation46_spill] sm:$0xff] }
 0x13c   :  { %2402 = vmatprep.subr.bf16.mxu0 %v2401_v50  ;;  %v2403_v44 = vpack.c.bf16 %v736_v51, %v731_v13  ;;  %2614 = vrsqrt.f32 %v3571_v57  ;;  %v817_v60 = vmin.f32 %v816_v16, %v3548_v47  ;;  %v750_v52 = vmul.f32 %v4865_v61, %v3245_v22  ;;  %v4868_v16 = vld [vmem:[#allocation93_spill] sm:$0xff]  ;;  %v4869_v22 = vld [vmem:[#allocation99_spill] sm:$0xff]  ;;  %v4871_v48 = vld [vmem:[#allocation94_spill] sm:$0xff] }
 0x13d   :  { %v2389_v21 = vpack.c.bf16 %v745_v37, %v740_v23  ;;  %v937_v56 = vsel %vm857_vm14, %v3402_v19, 64.0  ;;  %v987_v51 = vmin.f32 %v986_v55, %v932_v54  ;;  %v2391_v10 = vpack.c.bf16 %v744_v3, %v739_v58  ;;  %v4870_v37 = vld [vmem:[#allocation75_spill] sm:$0xff]  ;;  %v4874_v58 = vld [vmem:[#allocation37_spill] sm:$0xff] }
 0x13e   :  { %2404 = vmatpush1.bf16.msra.mxu0 %v2403_v44  ;;  %v755_v18 = vmul.f32 %v4866_v49, %v2973_v20  ;;  %v3599_v24 = vpop.eup %2608  ;;  %v818_v50 = vrot.slane %v817_v60, 4  ;;  %v742_v23 = vmul.f32 %v4868_v16, %v4855_v62  ;;  %v747_v13 = vmul.f32 %v4869_v22, %v3252_v25  ;;  %v4873_v44 = vld [vmem:[#allocation18_spill] sm:$0xff]  ;;  %v4875_v25 = vld [vmem:[#allocation89_spill] sm:$0xff] }
 0x13f   :  { %4867 = vst [vmem:[#allocation65_spill] sm:$0xff] %v3599_v24  ;;  %2390 = vmatprep.subr.bf16.mxu1 %v2389_v21  ;;  %v749_v32 = vmul.f32 %v4871_v48, %v4870_v37  ;;  %v942_v20 = vsel %vm862_vm0, %v3400_v36, 64.0  ;;  %v988_v55 = vmin.f32 %v987_v51, %v937_v56  ;;  %v754_v3 = vmul.f32 %v4874_v58, %v4873_v44  ;;  %v4876_v37 = vld [vmem:[#allocation97_spill] sm:$0xff] }
 0x140   :  { %v3607_v61 = vpop.eup %2610  ;;  %2392 = vmatpush1.bf16.msra.mxu1 %v2391_v10  ;;  %v2393_v54 = vpack.c.bf16 %v755_v18, %v750_v52  ;;  %v819_v62 = vmin.f32 %v817_v60, %v818_v50  ;;  %v2405_v21 = vpack.c.bf16 %v747_v13, %v742_v23  ;;  %v741_v22 = vmul.f32 %v4875_v25, %v3188_v9  ;;  %v77_v60 = vld [vmem:[%s4577_s7] sm:$0xff]  ;;  %v4877_v9 = vld [vmem:[#allocation92_spill] sm:$0xff]  ;;  %v4878_v51 = vld [vmem:[#allocation25_spill] sm:$0xff] }
 0x141   :  { %4872 = vst [vmem:[#allocation59_spill] sm:$0xff] %v3607_v61  ;;  %v746_v16 = vmul.f32 %v4876_v37, %v3221_v46  ;;  %v3619_v48 = vmin.f32 %v988_v55, %v942_v20  ;;  %v2395_v49 = vpack.c.bf16 %v754_v3, %v749_v32  ;;  %v723_v52 = vmul.f32 %v3509_v29, %v3323_v45 }
 0x142   :  { %2394 = vmatprep.subr.bf16.mxu1 %v2393_v54  ;;  %v820_v41 = vrot.slane %v819_v62, 2  ;;  %2406 = vmatprep.subr.bf16.mxu0 %v2405_v21  ;;  %vm1014_vm1 = vcmask 523264   ;;  %v728_v10 = vmul.f32 %v4878_v51, %v4877_v9  ;;  %v752_v46 = vmul.f32 %v3504_v0, %v3289_v8 }
 0x143   :  { %v2407_v56 = vpack.c.bf16 %v746_v16, %v741_v22  ;;  %v757_v32 = vmul.f32 %v3559_v26, %v3382_v4  ;;  %v3632_v18 = vpop.eup %2612  ;;  %v2628_v16 = vmov 0.0|0.0   ;;  %v756_v20 = vmul.f32 %v3535_v35, %v3325_v53 }
 0x144   :  { %2396 = vmatpush1.bf16.msra.mxu1 %v2395_v49  ;;  %4879 = vst [vmem:[#allocation70_spill] sm:$0xff] %v3632_v18  ;;  %v821_v50 = vmin.f32 %v819_v62, %v820_v41  ;;  %v4880_v49 = vld [vmem:[#allocation31_spill] sm:$0xff]  ;;  %v2414_v22 = vpack.c.bf16 %v728_v10, %v723_v52  ;;  %v733_v4 = vmul.f32 %v3573_v31, %v3398_v59  ;;  %vm2629_vm2 = vmmov 0  }
 0x145   :  { %2408 = vmatpush1.bf16.msra.mxu0 %v2407_v56  ;;  %2413 = vmatprep.subr.bf16.mxu1 %v2628_v16  ;;  %v751_v23 = vmul.f32 %v4880_v49, %v3259_v1  ;;  %v2409_v13 = vpack.c.bf16 %v757_v32, %v752_v46  ;;  %v738_v54 = vmul.f32 %v3538_v40, %v3420_v30  ;;  %v4882_v21 = vmov 0.0  }
 0x146   :  { %v3638_v55 = vpop.eup %2614  ;;  %v822_v8 = vrot.slane %v821_v50, 1  ;;  %v743_v1 = vmul.f32 %v3607_v61, %v3483_v42  ;;  %v748_v53 = vmul.f32 %v3599_v24, %v3494_v7  ;;  %v758_v52 = vmul.f32 %v3632_v18, %v3548_v47  ;;  %v4903_v24 = vld [vmem:[#allocation3_spill] sm:$0xff] }
 0x147   :  { %4881 = vst [vmem:[#allocation40_spill] sm:$0xff] %v3638_v55  ;;  %2237 = vmatmul.mubr.msk.f32.vlgmr.msra.gmra.mrb[18].mxu1 %vm1014_vm1, %v77_v60  ;;  %2410 = vmatprep.subr.bf16.mxu0 %v2409_v13  ;;  %v2411_v44 = vpack.c.bf16 %v756_v20, %v751_v23  ;;  %v2417_v62 = vpack.c.bf16 %v738_v54, %v733_v4  ;;  %v964_v54 = vrot.slane %v3480_v63, 4 }
 0x148   :  { %2415 = vmatpush3.bf16.msra.mxu1 %v2414_v22  ;;  %v823_v3 = vmin.f32 %v821_v50, %v822_v8  ;;  %2347 = vmatprep.mubr.msk.f32.mxu1 %vm2629_vm2, %v4882_v21  ;;  %v2420_v41 = vpack.c.bf16 %v748_v53, %v743_v1  ;;  %v753_v56 = vmul.f32 %v3638_v55, %v3571_v57 }
 0x149   :  { %2416 = vmatprep.subr.bf16.mxu1 %v2628_v16  ;;  %2412 = vmatpush1.bf16.msra.mxu0 %v2411_v44  ;;  %v965_v44 = vmin.f32 %v3480_v63, %v964_v54 }
 0x14a   :  { %vm828_vm3 = vcmp.le.f32.partialorder %v3323_v45, %v823_v3  ;;  %vm833_vm4 = vcmp.le.f32.partialorder %v4877_v9, %v823_v3  ;;  %vm838_vm5 = vcmp.le.f32.partialorder %v3398_v59, %v823_v3  ;;  %vm843_vm6 = vcmp.le.f32.partialorder %v3420_v30, %v823_v3 }
 0x14b   :  { %vm848_vm7 = vcmp.le.f32.partialorder %v3483_v42, %v823_v3  ;;  %vm853_vm8 = vcmp.le.f32.partialorder %v3494_v7, %v823_v3  ;;  %vm858_vm9 = vcmp.le.f32.partialorder %v3571_v57, %v823_v3  ;;  %vm863_vm10 = vcmp.le.f32.partialorder %v3548_v47, %v823_v3 }
 0x14c   :  { %2418 = vmatpush3.bf16.msra.mxu1 %v2417_v62  ;;  %v908_v10 = vsel %vm828_vm3, %v3282_v2, 64.0  ;;  %v913_v46 = vsel %vm833_vm4, %v3280_v33, 64.0  ;;  %2238 = vmatmul.mubr.msk.f32.vlgmr.msra.gmra.mrb[22].mxu0 %vm1014_vm1, %v77_v60  ;;  %v2423_v59 = vpack.c.bf16 %v758_v52, %v753_v56  ;;  %v918_v9 = vsel %vm838_vm5, %v3314_v5, 64.0  ;;  %v4909_v5 = vld [vmem:[#allocation23_spill] sm:$0xff] }
 0x14d   :  { %2419 = vmatprep.subr.bf16.mxu1 %v2628_v16  ;;  %1774 = vmatprep.mubr.f32.mxu0 %v4882_v21  ;;  %v996_v45 = vmin.f32 %v908_v10, %v913_v46  ;;  %v923_v50 = vsel %vm843_vm6, %v3312_v11, 64.0  ;;  %v928_v22 = vsel %vm848_vm7, %v3355_v43, 64.0  ;;  %v933_v20 = vsel %vm853_vm8, %v3353_v27, 64.0  ;;  %v4904_v43 = vld [vmem:[#allocation9_spill] sm:$0xff] }
 0x14e   :  { %v943_v42 = vsel %vm863_vm10, %v3400_v36, 64.0  ;;  %v951_v7 = vrot.slane %v3443_v38, 4  ;;  %v966_v56 = vrot.slane %v965_v44, 2  ;;  %v990_v47 = vrot.slane %v3619_v48, 4 }
 0x14f   :  { %v997_v32 = vmin.f32 %v996_v45, %v918_v9 }
 0x150   :  { %2421 = vmatpush3.bf16.msra.mxu1 %v2420_v41  ;;  %v952_v62 = vmin.f32 %v3443_v38, %v951_v7 }
 0x151   :  { %2422 = vmatprep.subr.bf16.mxu1 %v2628_v16  ;;  %v998_v23 = vmin.f32 %v997_v32, %v923_v50  ;;  %v938_v16 = vsel %vm858_vm9, %v3402_v19, 64.0  ;;  %v967_v50 = vmin.f32 %v965_v44, %v966_v56 }
 0x152   :  { %v953_v45 = vrot.slane %v952_v62, 2 }
 0x153   :  { %v999_v13 = vmin.f32 %v998_v23, %v928_v22  ;;  %v968_v54 = vrot.slane %v967_v50, 1 }
 0x154   :  { %2424 = vmatpush3.bf16.msra.mxu1 %v2423_v59 }
 0x155   :  { %v1000_v8 = vmin.f32 %v999_v13, %v933_v20  ;;  %v991_v20 = vmin.f32 %v3619_v48, %v990_v47  ;;  %v969_v47 = vmin.f32 %v967_v50, %v968_v54 }
 0x157   :  { %2348 = vmatmul.mubr.msk.f32.vlgmr.msra.gmra.mrb[20].mxu1 %vm1014_vm1, %v77_v60  ;;  %v1001_v30 = vmin.f32 %v1000_v8, %v938_v16  ;;  %v954_v16 = vmin.f32 %v952_v62, %v953_v45 }
 0x158   :  { %1851 = vmatprep.mubr.f32.mxu1 %v4882_v21 }
 0x159   :  { %v3684_v4 = vmin.f32 %v1001_v30, %v943_v42  ;;  %v955_v56 = vrot.slane %v954_v16, 1 }
 0x21a   :  { %v1084_v60 = vpop.f32.mrb[18].mxu1 }
 0x21b   :  { %v1230_v1 = vrot.slane %v1084_v60, 4  ;;  %v1086_v53 = vpop.f32.mrb[19].mxu1 }
 0x21c   :  { %v1236_v57 = vrot.slane %v1086_v53, 4 }
 0x21d   :  { %v1231_v41 = vmin.f32 %v1084_v60, %v1230_v1 }
 0x21e   :  { %v1237_v52 = vmin.f32 %v1086_v53, %v1236_v57 }
 0x21f   :  { %v1232_v10 = vrot.slane %v1231_v41, 2  ;;  %v1155_v46 = vpop.f32.mrb[22].mxu0 }
 0x220   :  { %v1238_v3 = vrot.slane %v1237_v52, 2  ;;  %v1242_v9 = vrot.slane %v1155_v46, 4  ;;  %v1157_v32 = vpop.f32.mrb[23].mxu0 }
 0x221   :  { %v1233_v59 = vmin.f32 %v1231_v41, %v1232_v10  ;;  %v1248_v23 = vrot.slane %v1157_v32, 4  ;;  %v992_v41 = vrot.slane %v991_v20, 2  ;;  %v4883_v10 = vld [vmem:[#allocation26_spill] sm:$0xff] }
 0x222   :  { %v1239_v63 = vmin.f32 %v1237_v52, %v1238_v3  ;;  %v1243_v13 = vmin.f32 %v1155_v46, %v1242_v9 }
 0x223   :  { %v1234_v22 = vrot.slane %v1233_v59, 1  ;;  %v1249_v8 = vmin.f32 %v1157_v32, %v1248_v23 }
 0x224   :  { %v1240_v38 = vrot.slane %v1239_v63, 1  ;;  %v1244_v42 = vrot.slane %v1243_v13, 2 }
 0x225   :  { %v1235_v30 = vmin.f32 %v1233_v59, %v1234_v22  ;;  %v1250_v1 = vrot.slane %v1249_v8, 2 }
 0x226   :  { %v1241_v7 = vmin.f32 %v1239_v63, %v1240_v38  ;;  %v1245_v57 = vmin.f32 %v1243_v13, %v1244_v42  ;;  %v2501_v42 = vtrunc.f32 %v969_v47 }
 0x227   :  { %vm1260_vm11 = vcmp.le.f32.partialorder %v1084_v60, %v1235_v30  ;;  %v1251_v44 = vmin.f32 %v1249_v8, %v1250_v1  ;;  %v993_v60 = vmin.f32 %v991_v20, %v992_v41  ;;  %v3694_v30 = vmin.f32 %v954_v16, %v955_v56 }
 0x228   :  { %v1270_v18 = vsel %vm1260_vm11, %v4883_v10, 8.0  ;;  %vm1261_vm12 = vcmp.le.f32.partialorder %v1086_v53, %v1241_v7  ;;  %v1246_v48 = vrot.slane %v1245_v57, 1  ;;  %v3699_v47 = vcvt.f32.s32 %v2501_v42 }
 0x229   :  { %v1275_v52 = vrot.slane %v1270_v18, 4  ;;  %v1271_v3 = vsel %vm1261_vm12, %v4883_v10, 8.0  ;;  %v1252_v62 = vrot.slane %v1251_v44, 1  ;;  %v2431_v42 = vpack.c.bf16 %v3217_v34, %v4848_v17 }
 0x22a   :  { %v1281_v9 = vrot.slane %v1271_v3, 4  ;;  %v1226_v45 = vpop.f32.mrb[20].mxu1  ;;  %v1247_v23 = vmin.f32 %v1245_v57, %v1246_v48 }
 0x22b   :  { %v1276_v59 = vmin.f32 %v1270_v18, %v1275_v52  ;;  %v1254_v63 = vrot.slane %v1226_v45, 4  ;;  %v2349_v22 = vpop.f32.mrb[21].mxu1  ;;  %v1253_v38 = vmin.f32 %v1251_v44, %v1252_v62  ;;  %v994_v52 = vrot.slane %v993_v60, 1 }
 0x22c   :  { %v1282_v13 = vmin.f32 %v1271_v3, %v1281_v9  ;;  %vm1262_vm13 = vcmp.le.f32.partialorder %v1155_v46, %v1247_v23  ;;  %v4884_v22 = vld [vmem:[#allocation43_spill] sm:$0xff] }
 0x22d   :  { %v1277_v53 = vrot.slane %v1276_v59, 2  ;;  %v1255_v8 = vmin.f32 %v1226_v45, %v1254_v63  ;;  %v1272_v1 = vsel %vm1262_vm13, %v4883_v10, 8.0  ;;  %vm1263_vm14 = vcmp.le.f32.partialorder %v1157_v32, %v1253_v38  ;;  %v4885_v38 = vld [vmem:[#allocation54_spill] sm:$0xff] }
 0x22e   :  { %v1283_v7 = vrot.slane %v1282_v13, 2  ;;  %v1287_v54 = vrot.slane %v1272_v1, 4  ;;  %v1273_v18 = vsel %vm1263_vm14, %v4883_v10, 8.0 }
 0x22f   :  { %v1278_v50 = vmin.f32 %v1276_v59, %v1277_v53  ;;  %v1256_v57 = vrot.slane %v1255_v8, 2  ;;  %v1293_v20 = vrot.slane %v1273_v18, 4  ;;  %v3701_v59 = vmin.f32 %v993_v60, %v994_v52  ;;  %v4901_v52 = vld [vmem:[#allocation11_spill] sm:$0xff] }
 0x230   :  { %v1284_v48 = vmin.f32 %v1282_v13, %v1283_v7  ;;  %v1288_v44 = vmin.f32 %v1272_v1, %v1287_v54  ;;  %v2425_v13 = vpack.c.bf16 %v4885_v38, %v4884_v22  ;;  %v4887_v54 = vld [vmem:[#allocation47_spill] sm:$0xff]  ;;  %v2434_v60 = vpack.c.bf16 %v4850_v14, %v4849_v6 }
 0x231   :  { %v1279_v41 = vrot.slane %v1278_v50, 1  ;;  %v1257_v16 = vmin.f32 %v1255_v8, %v1256_v57  ;;  %v1294_v3 = vmin.f32 %v1273_v18, %v1293_v20  ;;  %v4886_v8 = vld [vmem:[#allocation36_spill] sm:$0xff]  ;;  %v4889_v20 = vld [vmem:[#allocation67_spill] sm:$0xff] }
 0x232   :  { %v1285_v46 = vrot.slane %v1284_v48, 1  ;;  %v1289_v62 = vrot.slane %v1288_v44, 2  ;;  %v2428_v57 = vpack.c.bf16 %v4887_v54, %v4886_v8 }
 0x233   :  { %v1280_v9 = vmin.f32 %v1278_v50, %v1279_v41  ;;  %v1258_v32 = vrot.slane %v1257_v16, 1  ;;  %v1295_v63 = vrot.slane %v1294_v3, 2 }
 0x234   :  { %v1286_v23 = vmin.f32 %v1284_v48, %v1285_v46  ;;  %v1290_v7 = vmin.f32 %v1288_v44, %v1289_v62  ;;  %v4888_v48 = vld [vmem:[#allocation57_spill] sm:$0xff] }
 0x235   :  { %v2509_v53 = vtrunc.f32 %v1280_v9  ;;  %v1259_v1 = vmin.f32 %v1257_v16, %v1258_v32  ;;  %v1296_v18 = vmin.f32 %v1294_v3, %v1295_v63  ;;  %v4890_v3 = vld [vmem:[#allocation48_spill] sm:$0xff]  ;;  %v4891_v9 = vld [vmem:[#allocation62_spill] sm:$0xff] }
 0x236   :  { %v2511_v56 = vtrunc.f32 %v1286_v23  ;;  %v1291_v32 = vrot.slane %v1290_v7, 1  ;;  %v4892_v23 = vld [vmem:[#allocation39_spill] sm:$0xff]  ;;  %v4894_v63 = vld [vmem:[#allocation98_spill] sm:$0xff] }
 0x237   :  { %v3711_v50 = vcvt.f32.s32 %v2509_v53  ;;  %vm1264_vm15 = vcmp.le.f32.partialorder %v1226_v45, %v1259_v1  ;;  %v1297_v16 = vrot.slane %v1296_v18, 1  ;;  %v4893_v45 = vld [vmem:[#allocation38_spill] sm:$0xff] }
 0x238   :  { %v3717_v44 = vcvt.f32.s32 %v2511_v56  ;;  %v4895_v53 = vld [vmem:[#allocation46_spill] sm:$0xff]  ;;  %v1274_v56 = vsel %vm1264_vm15, %v4883_v10, 8.0  ;;  %v1292_v1 = vmin.f32 %v1290_v7, %v1291_v32 }
 0x239   :  { %vm1334_vm0 = vcmp.eq.s32.totalorder %v4892_v23, %v3711_v50  ;;  %vm1339_vm2 = vcmp.eq.s32.totalorder %v4893_v45, %v3711_v50  ;;  %v1298_v41 = vmin.f32 %v1296_v18, %v1297_v16  ;;  %v4897_v10 = vld [vmem:[#allocation78_spill] sm:$0xff]  ;;  %v4898_v16 = vld [vmem:[#allocation87_spill] sm:$0xff]  ;;  %v1299_v61 = vrot.slane %v1274_v56, 4 }
 0x23a   :  { %vm1335_vm3 = vcmp.eq.s32.totalorder %v4892_v23, %v3717_v44  ;;  %vm1340_vm4 = vcmp.eq.s32.totalorder %v4893_v45, %v3717_v44  ;;  %v3744_v18 = vsel %vm1334_vm0, %v4886_v8, 0.0  ;;  %vm2429_vm6 = vmpackc.low %vm1339_vm2, %vm1334_vm0  ;;  %v4900_v8 = vld [vmem:[#allocation94_spill] sm:$0xff] }
 0x23b   :  { %v3735_v62 = vsel %vm1335_vm3, %v4884_v22, 0.0  ;;  %v3738_v46 = vsel %vm1340_vm4, %v4885_v38, 0.0  ;;  %vm2426_vm5 = vmpackc.low %vm1340_vm4, %vm1335_vm3  ;;  %4896 = vst [vmem:[#allocation56_spill] sm:$0xff] %v3744_v18  ;;  %v4899_v22 = vld [vmem:[#allocation6_spill] sm:$0xff]  ;;  %v1959_v7 = vmul.f32 %v3744_v18, %v4903_v24  ;;  %v1300_v24 = vmin.f32 %v1274_v56, %v1299_v61 }
 0x23c   :  { %v1642_v55 = vadd.f32 %v3738_v46, %v3735_v62  ;;  %2427 = vmatprep.subr.msk.bf16.mxu0 %vm2426_vm5, %v2425_v13  ;;  %v1960_v38 = vmul.f32 %v3735_v62, %v4899_v22  ;;  %v1965_v36 = vmul.f32 %v3738_v46, %v4901_v52  ;;  %v3767_v13 = vsel %vm1339_vm2, %v4887_v54, 0.0  ;;  %v4905_v54 = vld [vmem:[#allocation55_spill] sm:$0xff] }
 0x23d   :  { %4902 = vst [vmem:[#allocation66_spill] sm:$0xff] %v3767_v13  ;;  %2430 = vmatpush1.bf16.msk.msra.mxu0 %vm2429_vm6, %v2428_v57  ;;  %v2515_v22 = vtrunc.f32 %v1298_v41  ;;  %v1427_v19 = vmax.f32 %v3735_v62, %v3738_v46  ;;  %v1629_v27 = vadd.f32 %v3767_v13, %v3744_v18  ;;  %v1414_v52 = vmax.f32 %v3744_v18, %v3767_v13  ;;  %v4906_v57 = vld [vmem:[#allocation58_spill] sm:$0xff]  ;;  %v4908_v18 = vld [vmem:[#allocation19_spill] sm:$0xff] }
 0x23e   :  { %v2012_v32 = vadd.f32 %v1965_v36, %v1960_v38  ;;  %v1964_v11 = vmul.f32 %v3767_v13, %v4904_v43  ;;  %vm1345_vm7 = vcmp.eq.s32.totalorder %v4905_v54, %v3717_v44  ;;  %vm1350_vm8 = vcmp.eq.s32.totalorder %v4906_v57, %v3717_v44 }
 0x23f   :  { %v3784_v41 = vsel %vm1345_vm7, %v4848_v17, 0.0  ;;  %vm1344_vm9 = vcmp.eq.s32.totalorder %v4905_v54, %v3711_v50  ;;  %vm1349_vm10 = vcmp.eq.s32.totalorder %v4906_v57, %v3711_v50  ;;  %v2513_v36 = vtrunc.f32 %v1292_v1  ;;  %vm2432_vm11 = vmpackc.low %vm1350_vm8, %vm1345_vm7 }
 0x240   :  { %4907 = vst [vmem:[#allocation74_spill] sm:$0xff] %v3784_v41  ;;  %v1999_v38 = vadd.f32 %v1964_v11, %v1959_v7  ;;  %v3791_v43 = vsel %vm1350_vm8, %v3217_v34, 0.0  ;;  %v1643_v13 = vadd.f32 %v1642_v55, %v3784_v41  ;;  %2433 = vmatprep.subr.msk.bf16.mxu0 %vm2432_vm11, %v2431_v42  ;;  %v1970_v17 = vmul.f32 %v3784_v41, %v4908_v18  ;;  %vm2435_vm12 = vmpackc.low %vm1349_vm10, %vm1344_vm9  ;;  %v4911_v7 = vld [vmem:[#allocation21_spill] sm:$0xff] }
 0x241   :  { %v1975_v33 = vmul.f32 %v3791_v43, %v4909_v5  ;;  %v3799_v2 = vsel %vm1344_vm9, %v4849_v6, 0.0  ;;  %v3801_v1 = vcvt.f32.s32 %v2515_v22  ;;  %v1428_v11 = vmax.f32 %v1427_v19, %v3784_v41  ;;  %2436 = vmatpush1.bf16.msk.msra.mxu0 %vm2435_vm12, %v2434_v60  ;;  %v4910_v5 = vld [vmem:[#allocation16_spill] sm:$0xff] }
 0x242   :  { %v3805_v34 = vsel %vm1349_vm10, %v4850_v14, 0.0  ;;  %v1415_v61 = vmax.f32 %v1414_v52, %v3799_v2  ;;  %v1644_v55 = vadd.f32 %v1643_v13, %v3791_v43  ;;  %v2013_v42 = vadd.f32 %v2012_v32, %v1970_v17  ;;  %v4912_v14 = vld [vmem:[#allocation68_spill] sm:$0xff]  ;;  %v4913_v13 = vld [vmem:[#allocation71_spill] sm:$0xff] }
 0x243   :  { %v1630_v56 = vadd.f32 %v1629_v27, %v3799_v2  ;;  %v1969_v6 = vmul.f32 %v3799_v2, %v4910_v5  ;;  %v3812_v18 = vcvt.f32.s32 %v2513_v36  ;;  %v1301_v22 = vrot.slane %v1300_v24, 2  ;;  %v4916_v5 = vld [vmem:[#allocation34_spill] sm:$0xff] }
 0x244   :  { %v1974_v19 = vmul.f32 %v3805_v34, %v4911_v7  ;;  %vm1355_vm13 = vcmp.eq.s32.totalorder %v4912_v14, %v3717_v44  ;;  %v2014_v41 = vadd.f32 %v2013_v42, %v1975_v33  ;;  %vm1360_vm14 = vcmp.eq.s32.totalorder %v4913_v13, %v3717_v44 }
 0x245   :  { %v1631_v60 = vadd.f32 %v1630_v56, %v3805_v34  ;;  %v2000_v52 = vadd.f32 %v1999_v38, %v1969_v6  ;;  %v1429_v27 = vmax.f32 %v1428_v11, %v3791_v43  ;;  %v3823_v32 = vsel %vm1355_vm13, %v4862_v15, 0.0  ;;  %vm2438_vm15 = vmpackc.low %vm1360_vm14, %vm1355_vm13  ;;  %v4915_v11 = vld [vmem:[#allocation29_spill] sm:$0xff] }
 0x246   :  { %v3826_v36 = vsel %vm1360_vm14, %v3310_v39, 0.0  ;;  %vm1337_vm0 = vcmp.eq.s32.totalorder %v4892_v23, %v3801_v1  ;;  %v1416_v33 = vmax.f32 %v1415_v61, %v3805_v34  ;;  %v1645_v38 = vadd.f32 %v1644_v55, %v3823_v32 }
 0x247   :  { %v2001_v17 = vadd.f32 %v2000_v52, %v1974_v19  ;;  %v4914_v42 = vpack.c.bf16 %v3310_v39, %v4862_v15  ;;  %v1980_v56 = vmul.f32 %v3823_v32, %v4915_v11  ;;  %v1985_v6 = vmul.f32 %v3826_v36, %v4916_v5  ;;  %v4920_v5 = vld [vmem:[#allocation20_spill] sm:$0xff] }
 0x248   :  { %vm1342_vm2 = vcmp.eq.s32.totalorder %v4893_v45, %v3801_v1  ;;  %v3842_v7 = vsel %vm1337_vm0, %v4888_v48, 0.0  ;;  %vm1354_vm3 = vcmp.eq.s32.totalorder %v4912_v14, %v3711_v50  ;;  %v1646_v61 = vadd.f32 %v1645_v38, %v3826_v36 }
 0x249   :  { %2439 = vmatprep.subr.msk.bf16.mxu0 %vm2438_vm15, %v4914_v42  ;;  %v2015_v55 = vadd.f32 %v2014_v41, %v1980_v56  ;;  %v3848_v39 = vsel %vm1342_vm2, %v4889_v20, 0.0  ;;  %vm2450_vm4 = vmpackc.low %vm1342_vm2, %vm1337_vm0  ;;  %vm2184_vm5 = vcmask 1040384   ;;  %v3850_v15 = vmin.f32 %v1300_v24, %v1301_v22  ;;  %v4919_v42 = vld [vmem:[#allocation12_spill] sm:$0xff] }
 0x24a   :  { %4917 = vst [vmem:[#allocation14_spill] sm:$0xff] %v3848_v39  ;;  %v1430_v19 = vmax.f32 %v1429_v27, %v3823_v32  ;;  %v4918_v52 = vpack.c.bf16 %v4889_v20, %v4888_v48  ;;  %v1962_v11 = vmul.f32 %v3842_v7, %v4919_v42  ;;  %v1967_v38 = vmul.f32 %v3848_v39, %v4920_v5 }
 0x24b   :  { %v2016_v41 = vadd.f32 %v2015_v55, %v1985_v6  ;;  %vm1359_vm6 = vcmp.eq.s32.totalorder %v4913_v13, %v3711_v50  ;;  %v3866_v24 = vsel %vm1354_vm3, %v4863_v28, 0.0  ;;  %vm1336_vm7 = vcmp.eq.s32.totalorder %v4892_v23, %v3812_v18  ;;  %v4922_v6 = vld [vmem:[#allocation27_spill] sm:$0xff]  ;;  %v4930_v23 = vld [vmem:[#allocation80_spill] sm:$0xff] }
 0x24c   :  { %2451 = vmatprep.subr.msk.bf16.mxu1 %vm2450_vm4, %v4918_v52  ;;  %v2038_v48 = vadd.f32 %v1967_v38, %v1962_v11  ;;  %v3871_v20 = vsel %vm1359_vm6, %v4864_v12, 0.0  ;;  %v1417_v22 = vmax.f32 %v1416_v33, %v3866_v24  ;;  %v1632_v27 = vadd.f32 %v1631_v60, %v3866_v24  ;;  %vm2441_vm8 = vmpackc.low %vm1359_vm6, %vm1354_vm3  ;;  %v4923_v52 = vld [vmem:[#allocation32_spill] sm:$0xff] }
 0x24d   :  { %v4921_v56 = vpack.c.bf16 %v4864_v12, %v4863_v28  ;;  %v1979_v55 = vmul.f32 %v3866_v24, %v4922_v6  ;;  %v1984_v42 = vmul.f32 %v3871_v20, %v4923_v52  ;;  %vm1341_vm9 = vcmp.eq.s32.totalorder %v4893_v45, %v3812_v18  ;;  %v4926_v28 = vld [vmem:[#allocation10_spill] sm:$0xff]  ;;  %v4929_v45 = vld [vmem:[#allocation81_spill] sm:$0xff] }
 0x24e   :  { %v3888_v33 = vsel %vm1336_vm7, %v4890_v3, 0.0  ;;  %v1431_v60 = vmax.f32 %v1430_v19, %v3826_v36  ;;  %v1633_v11 = vadd.f32 %v1632_v27, %v3871_v20  ;;  %v3893_v5 = vsel %vm1341_vm9, %v4891_v9, 0.0  ;;  %vm2453_vm10 = vmpackc.low %vm1341_vm9, %vm1336_vm7  ;;  %v4928_v19 = vld [vmem:[#allocation17_spill] sm:$0xff] }
 0x24f   :  { %2442 = vmatpush1.bf16.msk.msra.mxu0 %vm2441_vm8, %v4921_v56  ;;  %4924 = vst [vmem:[#allocation49_spill] sm:$0xff] %v3888_v33  ;;  %4925 = vst [vmem:[#allocation83_spill] sm:$0xff] %v3893_v5  ;;  %v1961_v12 = vmul.f32 %v3888_v33, %v4926_v28  ;;  %v1668_v38 = vadd.f32 %v3848_v39, %v3842_v7  ;;  %v1418_v56 = vmax.f32 %v1417_v22, %v3871_v20 }
 0x250   :  { %v2002_v6 = vadd.f32 %v2001_v17, %v1979_v55  ;;  %v4927_v52 = vpack.c.bf16 %v4891_v9, %v4890_v3  ;;  %v1966_v27 = vmul.f32 %v3893_v5, %v4928_v19  ;;  %vm1365_vm11 = vcmp.eq.s32.totalorder %v4929_v45, %v3717_v44 }
 0x251   :  { %vm1370_vm12 = vcmp.eq.s32.totalorder %v4930_v23, %v3717_v44  ;;  %v3912_v28 = vsel %vm2184_vm5, %v3699_v47, %v3717_v44  ;;  %vm1347_vm13 = vcmp.eq.s32.totalorder %v4905_v54, %v3801_v1  ;;  %v3919_v9 = vsel %vm1365_vm11, %v4894_v63, 0.0  ;;  %v4933_v44 = vld [vmem:[#allocation44_spill] sm:$0xff] }
 0x252   :  { %2454 = vmatpush1.bf16.msk.msra.mxu1 %vm2453_vm10, %v4927_v52  ;;  %4931 = vst [vmem:[#allocation79_spill] sm:$0xff] %v3912_v28  ;;  %v2003_v17 = vadd.f32 %v2002_v6, %v1984_v42  ;;  %v3916_v3 = vadd.f32 %v1966_v27, %v1961_v12  ;;  %v3922_v22 = vsel %vm1370_vm12, %v4895_v53, 0.0  ;;  %vm2444_vm14 = vmpackc.low %vm1370_vm12, %vm1365_vm11  ;;  %v1432_v55 = vmax.f32 %v1431_v60, %v3919_v9  ;;  %v4934_v12 = vld [vmem:[#allocation7_spill] sm:$0xff] }
 0x253   :  { %v1647_v52 = vadd.f32 %v1646_v61, %v3919_v9  ;;  %v4932_v47 = vpack.c.bf16 %v4895_v53, %v4894_v63  ;;  %v1990_v42 = vmul.f32 %v3919_v9, %v4933_v44  ;;  %v1995_v6 = vmul.f32 %v3922_v22, %v4934_v12 }
 0x254   :  { %vm1352_vm15 = vcmp.eq.s32.totalorder %v4906_v57, %v3801_v1  ;;  %v3939_v60 = vsel %vm1347_vm13, %v4897_v10, 0.0  ;;  %vm1364_vm0 = vcmp.eq.s32.totalorder %v4929_v45, %v3711_v50  ;;  %vm1369_vm2 = vcmp.eq.s32.totalorder %v4930_v23, %v3711_v50  ;;  %v4946_v45 = vld [vmem:[#allocation41_spill] sm:$0xff] }
 0x255   :  { %2445 = vmatprep.subr.msk.bf16.mxu0 %vm2444_vm14, %v4932_v47  ;;  %4935 = vst [vmem:[#allocation88_spill] sm:$0xff] %v3939_v60  ;;  %v1433_v63 = vmax.f32 %v1432_v55, %v3922_v22  ;;  %v3947_v53 = vadd.f32 %v1647_v52, %v3922_v22  ;;  %v2017_v61 = vadd.f32 %v2016_v41, %v1990_v42  ;;  %v3950_v19 = vsel %vm1352_vm15, %v4898_v16, 0.0  ;;  %vm2456_vm3 = vmpackc.low %vm1352_vm15, %vm1347_vm13  ;;  %v4940_v52 = vld [vmem:[#allocation24_spill] sm:$0xff]  ;;  %v4941_v42 = vld [vmem:[#allocation30_spill] sm:$0xff] }
 0x256   :  { %4937 = vst [vmem:[#allocation18_spill] sm:$0xff] %v3950_v19  ;;  %v4938_v27 = vrot.slane %v3684_v4, 4  ;;  %v1669_v44 = vadd.f32 %v1668_v38, %v3939_v60  ;;  %v4939_v55 = vpack.c.bf16 %v4898_v16, %v4897_v10  ;;  %v1972_v41 = vmul.f32 %v3939_v60, %v4940_v52  ;;  %vm2447_vm4 = vmpackc.low %vm1369_vm2, %vm1364_vm0 }
 0x257   :  { %4936 = vst [vmem:[#allocation75_spill] sm:$0xff] %v3947_v53  ;;  %v1977_v12 = vmul.f32 %v3950_v19, %v4941_v42  ;;  %v1434_v38 = vrot.slane %v1433_v63, 4  ;;  %v3979_v10 = vsel %vm1364_vm0, %v4900_v8, 0.0  ;;  %v4943_v16 = vpack.c.bf16 %v4874_v58, %v4900_v8 }
 0x258   :  { %v1004_v47 = vmin.f32 %v3684_v4, %v4938_v27  ;;  %2457 = vmatprep.subr.msk.bf16.mxu1 %vm2456_vm3, %v4939_v55  ;;  %v1303_v4 = vrot.slane %v3850_v15, 1  ;;  %v3973_v27 = vadd.f32 %v2017_v61, %v1995_v6  ;;  %v3987_v55 = vld [vmem:[%s4578_s2] sm:$0xff]  ;;  %v3990_v52 = vadd.f32 %v1669_v44, %v3950_v19 }
 0x259   :  { %2448 = vmatpush1.bf16.msk.msra.mxu0 %vm2447_vm4, %v4943_v16  ;;  %4944 = vst [vmem:[#allocation89_spill] sm:$0xff] %v3987_v55  ;;  %v2039_v6 = vadd.f32 %v2038_v48, %v1972_v41  ;;  %v3996_v61 = vsel %vm1369_vm2, %v4874_v58, 0.0  ;;  %v4945_v42 = vtrunc.f32 %v3694_v30  ;;  %v2505_v8 = vtrunc.f32 %v3701_v59  ;;  %v4947_v41 = vld [vmem:[#allocation4_spill] sm:$0xff] }
 0x25a   :  { %4942 = vst [vmem:[#allocation37_spill] sm:$0xff] %v3973_v27  ;;  %v1435_v16 = vmax.f32 %v1433_v63, %v1434_v38  ;;  %v1419_v53 = vmax.f32 %v1418_v56, %v3979_v10  ;;  %v1634_v44 = vadd.f32 %v1633_v11, %v3979_v10  ;;  %v1989_v48 = vmul.f32 %v3979_v10, %v4946_v45  ;;  %v4017_v11 = vld [vmem:[%s4578_s2 + $0x8] sm:$0xff]  ;;  %v4952_v38 = vld [vmem:[#allocation82_spill] sm:$0xff] }
 0x25b   :  { %v2500_v27 = vcvt.f32.s32 %v4945_v42  ;;  %v4002_v28 = vadd.f32 %v2039_v6, %v1977_v12  ;;  %v1994_v23 = vmul.f32 %v3996_v61, %v4947_v41  ;;  %v1005_v58 = vrot.slane %v1004_v47, 2  ;;  %4948 = vst [vmem:[#allocation97_spill] sm:$0xff] %v4017_v11 }
 0x25c   :  { %2256 = vmatmul.mubr.msk.f32.vlgmr.msra.gmra.mrb[24].mxu0 %vm1014_vm1, %v3987_v55  ;;  %v1304_v30 = vmin.f32 %v3850_v15, %v1303_v4  ;;  %v1436_v59 = vrot.slane %v1435_v16, 2  ;;  %v1420_v63 = vmax.f32 %v1419_v53, %v3996_v61  ;;  %v4020_v45 = vadd.f32 %v1634_v44, %v3996_v61  ;;  %v4951_v4 = vld [vmem:[#allocation73_spill] sm:$0xff] }
 0x25d   :  { %1780 = vmatprep.mubr.f32.mxu0 %v4882_v21  ;;  %v2004_v56 = vadd.f32 %v2003_v17, %v1989_v48  ;;  %v4024_v12 = vsel %vm2184_vm5, %v2500_v27, %v3711_v50  ;;  %vm1346_vm6 = vcmp.eq.s32.totalorder %v4905_v54, %v3812_v18  ;;  %v2458_v6 = vpack.c.bf16 %v4952_v38, %v4951_v4  ;;  %v4954_v50 = vld [vmem:[#allocation2_spill] sm:$0xff]  ;;  %v4956_v17 = vld [vmem:[#allocation93_spill] sm:$0xff] }
 0x25e   :  { %4949 = vst [vmem:[#allocation92_spill] sm:$0xff] %v4020_v45  ;;  %4950 = vst [vmem:[#allocation25_spill] sm:$0xff] %v4024_v12  ;;  %v1437_v15 = vmax.f32 %v1435_v16, %v1436_v59  ;;  %v1421_v53 = vrot.slane %v1420_v63, 4  ;;  %v1453_v42 = vmax.f32 %v3842_v7, %v3848_v39  ;;  %v1440_v44 = vmax.f32 %v3888_v33, %v3893_v5  ;;  %v4962_v21 = vld [vmem:[#allocation22_spill] sm:$0xff] }
 0x25f   :  { %v4034_v41 = vadd.f32 %v2004_v56, %v1994_v23  ;;  %vm1351_vm7 = vcmp.eq.s32.totalorder %v4906_v57, %v3812_v18  ;;  %v4049_v23 = vcvt.f32.s32 %v2505_v8  ;;  %v4051_v48 = vmin.f32 %v1004_v47, %v1005_v58 }
 0x260   :  { %2257 = vmatmul.mubr.msk.f32.gmra.mrb[26].mxu0 %vm1014_vm1, %v4017_v11  ;;  %v1438_v27 = vrot.slane %v1437_v15, 1  ;;  %v1422_v16 = vmax.f32 %v1420_v63, %v1421_v53  ;;  %vm2459_vm8 = vmpackc.low %vm1351_vm7, %vm1346_vm6  ;;  %v2517_v59 = vtrunc.f32 %v1304_v30  ;;  %v1655_v56 = vadd.f32 %v3893_v5, %v3888_v33  ;;  %v4958_v5 = vld [vmem:[#allocation74_spill] sm:$0xff]  ;;  %v4960_v33 = vld [vmem:[#allocation85_spill] sm:$0xff] }
 0x261   :  { %4953 = vst [vmem:[#allocation31_spill] sm:$0xff] %v4034_v41  ;;  %2366 = vmatprep.mubr.msk.f32.mxu0 %vm1014_vm1, %v3987_v55  ;;  %2460 = vmatpush1.bf16.msk.msra.mxu1 %vm2459_vm8, %v2458_v6  ;;  %v4059_v53 = vsel %vm1346_vm6, %v4951_v4, 0.0  ;;  %v4957_v41 = vld [vmem:[#allocation99_spill] sm:$0xff]  ;;  %v4065_v8 = vpack.c.bf16 %v4878_v51, %v3509_v29  ;;  %v1454_v47 = vmax.f32 %v1453_v42, %v3939_v60  ;;  %v4094_v11 = vsel %vm1351_vm7, %v4952_v38, 0.0  ;;  %v4963_v55 = vld [vmem:[#allocation28_spill] sm:$0xff] }
 0x262   :  { %v1439_v63 = vmax.f32 %v1437_v15, %v1438_v27  ;;  %4955 = vst [vmem:[#allocation26_spill] sm:$0xff] %v4059_v53  ;;  %v2461_v45 = vpack.c.bf16 %v4957_v41, %v4956_v17  ;;  %v4069_v58 = vmax.f32 %v1440_v44, %v4059_v53  ;;  %v1423_v4 = vrot.slane %v1422_v16, 2  ;;  %v4959_v15 = vld [vmem:[#allocation86_spill] sm:$0xff]  ;;  %v4961_v42 = vld [vmem:[#allocation91_spill] sm:$0xff] }
 0x263   :  { %v4079_v6 = vpack.c.bf16 %v3538_v40, %v3573_v31  ;;  %v4082_v27 = vcvt.f32.s32 %v2517_v59  ;;  %v1656_v44 = vadd.f32 %v1655_v56, %v4059_v53  ;;  %v1455_v59 = vmax.f32 %v1454_v47, %v3950_v19 }
 0x264   :  { %vm1480_vm9 = vcmp.ge.f32.partialorder %v3735_v62, %v1439_v63  ;;  %vm1485_vm10 = vcmp.ge.f32.partialorder %v3738_v46, %v1439_v63  ;;  %vm1490_vm11 = vcmp.ge.f32.partialorder %v4958_v5, %v1439_v63  ;;  %vm1495_vm12 = vcmp.ge.f32.partialorder %v3791_v43, %v1439_v63  ;;  %v4967_v43 = vld [vmem:[#allocation101_spill] sm:$0xff] }
 0x265   :  { %v1520_v62 = vsel %vm1480_vm9, %v4959_v15, 64.0  ;;  %v1525_v46 = vsel %vm1485_vm10, %v4960_v33, 64.0  ;;  %vm1500_vm13 = vcmp.ge.f32.partialorder %v3823_v32, %v1439_v63  ;;  %vm1505_vm14 = vcmp.ge.f32.partialorder %v3826_v36, %v1439_v63 }
 0x266   :  { %vm1510_vm15 = vcmp.ge.f32.partialorder %v3919_v9, %v1439_v63  ;;  %v1572_v5 = vmin.f32 %v1520_v62, %v1525_v46  ;;  %v1424_v30 = vmax.f32 %v1422_v16, %v1423_v4  ;;  %vm1515_vm0 = vcmp.ge.f32.partialorder %v3922_v22, %v1439_v63  ;;  %v4964_v62 = vld [vmem:[#allocation90_spill] sm:$0xff]  ;;  %v4965_v4 = vld [vmem:[#allocation96_spill] sm:$0xff] }
 0x267   :  { %v1530_v38 = vsel %vm1490_vm11, %v4961_v42, 64.0  ;;  %v4106_v12 = vadd.f32 %v1656_v44, %v4094_v11  ;;  %v1971_v60 = vmul.f32 %v4059_v53, %v4962_v21  ;;  %v1976_v56 = vmul.f32 %v4094_v11, %v4963_v55  ;;  %v4966_v21 = vld [vmem:[#allocation95_spill] sm:$0xff] }
 0x268   :  { %v1573_v47 = vmin.f32 %v1572_v5, %v1530_v38  ;;  %v1425_v19 = vrot.slane %v1424_v30, 1  ;;  %vm1357_vm2 = vcmp.eq.s32.totalorder %v4912_v14, %v3801_v1  ;;  %v1535_v16 = vsel %vm1495_vm12, %v4964_v62, 64.0 }
 0x269   :  { %v1540_v44 = vsel %vm1500_vm13, %v4965_v4, 64.0  ;;  %v2026_v46 = vadd.f32 %v3916_v3, %v1971_v60  ;;  %vm1362_vm3 = vcmp.eq.s32.totalorder %v4913_v13, %v3801_v1  ;;  %v1545_v55 = vsel %vm1505_vm14, %v4966_v21, 64.0  ;;  %v4968_v3 = vld [vmem:[#allocation100_spill] sm:$0xff] }
 0x26a   :  { %v1574_v5 = vmin.f32 %v1573_v47, %v1535_v16  ;;  %v1426_v38 = vmax.f32 %v1424_v30, %v1425_v19  ;;  %v4127_v53 = vsel %vm1357_vm2, %v4956_v17, 0.0  ;;  %vm2462_vm4 = vmpackc.low %vm1362_vm3, %vm1357_vm2  ;;  %v1550_v32 = vsel %vm1510_vm15, %v4967_v43, 64.0  ;;  %v4969_v17 = vld [vmem:[#allocation56_spill] sm:$0xff]  ;;  %v4970_v30 = vld [vmem:[#allocation66_spill] sm:$0xff] }
 0x26b   :  { %v1555_v60 = vsel %vm1515_vm0, %v4968_v3, 64.0  ;;  %v4138_v39 = vadd.f32 %v2026_v46, %v1976_v56  ;;  %v4141_v36 = vmax.f32 %v1455_v59, %v4127_v53  ;;  %2463 = vmatprep.subr.msk.bf16.mxu1 %vm2462_vm4, %v2461_v45  ;;  %v1671_v16 = vadd.f32 %v3990_v52, %v4127_v53 }
 0x26c   :  { %v1575_v19 = vmin.f32 %v1574_v5, %v1540_v44  ;;  %vm1479_vm6 = vcmp.ge.f32.partialorder %v4969_v17, %v1426_v38  ;;  %vm1484_vm7 = vcmp.ge.f32.partialorder %v4970_v30, %v1426_v38  ;;  %vm1489_vm8 = vcmp.ge.f32.partialorder %v3799_v2, %v1426_v38  ;;  %v4971_v44 = vld [vmem:[#allocation35_spill] sm:$0xff]  ;;  %v4972_v5 = vld [vmem:[#allocation45_spill] sm:$0xff] }
 0x26d   :  { %vm1494_vm9 = vcmp.ge.f32.partialorder %v3805_v34, %v1426_v38  ;;  %vm1499_vm10 = vcmp.ge.f32.partialorder %v3866_v24, %v1426_v38  ;;  %vm1504_vm11 = vcmp.ge.f32.partialorder %v3871_v20, %v1426_v38  ;;  %vm1509_vm12 = vcmp.ge.f32.partialorder %v3979_v10, %v1426_v38 }
 0x26e   :  { %v1576_v9 = vmin.f32 %v1575_v19, %v1545_v55  ;;  %vm1514_vm13 = vcmp.ge.f32.partialorder %v3996_v61, %v1426_v38  ;;  %v1519_v22 = vsel %vm1479_vm6, %v4959_v15, 64.0  ;;  %v1524_v45 = vsel %vm1484_vm7, %v4960_v33, 64.0 }
 0x26f   :  { %v1529_v63 = vsel %vm1489_vm8, %v4961_v42, 64.0  ;;  %v1534_v59 = vsel %vm1494_vm9, %v4964_v62, 64.0  ;;  %v1539_v2 = vsel %vm1499_vm10, %v4965_v4, 64.0  ;;  %v4160_v34 = vsel %vm1362_vm3, %v4957_v41, 0.0 }
 0x270   :  { %v1577_v24 = vmin.f32 %v1576_v9, %v1550_v32  ;;  %v1544_v20 = vsel %vm1504_vm11, %v4966_v21, 64.0  ;;  %v1549_v10 = vsel %vm1509_vm12, %v4967_v43, 64.0  ;;  %v1559_v61 = vmin.f32 %v1519_v22, %v1524_v45  ;;  %v4973_v32 = vld [vmem:[#allocation39_spill] sm:$0xff]  ;;  %v4975_v22 = vld [vmem:[#allocation53_spill] sm:$0xff] }
 0x271   :  { %v1554_v56 = vsel %vm1514_vm13, %v4968_v3, 64.0  ;;  %v1457_v47 = vmax.f32 %v4141_v36, %v4160_v34  ;;  %v1982_v46 = vmul.f32 %v4127_v53, %v4971_v44  ;;  %v1987_v38 = vmul.f32 %v4160_v34, %v4972_v5  ;;  %v4974_v36 = vld [vmem:[#allocation38_spill] sm:$0xff] }
 0x272   :  { %v1578_v55 = vmin.f32 %v1577_v24, %v1555_v60  ;;  %v1560_v41 = vmin.f32 %v1559_v61, %v1529_v63  ;;  %vm1338_vm14 = vcmp.eq.s32.totalorder %v4973_v32, %v4082_v27  ;;  %v1672_v19 = vadd.f32 %v1671_v16, %v4160_v34 }
 0x273   :  { %v2041_v17 = vadd.f32 %v4002_v28, %v1982_v46  ;;  %vm1343_vm15 = vcmp.eq.s32.totalorder %v4974_v36, %v4082_v27  ;;  %v4180_v52 = vsel %vm1338_vm14, %v3509_v29, 0.0  ;;  %v4976_v29 = vld [vmem:[#allocation51_spill] sm:$0xff]  ;;  %vm1356_vm2 = vcmp.eq.s32.totalorder %v4912_v14, %v3812_v18 }
 0x274   :  { %v1579_v30 = vrot.slane %v1578_v55, 4  ;;  %v1561_v9 = vmin.f32 %v1560_v41, %v1534_v59  ;;  %v4183_v60 = vsel %vm1343_vm15, %v4878_v51, 0.0  ;;  %vm2474_vm0 = vmpackc.low %vm1343_vm15, %vm1338_vm14  ;;  %v1963_v45 = vmul.f32 %v4180_v52, %v4975_v22 }
 0x275   :  { %v2042_v63 = vadd.f32 %v2041_v17, %v1987_v38  ;;  %v1466_v24 = vmax.f32 %v4180_v52, %v4183_v60  ;;  %v1681_v28 = vadd.f32 %v4183_v60, %v4180_v52  ;;  %2475 = vmatprep.subr.msk.bf16.mxu0 %vm2474_vm0, %v4065_v8  ;;  %v1968_v61 = vmul.f32 %v4976_v29, %v4183_v60  ;;  %v4980_v17 = vld [vmem:[#allocation33_spill] sm:$0xff] }
 0x276   :  { %v1580_v59 = vmin.f32 %v1578_v55, %v1579_v30  ;;  %v1562_v16 = vmin.f32 %v1561_v9, %v1539_v2  ;;  %vm1361_vm3 = vcmp.eq.s32.totalorder %v4913_v13, %v3812_v18  ;;  %2478 = vmatpush3.bf16.msk.msra.mxu0 %vm2474_vm0, %v4065_v8  ;;  %v4202_v44 = vsel %vm1356_vm2, %v4875_v25, 0.0  ;;  %v4977_v55 = vld [vmem:[#allocation81_spill] sm:$0xff]  ;;  %v4981_v30 = vld [vmem:[#allocation42_spill] sm:$0xff]  ;;  %v4982_v9 = vld [vmem:[#allocation80_spill] sm:$0xff] }
 0x277   :  { %v4199_v51 = vadd.f32 %v1968_v61, %v1963_v45  ;;  %v4205_v46 = vsel %vm1361_vm3, %v4876_v37, 0.0  ;;  %vm2465_vm4 = vmpackc.low %vm1361_vm3, %vm1356_vm2  ;;  %vm1367_vm6 = vcmp.eq.s32.totalorder %v4977_v55, %v3801_v1  ;;  %v4978_v5 = vmax.f32 %v4069_v58, %v4094_v11 }
 0x278   :  { %v1581_v2 = vrot.slane %v1580_v59, 2  ;;  %v1563_v41 = vmin.f32 %v1562_v16, %v1544_v20  ;;  %v1658_v8 = vadd.f32 %v4106_v12, %v4202_v44  ;;  %v4979_v32 = vpack.c.bf16 %v4876_v37, %v4875_v25 }
 0x279   :  { %v4213_v38 = vmax.f32 %v4978_v5, %v4202_v44  ;;  %vm2190_vm7 = vcmask 1041408   ;;  %v1981_v36 = vmul.f32 %v4202_v44, %v4980_v17  ;;  %v1986_v20 = vmul.f32 %v4205_v46, %v4981_v30 }
 0x27a   :  { %2466 = vmatpush1.bf16.msk.msra.mxu1 %vm2465_vm4, %v4979_v32  ;;  %vm1372_vm8 = vcmp.eq.s32.totalorder %v4982_v9, %v3801_v1  ;;  %v4230_v58 = vsel %vm1367_vm6, %v3504_v0, 0.0  ;;  %v1582_v12 = vmin.f32 %v1580_v59, %v1581_v2  ;;  %v1564_v22 = vmin.f32 %v1563_v41, %v1549_v10  ;;  %v4984_v41 = vld [vmem:[#allocation52_spill] sm:$0xff] }
 0x27b   :  { %v1444_v25 = vmax.f32 %v4213_v38, %v4205_v46  ;;  %v1659_v37 = vadd.f32 %v1658_v8, %v4205_v46  ;;  %vm2468_vm9 = vmpackc.low %vm1372_vm8, %vm1367_vm6  ;;  %v2028_v45 = vadd.f32 %v4138_v39, %v1981_v36  ;;  %v4240_v29 = vsel %vm1372_vm8, %v3559_v26, 0.0  ;;  %v4985_v38 = vld [vmem:[#allocation63_spill] sm:$0xff] }
 0x27c   :  { %v1458_v61 = vmax.f32 %v1457_v47, %v4230_v58  ;;  %v1673_v16 = vadd.f32 %v1672_v19, %v4230_v58  ;;  %v4983_v10 = vpack.c.bf16 %v3559_v26, %v3504_v0  ;;  %v1583_v59 = vrot.slane %v1582_v12, 1 }
 0x27d   :  { %v1565_v2 = vmin.f32 %v1564_v22, %v1554_v56  ;;  %v1992_v5 = vmul.f32 %v4230_v58, %v4984_v41  ;;  %v1997_v8 = vmul.f32 %v4240_v29, %v4985_v38  ;;  %v4251_v39 = vadd.f32 %v2028_v45, %v1986_v20  ;;  %v4987_v41 = vld [vmem:[#allocation79_spill] sm:$0xff] }
 0x27e   :  { %2469 = vmatprep.subr.msk.bf16.mxu1 %vm2468_vm9, %v4983_v10  ;;  %v1459_v32 = vmax.f32 %v1458_v61, %v4240_v29  ;;  %v1674_v47 = vadd.f32 %v1673_v16, %v4240_v29  ;;  %v4258_v19 = vsel %vm2184_vm5, %v4049_v23, %v3801_v1  ;;  %v1584_v0 = vmin.f32 %v1582_v12, %v1583_v59  ;;  %v4986_v16 = vld [vmem:[#allocation64_spill] sm:$0xff] }
 0x27f   :  { %v1566_v26 = vrot.slane %v1565_v2, 4  ;;  %v2043_v56 = vadd.f32 %v2042_v63, %v1992_v5  ;;  %vm1348_vm10 = vcmp.eq.s32.totalorder %v4905_v54, %v4082_v27  ;;  %vm1353_vm11 = vcmp.eq.s32.totalorder %v4906_v57, %v4082_v27 }
 0x280   :  { %v1460_v17 = vrot.slane %v1459_v32, 4  ;;  %v1675_v36 = vrot.slane %v1674_v47, 4  ;;  %v4265_v30 = vsel %vm1348_vm10, %v3573_v31, 0.0  ;;  %v2521_v20 = vtrunc.f32 %v1584_v0  ;;  %vm2480_vm12 = vmpackc.low %vm1353_vm11, %vm1348_vm10 }
 0x281   :  { %v1567_v22 = vmin.f32 %v1565_v2, %v1566_v26  ;;  %v2044_v45 = vadd.f32 %v2043_v56, %v1997_v8  ;;  %v4268_v1 = vsel %vm1353_vm11, %v3538_v40, 0.0  ;;  %v4271_v12 = vmax.f32 %v1466_v24, %v4265_v30  ;;  %2481 = vmatprep.subr.msk.bf16.mxu0 %vm2480_vm12, %v4079_v6  ;;  %v4988_v8 = vld [vmem:[#allocation61_spill] sm:$0xff] }
 0x282   :  { %v1461_v23 = vmax.f32 %v1459_v32, %v1460_v17  ;;  %v1676_v63 = vadd.f32 %v1675_v36, %v1674_v47  ;;  %v1682_v54 = vadd.f32 %v1681_v28, %v4265_v30  ;;  %v2522_v57 = vcvt.f32.s32 %v2521_v20  ;;  %2484 = vmatpush3.bf16.msk.msra.mxu0 %vm2480_vm12, %v4079_v6 }
 0x283   :  { %v1568_v61 = vrot.slane %v1567_v22, 2  ;;  %v2045_v31 = vrot.slane %v2044_v45, 4  ;;  %v1973_v10 = vmul.f32 %v4265_v30, %v4986_v16  ;;  %v1468_v2 = vmax.f32 %v4271_v12, %v4268_v1  ;;  %v4992_v16 = vld [vmem:[#allocation50_spill] sm:$0xff] }
 0x284   :  { %v1462_v40 = vrot.slane %v1461_v23, 2  ;;  %v1677_v59 = vrot.slane %v1676_v63, 2  ;;  %v4281_v24 = vadd.f32 %v1682_v54, %v4268_v1  ;;  %v2192_v28 = vsel %vm2190_vm7, %v4987_v41, %v2522_v57  ;;  %v4994_v41 = vld [vmem:[#allocation59_spill] sm:$0xff] }
 0x285   :  { %v1569_v5 = vmin.f32 %v1567_v22, %v1568_v61  ;;  %v2046_v38 = vadd.f32 %v2045_v31, %v2044_v45  ;;  %v1978_v32 = vmul.f32 %v4988_v8, %v4268_v1  ;;  %v2052_v6 = vadd.f32 %v4199_v51, %v1973_v10 }
 0x286   :  { %v1463_v47 = vmax.f32 %v1461_v23, %v1462_v40  ;;  %v1678_v0 = vadd.f32 %v1677_v59, %v1676_v63  ;;  %vm1366_vm13 = vcmp.eq.s32.totalorder %v4977_v55, %v3812_v18  ;;  %vm1371_vm14 = vcmp.eq.s32.totalorder %v4982_v9, %v3812_v18  ;;  %v4993_v40 = vld [vmem:[#allocation60_spill] sm:$0xff] }
 0x287   :  { %v1570_v26 = vrot.slane %v1569_v5, 1  ;;  %v2047_v56 = vrot.slane %v2046_v38, 2  ;;  %v4293_v17 = vsel %vm1366_vm13, %v4880_v49, 0.0  ;;  %v4989_v36 = vrot.slane %v4051_v48, 1  ;;  %vm2471_vm15 = vmpackc.low %vm1371_vm14, %vm1366_vm13 }
 0x288   :  { %v1464_v22 = vrot.slane %v1463_v47, 1  ;;  %v4300_v45 = vadd.f32 %v2052_v6, %v1978_v32  ;;  %v4303_v51 = vsel %vm1371_vm14, %v3535_v35, 0.0  ;;  %v4990_v23 = vrot.slane %v4954_v50, 4  ;;  %v4998_v6 = vld [vmem:[#allocation40_spill] sm:$0xff] }
 0x289   :  { %v4298_v20 = vmin.f32 %v4051_v48, %v4989_v36  ;;  %v1571_v54 = vmin.f32 %v1569_v5, %v1570_v26  ;;  %v1445_v57 = vmax.f32 %v1444_v25, %v4293_v17  ;;  %v1660_v61 = vadd.f32 %v1659_v37, %v4293_v17  ;;  %v4999_v26 = vld [vmem:[#allocation70_spill] sm:$0xff] }
 0x28a   :  { %v4308_v63 = vmin.f32 %v4954_v50, %v4990_v23  ;;  %v4991_v48 = vpack.c.bf16 %v3535_v35, %v4880_v49  ;;  %v4315_v31 = vmax.f32 %v1463_v47, %v1464_v22  ;;  %v1991_v10 = vmul.f32 %v4293_v17, %v4992_v16  ;;  %v4995_v50 = vld [vmem:[#allocation65_spill] sm:$0xff]  ;;  %v4996_v49 = vld [vmem:[#allocation14_spill] sm:$0xff] }
 0x28b   :  { %v1996_v59 = vmul.f32 %v4303_v51, %v4993_v40  ;;  %v2485_v8 = vpack.c.bf16 %v4995_v50, %v4994_v41  ;;  %v2519_v5 = vtrunc.f32 %v1571_v54  ;;  %v1679_v32 = vrot.slane %v1678_v0, 1  ;;  %v4997_v47 = vld [vmem:[#allocation89_spill] sm:$0xff] }
 0x28c   :  { %2472 = vmatpush1.bf16.msk.msra.mxu1 %vm2471_vm15, %v4991_v48  ;;  %v4323_v25 = vadd.f32 %v2047_v56, %v2046_v38  ;;  %v1661_v37 = vadd.f32 %v1660_v61, %v4303_v51  ;;  %v2507_v35 = vtrunc.f32 %v4298_v20  ;;  %vm1482_vm0 = vcmp.ge.f32.partialorder %v3842_v7, %v4315_v31  ;;  %v5000_v38 = vld [vmem:[#allocation88_spill] sm:$0xff]  ;;  %v5001_v56 = vld [vmem:[#allocation18_spill] sm:$0xff]  ;;  %v5003_v48 = vld [vmem:[#allocation25_spill] sm:$0xff] }
 0x28d   :  { %vm1487_vm2 = vcmp.ge.f32.partialorder %v4996_v49, %v4315_v31  ;;  %v4335_v36 = vpack.c.bf16 %v4999_v26, %v4998_v6  ;;  %v2520_v22 = vcvt.f32.s32 %v2519_v5  ;;  %vm1492_vm3 = vcmp.ge.f32.partialorder %v5000_v38, %v4315_v31 }
 0x28e   :  { %vm1497_vm4 = vcmp.ge.f32.partialorder %v5001_v56, %v4315_v31  ;;  %v1446_v23 = vmax.f32 %v1445_v57, %v4303_v51  ;;  %v5002_v7 = vmov 0.0   ;;  %vm1502_vm6 = vcmp.ge.f32.partialorder %v4127_v53, %v4315_v31 }
 0x28f   :  { %2274 = vmatmul.mubr.msk.f32.vlgmr.msra.gmra.mrb[22].mxu1 %vm1014_vm1, %v4997_v47  ;;  %vm1507_vm8 = vcmp.ge.f32.partialorder %v4160_v34, %v4315_v31  ;;  %v1522_v54 = vsel %vm1482_vm0, %v4959_v15, 64.0  ;;  %v1527_v61 = vsel %vm1487_vm2, %v4960_v33, 64.0  ;;  %v2191_v16 = vsel %vm2190_vm7, %v5003_v48, %v2520_v22  ;;  %v5004_v47 = vld [vmem:[#allocation97_spill] sm:$0xff] }
 0x290   :  { %1857 = vmatprep.mubr.f32.mxu1 %v5002_v7  ;;  %vm1512_vm9 = vcmp.ge.f32.partialorder %v4230_v58, %v4315_v31  ;;  %v1680_v40 = vadd.f32 %v1679_v32, %v1678_v0  ;;  %v2049_v57 = vrot.slane %v4323_v25, 1  ;;  %v2196_v5 = vcombine.low %v2191_v16, %v2192_v28 }
 0x291   :  { %vm1517_vm10 = vcmp.ge.f32.partialorder %v4240_v29, %v4315_v31  ;;  %v1532_v53 = vsel %vm1492_vm3, %v4961_v42, 64.0  ;;  %v1537_v34 = vsel %vm1497_vm4, %v4964_v62, 64.0  ;;  %v1598_v49 = vmin.f32 %v1522_v54, %v1527_v61  ;;  %v5010_v29 = vld [vmem:[#allocation83_spill] sm:$0xff] }
 0x292   :  { %v1542_v22 = vsel %vm1502_vm6, %v4965_v4, 64.0  ;;  %v1547_v38 = vsel %vm1507_vm8, %v4966_v21, 64.0  ;;  %v1447_v58 = vrot.slane %v1446_v23, 4  ;;  %v1662_v0 = vrot.slane %v1661_v37, 4  ;;  %2198 = vst [vmem:[%s4579_s10] sm:$0x77] %v2196_v5 }
 0x293   :  { %2275 = vmatmul.mubr.msk.f32.gmra.mrb[24].mxu1 %vm1014_vm1, %v5004_v47  ;;  %v1552_v28 = vsel %vm1512_vm9, %v4967_v43, 64.0  ;;  %v1599_v32 = vmin.f32 %v1598_v49, %v1532_v53  ;;  %v2030_v56 = vadd.f32 %v4251_v39, %v1991_v10  ;;  %vm1358_vm11 = vcmp.eq.s32.totalorder %v4912_v14, %v4082_v27  ;;  %v5006_v53 = vld [vmem:[#allocation69_spill] sm:$0xff] }
 0x294   :  { %v1448_v7 = vmax.f32 %v1446_v23, %v1447_v58  ;;  %v1663_v54 = vadd.f32 %v1662_v0, %v1661_v37  ;;  %vm1363_vm12 = vcmp.eq.s32.totalorder %v4913_v13, %v4082_v27  ;;  %v4372_v61 = vsel %vm1358_vm11, %v4994_v41, 0.0  ;;  %v5005_v13 = vld [vmem:[#allocation72_spill] sm:$0xff] }
 0x295   :  { %v1600_v48 = vmin.f32 %v1599_v32, %v1537_v34  ;;  %v2031_v16 = vadd.f32 %v2030_v56, %v1996_v59  ;;  %v4375_v5 = vsel %vm1363_vm12, %v4995_v50, 0.0  ;;  %v1469_v39 = vmax.f32 %v1468_v2, %v4372_v61  ;;  %vm2486_vm13 = vmpackc.low %vm1363_vm12, %vm1358_vm11 }
 0x296   :  { %v1449_v14 = vrot.slane %v1448_v7, 2  ;;  %v1664_v10 = vrot.slane %v1663_v54, 2  ;;  %v1684_v37 = vadd.f32 %v4281_v24, %v4372_v61  ;;  %2487 = vmatprep.subr.msk.bf16.mxu0 %vm2486_vm13, %v2485_v8  ;;  %v1983_v41 = vmul.f32 %v4372_v61, %v5005_v13 }
 0x297   :  { %v1601_v23 = vmin.f32 %v1600_v48, %v1542_v22  ;;  %v2032_v59 = vrot.slane %v2031_v16, 4  ;;  %v1470_v50 = vmax.f32 %v1469_v39, %v4375_v5  ;;  %v1988_v34 = vmul.f32 %v5006_v53, %v4375_v5  ;;  %2490 = vmatpush3.bf16.msk.msra.mxu0 %vm2486_vm13, %v2485_v8 }
 0x298   :  { %v1450_v12 = vmax.f32 %v1448_v7, %v1449_v14  ;;  %v1665_v2 = vadd.f32 %v1664_v10, %v1663_v54  ;;  %v1685_v49 = vadd.f32 %v1684_v37, %v4375_v5  ;;  %v2054_v58 = vadd.f32 %v4300_v45, %v1983_v41  ;;  %v5009_v14 = vld [vmem:[#allocation49_spill] sm:$0xff]  ;;  %v5011_v37 = vld [vmem:[#allocation26_spill] sm:$0xff] }
 0x299   :  { %v1602_v0 = vmin.f32 %v1601_v23, %v1547_v38  ;;  %v2033_v24 = vadd.f32 %v2032_v59, %v2031_v16  ;;  %vm1368_vm14 = vcmp.eq.s32.totalorder %v4977_v55, %v4082_v27  ;;  %vm1373_vm15 = vcmp.eq.s32.totalorder %v4982_v9, %v4082_v27  ;;  %v5007_v38 = vld [vmem:[#allocation77_spill] sm:$0xff]  ;;  %v5008_v16 = vld [vmem:[#allocation76_spill] sm:$0xff] }
 0x29a   :  { %v1451_v22 = vrot.slane %v1450_v12, 1  ;;  %v1666_v32 = vrot.slane %v1665_v2, 1  ;;  %v2055_v56 = vadd.f32 %v2054_v58, %v1988_v34  ;;  %v4395_v48 = vsel %vm1368_vm14, %v4998_v6, 0.0  ;;  %vm2492_vm0 = vmpackc.low %vm1373_vm15, %vm1368_vm14 }
 0x29b   :  { %v1603_v8 = vmin.f32 %v1602_v0, %v1552_v28  ;;  %2616 = vrcp.f32 %v1680_v40  ;;  %v4398_v7 = vsel %vm1373_vm15, %v4999_v26, 0.0  ;;  %v1471_v45 = vmax.f32 %v1470_v50, %v4395_v48  ;;  %2493 = vmatprep.subr.msk.bf16.mxu0 %vm2492_vm0, %v4335_v36 }
 0x29c   :  { %v1557_v55 = vsel %vm1517_vm10, %v4968_v3, 64.0  ;;  %v4406_v9 = vmax.f32 %v1450_v12, %v1451_v22  ;;  %v1686_v6 = vadd.f32 %v1685_v49, %v4395_v48  ;;  %v1993_v28 = vmul.f32 %v4395_v48, %v5007_v38  ;;  %2496 = vmatpush3.bf16.msk.msra.mxu0 %vm2492_vm0, %v4335_v36 }
 0x29d   :  { %v1604_v26 = vmin.f32 %v1603_v8, %v1557_v55  ;;  %v2034_v40 = vrot.slane %v2033_v24, 2  ;;  %v1472_v54 = vmax.f32 %v1471_v45, %v4398_v7  ;;  %v1998_v39 = vmul.f32 %v5008_v16, %v4398_v7 }
 0x29e   :  { %vm1481_vm2 = vcmp.ge.f32.partialorder %v5009_v14, %v4406_v9  ;;  %vm1486_vm3 = vcmp.ge.f32.partialorder %v5010_v29, %v4406_v9  ;;  %v1667_v31 = vadd.f32 %v1666_v32, %v1665_v2  ;;  %v979_v36 = vrot.slane %v4308_v63, 2 }
 0x29f   :  { %v1605_v10 = vrot.slane %v1604_v26, 4  ;;  %2367 = vmatmul.mubr.msk.f32.vlgmr.msra.gmra.mrb[28].mxu0 %vm1014_vm1, %v5004_v47  ;;  %vm1491_vm4 = vcmp.ge.f32.partialorder %v5011_v37, %v4406_v9  ;;  %v1521_v13 = vsel %vm1481_vm2, %v4959_v15, 64.0  ;;  %v1526_v41 = vsel %vm1486_vm3, %v4960_v33, 64.0 }
 0x2a0   :  { %v2508_v23 = vcvt.f32.s32 %v2507_v35  ;;  %v2050_v50 = vadd.f32 %v2049_v57, %v4323_v25  ;;  %v2035_v53 = vadd.f32 %v2034_v40, %v2033_v24  ;;  %vm1496_vm1 = vcmp.ge.f32.partialorder %v4094_v11, %v4406_v9 }
 0x2a1   :  { %v1606_v59 = vmin.f32 %v1604_v26, %v1605_v10  ;;  %vm1501_vm6 = vcmp.ge.f32.partialorder %v4202_v44, %v4406_v9  ;;  %v1585_v47 = vmin.f32 %v1521_v13, %v1526_v41  ;;  %2618 = vrcp.f32 %v1667_v31 }
 0x2a2   :  { %v1531_v12 = vsel %vm1491_vm4, %v4961_v42, 64.0  ;;  %v1473_v2 = vrot.slane %v1472_v54, 4  ;;  %v1687_v20 = vadd.f32 %v1686_v6, %v4398_v7  ;;  %vm1506_vm8 = vcmp.ge.f32.partialorder %v4205_v46, %v4406_v9 }
 0x2a3   :  { %v1607_v34 = vrot.slane %v1606_v59, 2  ;;  %v1586_v35 = vmin.f32 %v1585_v47, %v1531_v12  ;;  %v2056_v25 = vadd.f32 %v2055_v56, %v1993_v28  ;;  %v4441_v57 = vsel %vm2184_vm5, %v2508_v23, %v4082_v27 }
 0x2a4   :  { %v1536_v58 = vsel %vm1496_vm1, %v4964_v62, 64.0  ;;  %v1474_v0 = vmax.f32 %v1472_v54, %v1473_v2  ;;  %v1688_v24 = vrot.slane %v1687_v20, 4  ;;  %vm1511_vm9 = vcmp.ge.f32.partialorder %v4293_v17, %v4406_v9 }
 0x2a5   :  { %v4443_v11 = vpop.eup %2616  ;;  %v1608_v49 = vmin.f32 %v1606_v59, %v1607_v34  ;;  %v1541_v22 = vsel %vm1501_vm6, %v4965_v4, 64.0  ;;  %v1587_v32 = vmin.f32 %v1586_v35, %v1536_v58  ;;  %v2057_v56 = vadd.f32 %v2056_v25, %v1998_v39 }
 0x2a6   :  { %v2036_v27 = vrot.slane %v2035_v53, 1  ;;  %v1475_v45 = vrot.slane %v1474_v0, 2  ;;  %v1689_v55 = vadd.f32 %v1688_v24, %v1687_v20  ;;  %v980_v6 = vmin.f32 %v4308_v63, %v979_v36 }
 0x2a7   :  { %v1609_v8 = vrot.slane %v1608_v49, 1  ;;  %v1588_v38 = vmin.f32 %v1587_v32, %v1541_v22  ;;  %v4454_v28 = vmul.f32 %v4443_v11, %v2050_v50  ;;  %v1546_v40 = vsel %vm1506_vm8, %v4966_v21, 64.0 }
 0x2a8   :  { %v1476_v44 = vmax.f32 %v1474_v0, %v1475_v45  ;;  %v1690_v54 = vrot.slane %v1689_v55, 2  ;;  %vm1516_vm10 = vcmp.ge.f32.partialorder %v4303_v51, %v4406_v9  ;;  %v1551_v63 = vsel %vm1511_vm9, %v4967_v43, 64.0 }
 0x2a9   :  { %v1610_v26 = vmin.f32 %v1608_v49, %v1609_v8  ;;  %v1589_v16 = vmin.f32 %v1588_v38, %v1546_v40  ;;  %v2058_v39 = vrot.slane %v2057_v56, 4  ;;  %v2037_v10 = vadd.f32 %v2036_v27, %v2035_v53 }
 0x2aa   :  { %v1477_v29 = vrot.slane %v1476_v44, 1  ;;  %v1691_v31 = vadd.f32 %v1690_v54, %v1689_v55  ;;  %v1556_v13 = vsel %vm1516_vm10, %v4968_v3, 64.0  ;;  %v981_v23 = vrot.slane %v980_v6, 1 }
 0x2ab   :  { %v2525_v14 = vtrunc.f32 %v1610_v26  ;;  %v4466_v36 = vpop.eup %2618  ;;  %v1590_v46 = vmin.f32 %v1589_v16, %v1551_v63  ;;  %v2059_v9 = vadd.f32 %v2058_v39, %v2057_v56  ;;  %v5012_v39 = vld [vmem:[#allocation92_spill] sm:$0xff] }
 0x2ac   :  { %v1478_v41 = vmax.f32 %v1476_v44, %v1477_v29  ;;  %v4470_v51 = vmul.f32 %v4466_v36, %v2037_v10  ;;  %v1692_v17 = vrot.slane %v1691_v31, 1  ;;  %v982_v20 = vmin.f32 %v980_v6, %v981_v23  ;;  %v5013_v29 = vld [vmem:[#allocation75_spill] sm:$0xff] }
 0x2ad   :  { %v2526_v37 = vcvt.f32.s32 %v2525_v14  ;;  %v1591_v59 = vmin.f32 %v1590_v46, %v1556_v13  ;;  %v1636_v14 = vrot.slane %v5012_v39, 4 }
 0x2ae   :  { %vm1483_vm11 = vcmp.ge.f32.partialorder %v4180_v52, %v1478_v41  ;;  %vm1488_vm12 = vcmp.ge.f32.partialorder %v4183_v60, %v1478_v41  ;;  %vm1493_vm13 = vcmp.ge.f32.partialorder %v4265_v30, %v1478_v41  ;;  %vm1498_vm14 = vcmp.ge.f32.partialorder %v4268_v1, %v1478_v41 }
 0x2af   :  { %v2194_v50 = vsel %vm2190_vm7, %v4258_v19, %v2526_v37  ;;  %v1592_v53 = vrot.slane %v1591_v59, 4  ;;  %vm1503_vm15 = vcmp.ge.f32.partialorder %v4372_v61, %v1478_v41  ;;  %vm1508_vm0 = vcmp.ge.f32.partialorder %v4375_v5, %v1478_v41 }
 0x2b0   :  { %vm1513_vm2 = vcmp.ge.f32.partialorder %v4395_v48, %v1478_v41  ;;  %vm1518_vm3 = vcmp.ge.f32.partialorder %v4398_v7, %v1478_v41  ;;  %v1523_v47 = vsel %vm1483_vm11, %v4959_v15, 64.0  ;;  %v1528_v19 = vsel %vm1488_vm12, %v4960_v33, 64.0 }
 0x2b1   :  { %v1593_v52 = vmin.f32 %v1591_v59, %v1592_v53  ;;  %v1611_v34 = vmin.f32 %v1523_v47, %v1528_v19  ;;  %v2060_v60 = vrot.slane %v2059_v9, 2  ;;  %v1533_v30 = vsel %vm1493_vm13, %v4961_v42, 64.0  ;;  %v5015_v47 = vld [vmem:[#allocation37_spill] sm:$0xff] }
 0x2b2   :  { %v1693_v2 = vadd.f32 %v1692_v17, %v1691_v31  ;;  %v1538_v49 = vsel %vm1498_vm14, %v4964_v62, 64.0  ;;  %v1543_v33 = vsel %vm1503_vm15, %v4965_v4, 64.0  ;;  %v2503_v24 = vtrunc.f32 %v982_v20 }
 0x2b3   :  { %v1594_v12 = vrot.slane %v1593_v52, 2  ;;  %v1612_v35 = vmin.f32 %v1611_v34, %v1533_v30  ;;  %v2061_v0 = vadd.f32 %v2060_v60, %v2059_v9  ;;  %v1548_v42 = vsel %vm1508_vm0, %v4966_v21, 64.0 }
 0x2b4   :  { %2620 = vrcp.f32 %v1693_v2  ;;  %v1553_v62 = vsel %vm1513_vm2, %v4967_v43, 64.0  ;;  %v2504_v1 = vcvt.f32.s32 %v2503_v24  ;;  %v1558_v4 = vsel %vm1518_vm3, %v4968_v3, 64.0 }
 0x2b5   :  { %v1595_v25 = vmin.f32 %v1593_v52, %v1594_v12  ;;  %v1613_v58 = vmin.f32 %v1612_v35, %v1538_v49  ;;  %v2062_v8 = vrot.slane %v2061_v0, 1  ;;  %v1649_v31 = vrot.slane %v5013_v29, 4 }
 0x2b6   :  { %v2187_v61 = vsel %vm2184_vm5, %v2504_v1, %v3812_v18  ;;  %v1637_v10 = vadd.f32 %v1636_v14, %v5012_v39  ;;  %v2019_v19 = vrot.slane %v5015_v47, 4  ;;  %v5016_v14 = vld [vmem:[#allocation5_spill] sm:$0xff] }
 0x2b7   :  { %v1596_v15 = vrot.slane %v1595_v25, 1  ;;  %v1614_v22 = vmin.f32 %v1613_v58, %v1543_v33  ;;  %v2063_v5 = vadd.f32 %v2062_v8, %v2061_v0  ;;  %v1650_v46 = vadd.f32 %v1649_v31, %v5013_v29 }
 0x2b8   :  { %v1638_v37 = vrot.slane %v1637_v10, 2  ;;  %v2020_v34 = vadd.f32 %v2019_v19, %v5015_v47 }
 0x2b9   :  { %v1597_v32 = vmin.f32 %v1595_v25, %v1596_v15  ;;  %v1615_v56 = vmin.f32 %v1614_v22, %v1548_v42  ;;  %v1651_v13 = vrot.slane %v1650_v46, 2 }
 0x2ba   :  { %v1639_v41 = vadd.f32 %v1638_v37, %v1637_v10  ;;  %v2021_v30 = vrot.slane %v2020_v34, 2  ;;  %v5017_v10 = vld [vmem:[#allocation8_spill] sm:$0xff] }
 0x2bb   :  { %v2523_v27 = vtrunc.f32 %v1597_v32  ;;  %v1616_v45 = vmin.f32 %v1615_v56, %v1553_v62  ;;  %v1652_v23 = vadd.f32 %v1651_v13, %v1650_v46 }
 0x2bc   :  { %v1640_v59 = vrot.slane %v1639_v41, 1  ;;  %v2022_v0 = vadd.f32 %v2021_v30, %v2020_v34 }
 0x2bd   :  { %v2524_v55 = vcvt.f32.s32 %v2523_v27  ;;  %v1617_v6 = vmin.f32 %v1616_v45, %v1558_v4  ;;  %v1653_v17 = vrot.slane %v1652_v23, 1 }
 0x2be   :  { %v4502_v21 = vpop.eup %2620  ;;  %v1641_v9 = vadd.f32 %v1640_v59, %v1639_v41  ;;  %v2023_v8 = vrot.slane %v2022_v0, 1 }
 0x2bf   :  { %v2193_v38 = vsel %vm2190_vm7, %v2187_v61, %v2524_v55  ;;  %v1618_v40 = vrot.slane %v1617_v6, 4  ;;  %v4506_v43 = vmul.f32 %v4502_v21, %v2063_v5 }
 0x2c0   :  { %v2197_v26 = vcombine.low %v2193_v38, %v2194_v50  ;;  %2622 = vrcp.f32 %v1641_v9  ;;  %v5014_v50 = vld [vmem:[#allocation31_spill] sm:$0xff]  ;;  %v2024_v61 = vadd.f32 %v2023_v8, %v2022_v0 }
 0x2c1   :  { %v1619_v48 = vmin.f32 %v1617_v6, %v1618_v40  ;;  %v2006_v53 = vrot.slane %v5014_v50, 4 }
 0x2c2   :  { %2199 = vst [vmem:[%s4579_s10 + $0x8] sm:$0x77] %v2197_v26 }
 0x2c3   :  { %v1620_v3 = vrot.slane %v1619_v48, 2  ;;  %v2007_v52 = vadd.f32 %v2006_v53, %v5014_v50 }
 0x2c5   :  { %v1621_v7 = vmin.f32 %v1619_v48, %v1620_v3  ;;  %v2008_v60 = vrot.slane %v2007_v52, 2 }
 0x2c7   :  { %v1622_v44 = vrot.slane %v1621_v7, 1  ;;  %v2009_v58 = vadd.f32 %v2008_v60, %v2007_v52 }
 0x2c9   :  { %v1623_v18 = vmin.f32 %v1621_v7, %v1622_v44  ;;  %v2010_v32 = vrot.slane %v2009_v58, 1 }
 0x2ca   :  { %v2623_v12 = vpop.eup %2622 }
 0x2cb   :  { %v2527_v54 = vtrunc.f32 %v1623_v18  ;;  %v2011_v55 = vadd.f32 %v2010_v32, %v2009_v58  ;;  %v2144_v32 = vlaneseq }
 0x2cd   :  { %v2528_v63 = vcvt.f32.s32 %v2527_v54  ;;  %v2064_v5 = vmul.f32 %v2623_v12, %v2011_v55  ;;  %vm2181_vm5 = vcmp.lt.s32.totalorder %v2144_v32, 640 }
 0x2cf   :  { %v2195_v16 = vsel %vm2190_vm7, %v4441_v57, %v2528_v63  ;;  %v1654_v57 = vadd.f32 %v1653_v17, %v1652_v23  ;;  %v2114_v44 = vmul.f32 2.0, %v2064_v5 }
 0x2d0   :  { %2200 = vst [vmem:[%s4579_s10 + $0x10] sm:$0x7] %v2195_v16 }
 0x2d1   :  { %2624 = vrcp.f32 %v1654_v57  ;;  %v2119_v29 = vsub.f32 %v5016_v14, %v2114_v44 }
 0x2db   :  { %v2625_v20 = vpop.eup %2624 }
 0x2dc   :  { %v2065_v26 = vmul.f32 %v2625_v20, %v2024_v61 }
 0x2de   :  { %v2115_v54 = vmul.f32 2.0, %v2065_v26 }
 0x2e0   :  { %v2120_v46 = vsub.f32 %v5017_v10, %v2115_v54 }
 0x32f   :  { %v1776_v2 = vpop.f32.mrb[24].mxu0 }
 0x330   :  { %v1939_v35 = vmul.f32 %v2623_v12, %v1776_v2  ;;  %v1778_v25 = vpop.f32.mrb[25].mxu0 }
 0x331   :  { %v1940_v49 = vmul.f32 %v2625_v20, %v1778_v25 }
 0x332   :  { %1949 = vst [vmem:[%s4580_s8] sm:$0xff] %v1939_v35  ;;  %v2069_v42 = vmul.f32 %v1939_v35, %v1939_v35 }
 0x333   :  { %1950 = vst [vmem:[%s4580_s8 + $0x8] sm:$0xff] %v1940_v49  ;;  %v1782_v15 = vpop.f32.mrb[26].mxu0  ;;  %v2070_v27 = vmul.f32 %v1940_v49, %v1940_v49 }
 0x334   :  { %v1944_v33 = vmul.f32 %v2623_v12, %v1782_v15  ;;  %v1784_v24 = vpop.f32.mrb[27].mxu0  ;;  %v2116_v15 = vmul.f32 2.0, %v4470_v51 }
 0x335   :  { %v1945_v22 = vmul.f32 %v2625_v20, %v1784_v24  ;;  %v2630_v24 = vmov 1966171168  }
 0x336   :  { %1954 = vst [vmem:[%s4580_s8 + $0x28] sm:$0xff] %v1944_v33  ;;  %v2074_v56 = vmul.f32 %v1944_v33, %v1944_v33  ;;  %v2117_v33 = vmul.f32 2.0, %v4454_v28 }
 0x337   :  { %1955 = vst [vmem:[%s4580_s8 + $0x30] sm:$0xff] %v1945_v22  ;;  %v2075_v62 = vmul.f32 %v1945_v22, %v1945_v22  ;;  %v2142_v22 = vunpack.c.l.s4 %v2630_v24 }
 0x338   :  { %v2079_v1 = vadd.f32 %v2074_v56, %v2069_v42 }
 0x339   :  { %v2086_v45 = vadd.f32 %v2075_v62, %v2070_v27  ;;  %v2143_v51 = vunpack.c.0.s8 %v2142_v22 }
 0x33a   :  { %v2080_v4 = vrot.slane %v2079_v1, 4 }
 0x33b   :  { %v2087_v6 = vrot.slane %v2086_v45, 4 }
 0x33c   :  { %v2081_v38 = vadd.f32 %v2080_v4, %v2079_v1  ;;  %v5018_v4 = vld [vmem:[#allocation13_spill] sm:$0xff] }
 0x33d   :  { %v2088_v40 = vadd.f32 %v2087_v6, %v2086_v45  ;;  %v2121_v61 = vsub.f32 %v5018_v4, %v2116_v15  ;;  %v5019_v6 = vld [vmem:[#allocation15_spill] sm:$0xff] }
 0x33e   :  { %v2082_v48 = vrot.slane %v2081_v38, 2  ;;  %v2122_v5 = vsub.f32 %v5019_v6, %v2117_v33 }
 0x33f   :  { %v2089_v3 = vrot.slane %v2088_v40, 2 }
 0x340   :  { %v2083_v7 = vadd.f32 %v2082_v48, %v2081_v38  ;;  %v2145_v38 = vshrl.u32 %v2144_v32, 7 }
 0x341   :  { %v2090_v18 = vadd.f32 %v2089_v3, %v2088_v40 }
 0x342   :  { %v2084_v63 = vrot.slane %v2083_v7, 1  ;;  %v2146_v44 = vsub.s32 %v2143_v51, %v2145_v38 }
 0x343   :  { %v2091_v16 = vrot.slane %v2090_v18, 1 }
 0x344   :  { %v2085_v39 = vadd.f32 %v2084_v63, %v2083_v7 }
 0x345   :  { %v2092_v31 = vadd.f32 %v2091_v16, %v2090_v18 }
 0x346   :  { %v2124_v37 = vadd.f32 %v2119_v29, %v2085_v39 }
 0x347   :  { %v2125_v13 = vadd.f32 %v2120_v46, %v2092_v31  ;;  %v2118_v46 = vmul.f32 2.0, %v4506_v43 }
 0x348   :  { %v2129_v41 = vmax.f32 %v2124_v37, 0.0 }
 0x349   :  { %v2130_v23 = vmax.f32 %v2125_v13, 0.0 }
 0x34b   :  { %v2139_v59 = vcombine.low %v2129_v41, %v2130_v23  ;;  %v5020_v41 = vld [vmem:[#allocation84_spill] sm:$0xff] }
 0x34c   :  { %v2123_v23 = vsub.f32 %v5020_v41, %v2118_v46 }
 0x34d   :  { %v2147_v39 = vrot.slane %v2139_v59, %v2146_v44 }
 0x362   :  { %v1853_v17 = vpop.f32.mrb[22].mxu1 }
 0x363   :  { %v1941_v9 = vmul.f32 %v4466_v36, %v1853_v17  ;;  %v1855_v57 = vpop.f32.mrb[23].mxu1 }
 0x364   :  { %v1942_v50 = vmul.f32 %v4443_v11, %v1855_v57 }
 0x365   :  { %1951 = vst [vmem:[%s4580_s8 + $0x10] sm:$0xff] %v1941_v9  ;;  %v2071_v34 = vmul.f32 %v1941_v9, %v1941_v9 }
 0x366   :  { %1952 = vst [vmem:[%s4580_s8 + $0x18] sm:$0xff] %v1942_v50  ;;  %v1859_v53 = vpop.f32.mrb[24].mxu1  ;;  %v2072_v12 = vmul.f32 %v1942_v50, %v1942_v50 }
 0x367   :  { %v1946_v47 = vmul.f32 %v4466_v36, %v1859_v53  ;;  %v1861_v19 = vpop.f32.mrb[25].mxu1 }
 0x368   :  { %v1947_v52 = vmul.f32 %v4443_v11, %v1861_v19 }
 0x369   :  { %1956 = vst [vmem:[%s4580_s8 + $0x38] sm:$0xff] %v1946_v47  ;;  %v2076_v60 = vmul.f32 %v1946_v47, %v1946_v47 }
 0x36a   :  { %1957 = vst [vmem:[%s4580_s8 + $0x40] sm:$0xff] %v1947_v52  ;;  %v2077_v30 = vmul.f32 %v1947_v52, %v1947_v52 }
 0x36b   :  { %v2093_v2 = vadd.f32 %v2076_v60, %v2071_v34 }
 0x36c   :  { %v2100_v20 = vadd.f32 %v2077_v30, %v2072_v12 }
 0x36d   :  { %v2094_v35 = vrot.slane %v2093_v2, 4 }
 0x36e   :  { %v2101_v25 = vrot.slane %v2100_v20, 4 }
 0x36f   :  { %v2095_v36 = vadd.f32 %v2094_v35, %v2093_v2 }
 0x370   :  { %v2102_v49 = vadd.f32 %v2101_v25, %v2100_v20 }
 0x371   :  { %v2096_v58 = vrot.slane %v2095_v36, 2 }
 0x372   :  { %v2103_v11 = vrot.slane %v2102_v49, 2  ;;  %v2368_v56 = vpop.f32.mrb[28].mxu0 }
 0x373   :  { %v2097_v0 = vadd.f32 %v2096_v58, %v2095_v36  ;;  %v1948_v27 = vmul.f32 %v4502_v21, %v2368_v56  ;;  %v1930_v62 = vpop.f32.mrb[29].mxu0 }
 0x374   :  { %v2104_v42 = vadd.f32 %v2103_v11, %v2102_v49  ;;  %v1943_v45 = vmul.f32 %v4502_v21, %v1930_v62 }
 0x375   :  { %v2098_v8 = vrot.slane %v2097_v0, 1  ;;  %1958 = vst [vmem:[%s4580_s8 + $0x48] sm:$0xff] %v1948_v27  ;;  %v2078_v28 = vmul.f32 %v1948_v27, %v1948_v27 }
 0x376   :  { %v2105_v1 = vrot.slane %v2104_v42, 1  ;;  %1953 = vst [vmem:[%s4580_s8 + $0x20] sm:$0xff] %v1943_v45  ;;  %v2073_v40 = vmul.f32 %v1943_v45, %v1943_v45 }
 0x377   :  { %v2099_v55 = vadd.f32 %v2098_v8, %v2097_v0 }
 0x378   :  { %v2106_v26 = vadd.f32 %v2105_v1, %v2104_v42  ;;  %v2107_v3 = vadd.f32 %v2078_v28, %v2073_v40 }
 0x379   :  { %v2126_v48 = vadd.f32 %v2121_v61, %v2099_v55 }
 0x37a   :  { %v2127_v21 = vadd.f32 %v2122_v5, %v2106_v26  ;;  %v2108_v54 = vrot.slane %v2107_v3, 4 }
 0x37b   :  { %v2131_v7 = vmax.f32 %v2126_v48, 0.0 }
 0x37c   :  { %v2132_v18 = vmax.f32 %v2127_v21, 0.0  ;;  %v2109_v16 = vadd.f32 %v2108_v54, %v2107_v3 }
 0x37e   :  { %v2140_v63 = vcombine.low %v2131_v7, %v2132_v18  ;;  %v2110_v29 = vrot.slane %v2109_v16, 2 }
 0x380   :  { %v2154_v14 = vrot.slane %v2140_v63, %v2146_v44  ;;  %v2111_v10 = vadd.f32 %v2110_v29, %v2109_v16 }
 0x382   :  { %v2162_v31 = vcombine.low %v2147_v39, %v2154_v14  ;;  %v2112_v37 = vrot.slane %v2111_v10, 1 }
 0x384   :  { %v2113_v13 = vadd.f32 %v2112_v37, %v2111_v10  ;;  %v2169_v50 = vrot.slane %v2162_v31, %v2146_v44 }
 0x386   :  { %v2128_v17 = vadd.f32 %v2123_v23, %v2113_v13 }
 0x388   :  { %v2133_v9 = vmax.f32 %v2128_v17, 0.0 }
 0x38a   :  { %v2161_v57 = vrot.slane %v2133_v9, %v2146_v44 }
 0x38c   :  { %v2176_v53 = vrot.slane %v2161_v57, %v2146_v44 }
 0x38e   :  { %v2177_v47 = vcombine.low %v2169_v50, %v2176_v53 }
 0x390   :  { %2183 = vst.msk [vmem:[%s4581_s9] sm:$0x1f] %vm2181_vm5, %v2177_v47 }

</bundles_post_ra>
